<compile_context>
chip_gen: v5e
topology: v5e:2x2
jax: 0.10.0
libtpu: 0.0.40
codegen_flags: <defaults>
</compile_context>

<pallas_src>
import jax
import jax.numpy as jnp
from jax import lax
from jax.experimental import pallas as pl
from jax.experimental.pallas import tpu as pltpu

IN_DIM = 400
H1, H2, H3 = 1000, 200, 20          # logical hidden widths (PyTorch module)
H1P, H2P, H3P = 1024, 256, 128      # lane-aligned padded widths


def _round_up(n, m):
    return (n + m - 1) // m * m


def st_fc_kernel(x_ref, w1_ref, b1_ref, w2_ref, b2_ref, w3_ref, b3_ref,
                 w4_ref, b4_ref, out_ref):
    # x arrives f32; cast to bf16 in-kernel (rides VPU slack) instead of a
    # separate wrapper-side cast that would cost an extra HBM round trip.
    x = x_ref[...].astype(jnp.bfloat16)
    # Layer 1: (TB,400)bf16 @ (400,1024)bf16 -> f32 acc, + bias, ReLU
    h = jnp.dot(x, w1_ref[...], preferred_element_type=jnp.float32)
    h = jnp.maximum(h + b1_ref[...], 0.0)
    # Layer 2: (TB,1024) @ (1024,256)
    h = jnp.dot(h.astype(jnp.bfloat16), w2_ref[...],
                preferred_element_type=jnp.float32)
    h = jnp.maximum(h + b2_ref[...], 0.0)
    # Layer 3: (TB,256) @ (256,128)
    h = jnp.dot(h.astype(jnp.bfloat16), w3_ref[...],
                preferred_element_type=jnp.float32)
    h = jnp.maximum(h + b3_ref[...], 0.0)
    # Layer 4 (20 -> 1): contract w4 (1,128) against h (TB,128) on the last
    # dim of both (trans-B matmul) so the logits come out already transposed
    # into a lane-dense (1, TB) row -> single unmasked lane-dense store,
    # 4 B/row of HBM writeback instead of a (TB,128) slab.
    logits = lax.dot_general(
        w4_ref[...], h.astype(jnp.bfloat16),
        (((1,), (1,)), ((), ())),
        preferred_element_type=jnp.float32) + b4_ref[...]
    out_ref[...] = jax.nn.sigmoid(logits)


def _choose_tiling(B, tb):
    """Pick a lane-aligned batch tile TB (multiple of 128, <= tb) and padded
    batch Bp = TB * n_steps.  Forces >=2 grid steps once the padded batch hits
    1024 so v7x megacore gets both TensorCores."""
    bp_min = _round_up(max(B, 1), 128)
    n = -(-bp_min // tb)                       # ceil-div
    if n == 1 and bp_min >= 1024:
        n = 2                                  # v7x: engage the second TC
    tile = _round_up(-(-bp_min // n), 128)     # per-step rows, lane-aligned
    return tile, tile * n, n


def st_fc_forward(x, params, tb=1024):
    """x: (B, 400) float32. Returns (B, 1) float32.

    tb: max batch-tile rows per grid step.  512-1024 works well across
    v5e/v6e/v7x; the per-step fixed cost (~0.35 us) is amortized and VMEM use
    stays ~10-15 MiB at tb=1024."""
    B = x.shape[0]
    w1, b1, w2, b2, w3, b3, w4, b4 = params

    TB, Bp, n_steps = _choose_tiling(B, tb)
    xp = x
    if Bp != B:
        xp = jnp.pad(x, ((0, Bp - B), (0, 0)))

    const = lambda a: pl.BlockSpec(a.shape, lambda i: (0, 0))  # resident weight

    out = pl.pallas_call(
        st_fc_kernel,
        out_shape=jax.ShapeDtypeStruct((1, Bp), jnp.float32),
        grid=(n_steps,),
        in_specs=[
            pl.BlockSpec((TB, IN_DIM), lambda i: (i, 0)),   # x batch tile (f32)
            const(w1), const(b1),
            const(w2), const(b2),
            const(w3), const(b3),
            const(w4), const(b4),
        ],
        out_specs=pl.BlockSpec((1, TB), lambda i: (0, i)),  # lane-dense row
        compiler_params=pltpu.CompilerParams(
            dimension_semantics=("parallel",),
            vmem_limit_bytes=32 << 20,
        ),
    )(xp, w1, b1, w2, b2, w3, b3, w4, b4)
    return out[:, :B].T   # (B, 1)


def init_params(key):
    """PyTorch nn.Linear default init: U(-1/sqrt(fan_in), 1/sqrt(fan_in)).
    Weights are zero-padded to lane-aligned widths and stored bf16 (biases
    stay f32)."""
    dims = [(IN_DIM, H1), (H1, H2), (H2, H3), (H3, 1)]
    raw = []
    for fan_in, fan_out in dims:
        key, kw, kb = jax.random.split(key, 3)
        bound = 1.0 / jnp.sqrt(float(fan_in))
        w = jax.random.uniform(kw, (fan_in, fan_out), jnp.float32, -bound, bound)
        b = jax.random.uniform(kb, (fan_out,), jnp.float32, -bound, bound)
        raw.append((w, b))
    (w1, b1), (w2, b2), (w3, b3), (w4, b4) = raw

    w1p = jnp.zeros((IN_DIM, H1P), jnp.float32).at[:, :H1].set(w1).astype(jnp.bfloat16)
    b1p = jnp.zeros((1, H1P), jnp.float32).at[0, :H1].set(b1)
    w2p = jnp.zeros((H1P, H2P), jnp.float32).at[:H1, :H2].set(w2).astype(jnp.bfloat16)
    b2p = jnp.zeros((1, H2P), jnp.float32).at[0, :H2].set(b2)
    w3p = jnp.zeros((H2P, H3P), jnp.float32).at[:H2, :H3].set(w3).astype(jnp.bfloat16)
    b3p = jnp.zeros((1, H3P), jnp.float32).at[0, :H3].set(b3)
    w4p = jnp.zeros((1, H3P), jnp.float32).at[0, :H3].set(w4[:, 0]).astype(jnp.bfloat16)
    b4p = b4.reshape(1, 1)
    return (w1p, b1p, w2p, b2p, w3p, b3p, w4p, b4p)


def st_fc_reference(x, params):
    """Pure-JAX reference mirroring the kernel math (bf16 matmul inputs,
    f32 accumulation); zero-padding does not change the result."""
    # TODO(synk): reference matches the kernel's bf16 weight storage, not the
    # exact f32 math of the original PyTorch module (drift ~bf16 level).
    w1, b1, w2, b2, w3, b3, w4, b4 = params
    h = x.astype(jnp.bfloat16)
    h = jnp.maximum(jnp.dot(h, w1, preferred_element_type=jnp.float32) + b1, 0.0)
    h = jnp.maximum(jnp.dot(h.astype(jnp.bfloat16), w2,
                            preferred_element_type=jnp.float32) + b2, 0.0)
    h = jnp.maximum(jnp.dot(h.astype(jnp.bfloat16), w3,
                            preferred_element_type=jnp.float32) + b3, 0.0)
    logits = jnp.dot(h.astype(jnp.bfloat16), w4.T,
                     preferred_element_type=jnp.float32) + b4
    return jax.nn.sigmoid(logits)


if __name__ == "__main__":
    key = jax.random.PRNGKey(0)
    params = init_params(key)

    # Small-batch check (single grid step).
    key, kx = jax.random.split(key)
    B = 8
    x = jax.random.normal(kx, (B, IN_DIM), dtype=jnp.float32)
    out = jax.block_until_ready(st_fc_forward(x, params))
    ref = st_fc_reference(x, params)
    assert out.shape == (B, 1), out.shape
    assert jnp.allclose(out, ref, atol=2e-3, rtol=2e-3), (out, ref)

    # Larger-batch check (exercises multi-step grid + batch padding path).
    key, kx2 = jax.random.split(key)
    B2 = 1500
    x2 = jax.random.normal(kx2, (B2, IN_DIM), dtype=jnp.float32)
    out2 = jax.block_until_ready(st_fc_forward(x2, params))
    ref2 = st_fc_reference(x2, params)
    assert out2.shape == (B2, 1), out2.shape
    assert jnp.allclose(out2, ref2, atol=2e-3, rtol=2e-3)

    print("KERNEL_OK")
</pallas_src>

<mosaic_0001>
module attributes {stable_mosaic.version = 11 : i64} {
  func.func @st_fc_kernel(%arg0: i32, %arg1: memref<128x400xf32, #tpu.memory_space<vmem>>, %arg2: memref<400x1024xbf16, #tpu.memory_space<vmem>>, %arg3: memref<1x1024xf32, #tpu.memory_space<vmem>>, %arg4: memref<1024x256xbf16, #tpu.memory_space<vmem>>, %arg5: memref<1x256xf32, #tpu.memory_space<vmem>>, %arg6: memref<256x128xbf16, #tpu.memory_space<vmem>>, %arg7: memref<1x128xf32, #tpu.memory_space<vmem>>, %arg8: memref<1x128xbf16, #tpu.memory_space<vmem>>, %arg9: memref<1x1xf32, #tpu.memory_space<vmem>>, %arg10: memref<1x128xf32, #tpu.memory_space<vmem>>) attributes {dimension_semantics = [#tpu.dimension_semantics<parallel>], iteration_bounds = array<i64: 1>, scalar_prefetch = 0 : i64, scratch_operands = 0 : i64, tpu.core_type = #tpu.core_type<tc>, window_params = [{transform_indices = @transform_0, window_bounds = array<i64: 128, 400>}, {pipeline_mode = #tpu.pipeline_mode<synchronous>, transform_indices = @transform_1, window_bounds = array<i64: 400, 1024>}, {pipeline_mode = #tpu.pipeline_mode<synchronous>, transform_indices = @transform_2, window_bounds = array<i64: 1, 1024>}, {pipeline_mode = #tpu.pipeline_mode<synchronous>, transform_indices = @transform_3, window_bounds = array<i64: 1024, 256>}, {pipeline_mode = #tpu.pipeline_mode<synchronous>, transform_indices = @transform_4, window_bounds = array<i64: 1, 256>}, {pipeline_mode = #tpu.pipeline_mode<synchronous>, transform_indices = @transform_5, window_bounds = array<i64: 256, 128>}, {pipeline_mode = #tpu.pipeline_mode<synchronous>, transform_indices = @transform_6, window_bounds = array<i64: 1, 128>}, {pipeline_mode = #tpu.pipeline_mode<synchronous>, transform_indices = @transform_7, window_bounds = array<i64: 1, 128>}, {pipeline_mode = #tpu.pipeline_mode<synchronous>, transform_indices = @transform_8, window_bounds = array<i64: 1, 1>}, {transform_indices = @transform_9, window_bounds = array<i64: 1, 128>}]} {
    %c0 = arith.constant 0 : index
    %c0_0 = arith.constant 0 : index
    %0 = vector.load %arg1[%c0, %c0_0] : memref<128x400xf32, #tpu.memory_space<vmem>>, vector<128x400xf32>
    %1 = arith.truncf %0 : vector<128x400xf32> to vector<128x400xbf16>
    %c0_1 = arith.constant 0 : index
    %c0_2 = arith.constant 0 : index
    %2 = vector.load %arg2[%c0_1, %c0_2] : memref<400x1024xbf16, #tpu.memory_space<vmem>>, vector<400x1024xbf16>
    %cst = arith.constant dense<0.000000e+00> : vector<128x1024xf32>
    %3 = tpu.matmul %1, %2, %cst {dimension_numbers = #tpu.dot_dimension_numbers<[1], [0], [0], [1], [0, 0, 1, 1], [], []>} : vector<128x400xbf16>, vector<400x1024xbf16>, vector<128x1024xf32> -> vector<128x1024xf32>
    %c0_3 = arith.constant 0 : index
    %c0_4 = arith.constant 0 : index
    %4 = vector.load %arg3[%c0_3, %c0_4] : memref<1x1024xf32, #tpu.memory_space<vmem>>, vector<1x1024xf32>
    %5 = vector.broadcast %4 : vector<1x1024xf32> to vector<128x1024xf32>
    %6 = arith.addf %3, %5 : vector<128x1024xf32>
    %cst_5 = arith.constant 0.000000e+00 : f32
    %7 = vector.broadcast %cst_5 : f32 to vector<128x1024xf32>
    %8 = arith.maximumf %6, %7 : vector<128x1024xf32>
    %9 = arith.truncf %8 : vector<128x1024xf32> to vector<128x1024xbf16>
    %c0_6 = arith.constant 0 : index
    %c0_7 = arith.constant 0 : index
    %10 = vector.load %arg4[%c0_6, %c0_7] : memref<1024x256xbf16, #tpu.memory_space<vmem>>, vector<1024x256xbf16>
    %cst_8 = arith.constant dense<0.000000e+00> : vector<128x256xf32>
    %11 = tpu.matmul %9, %10, %cst_8 {dimension_numbers = #tpu.dot_dimension_numbers<[1], [0], [0], [1], [0, 0, 1, 1], [], []>} : vector<128x1024xbf16>, vector<1024x256xbf16>, vector<128x256xf32> -> vector<128x256xf32>
    %c0_9 = arith.constant 0 : index
    %c0_10 = arith.constant 0 : index
    %12 = vector.load %arg5[%c0_9, %c0_10] : memref<1x256xf32, #tpu.memory_space<vmem>>, vector<1x256xf32>
    %13 = vector.broadcast %12 : vector<1x256xf32> to vector<128x256xf32>
    %14 = arith.addf %11, %13 : vector<128x256xf32>
    %cst_11 = arith.constant 0.000000e+00 : f32
    %15 = vector.broadcast %cst_11 : f32 to vector<128x256xf32>
    %16 = arith.maximumf %14, %15 : vector<128x256xf32>
    %17 = arith.truncf %16 : vector<128x256xf32> to vector<128x256xbf16>
    %c0_12 = arith.constant 0 : index
    %c0_13 = arith.constant 0 : index
    %18 = vector.load %arg6[%c0_12, %c0_13] : memref<256x128xbf16, #tpu.memory_space<vmem>>, vector<256x128xbf16>
    %cst_14 = arith.constant dense<0.000000e+00> : vector<128x128xf32>
    %19 = tpu.matmul %17, %18, %cst_14 {dimension_numbers = #tpu.dot_dimension_numbers<[1], [0], [0], [1], [0, 0, 1, 1], [], []>} : vector<128x256xbf16>, vector<256x128xbf16>, vector<128x128xf32> -> vector<128x128xf32>
    %c0_15 = arith.constant 0 : index
    %c0_16 = arith.constant 0 : index
    %20 = vector.load %arg7[%c0_15, %c0_16] : memref<1x128xf32, #tpu.memory_space<vmem>>, vector<1x128xf32>
    %21 = vector.broadcast %20 : vector<1x128xf32> to vector<128x128xf32>
    %22 = arith.addf %19, %21 : vector<128x128xf32>
    %cst_17 = arith.constant 0.000000e+00 : f32
    %23 = vector.broadcast %cst_17 : f32 to vector<128x128xf32>
    %24 = arith.maximumf %22, %23 : vector<128x128xf32>
    %c0_18 = arith.constant 0 : index
    %c0_19 = arith.constant 0 : index
    %25 = vector.load %arg8[%c0_18, %c0_19] : memref<1x128xbf16, #tpu.memory_space<vmem>>, vector<1x128xbf16>
    %26 = arith.truncf %24 : vector<128x128xf32> to vector<128x128xbf16>
    %cst_20 = arith.constant dense<0.000000e+00> : vector<1x128xf32>
    %27 = tpu.matmul %25, %26, %cst_20 {dimension_numbers = #tpu.dot_dimension_numbers<[1], [1], [0], [0], [0, 0, 1, 0], [], []>} : vector<1x128xbf16>, vector<128x128xbf16>, vector<1x128xf32> -> vector<1x128xf32>
    %c0_21 = arith.constant 0 : index
    %c0_22 = arith.constant 0 : index
    %28 = vector.load %arg9[%c0_21, %c0_22] : memref<1x1xf32, #tpu.memory_space<vmem>>, vector<1x1xf32>
    %29 = vector.broadcast %28 : vector<1x1xf32> to vector<1x128xf32>
    %30 = arith.addf %27, %29 : vector<1x128xf32>
    %31 = arith.negf %30 : vector<1x128xf32>
    %32 = math.exp %31 : vector<1x128xf32>
    %cst_23 = arith.constant 1.000000e+00 : f32
    %33 = vector.broadcast %cst_23 : f32 to vector<1x128xf32>
    %34 = arith.addf %33, %32 : vector<1x128xf32>
    %35 = arith.divf %33, %34 : vector<1x128xf32>
    %c0_24 = arith.constant 0 : index
    %c0_25 = arith.constant 0 : index
    %36 = vector.load %arg10[%c0_24, %c0_25] : memref<1x128xf32, #tpu.memory_space<vmem>>, vector<1x128xf32>
    tpu.vector_store %arg10[%c0_24, %c0_25], %35 {strides = array<i32>} : memref<1x128xf32, #tpu.memory_space<vmem>>, vector<1x128xf32>,
    return
  }
  func.func @transform_0(%arg0: i32) -> (i32, i32) {
    %c0_i32 = arith.constant 0 : i32
    %c0_i32_0 = arith.constant 0 : i32
    return %arg0, %c0_i32 : i32, i32
  }
  func.func @transform_1(%arg0: i32) -> (i32, i32) {
    %c0_i32 = arith.constant 0 : i32
    %c0_i32_0 = arith.constant 0 : i32
    %c0_i32_1 = arith.constant 0 : i32
    return %c0_i32, %c0_i32_0 : i32, i32
  }
  func.func @transform_2(%arg0: i32) -> (i32, i32) {
    %c0_i32 = arith.constant 0 : i32
    %c0_i32_0 = arith.constant 0 : i32
    %c0_i32_1 = arith.constant 0 : i32
    return %c0_i32, %c0_i32_0 : i32, i32
  }
  func.func @transform_3(%arg0: i32) -> (i32, i32) {
    %c0_i32 = arith.constant 0 : i32
    %c0_i32_0 = arith.constant 0 : i32
    %c0_i32_1 = arith.constant 0 : i32
    return %c0_i32, %c0_i32_0 : i32, i32
  }
  func.func @transform_4(%arg0: i32) -> (i32, i32) {
    %c0_i32 = arith.constant 0 : i32
    %c0_i32_0 = arith.constant 0 : i32
    %c0_i32_1 = arith.constant 0 : i32
    return %c0_i32, %c0_i32_0 : i32, i32
  }
  func.func @transform_5(%arg0: i32) -> (i32, i32) {
    %c0_i32 = arith.constant 0 : i32
    %c0_i32_0 = arith.constant 0 : i32
    %c0_i32_1 = arith.constant 0 : i32
    return %c0_i32, %c0_i32_0 : i32, i32
  }
  func.func @transform_6(%arg0: i32) -> (i32, i32) {
    %c0_i32 = arith.constant 0 : i32
    %c0_i32_0 = arith.constant 0 : i32
    %c0_i32_1 = arith.constant 0 : i32
    return %c0_i32, %c0_i32_0 : i32, i32
  }
  func.func @transform_7(%arg0: i32) -> (i32, i32) {
    %c0_i32 = arith.constant 0 : i32
    %c0_i32_0 = arith.constant 0 : i32
    %c0_i32_1 = arith.constant 0 : i32
    return %c0_i32, %c0_i32_0 : i32, i32
  }
  func.func @transform_8(%arg0: i32) -> (i32, i32) {
    %c0_i32 = arith.constant 0 : i32
    %c0_i32_0 = arith.constant 0 : i32
    %c0_i32_1 = arith.constant 0 : i32
    return %c0_i32, %c0_i32_0 : i32, i32
  }
  func.func @transform_9(%arg0: i32) -> (i32, i32) {
    %c0_i32 = arith.constant 0 : i32
    %c0_i32_0 = arith.constant 0 : i32
    return %c0_i32, %arg0 : i32, i32
  }
}

</mosaic_0001>

<bundles_post_ra>
// kernel: tpu_custom_call.1
= control target key start
LH: loop header
LB: loop body
LE: loop exit
PB: predicated region body
PF: predicated region fallthrough
CT: control target
= control target key end

     0   :  { %s9728_s0 = inlined_call_operand.vmem [shape: f32[128,400], index: 0, kind: input, shape index: {}]   ;;  %s9729_s1 = inlined_call_operand.hbm [shape: bf16[400,1024], index: 1, kind: input, shape index: {}]   ;;  %s9730_s2 = inlined_call_operand.vmem [shape: f32[1,1024], index: 2, kind: input, shape index: {}]   ;;  %s9731_s3 = inlined_call_operand.hbm [shape: bf16[1024,256], index: 3, kind: input, shape index: {}]   ;;  %s9732_s4 = inlined_call_operand.vmem [shape: f32[1,256], index: 4, kind: input, shape index: {}]   ;;  %s9733_s5 = inlined_call_operand.vmem [shape: bf16[256,128], index: 5, kind: input, shape index: {}]   ;;  %s9734_s6 = inlined_call_operand.vmem [shape: f32[1,128], index: 6, kind: input, shape index: {}]   ;;  %s9735_s7 = inlined_call_operand.vmem [shape: bf16[1,128], index: 7, kind: input, shape index: {}]   ;;  %s9736_s8 = inlined_call_operand.<no memory space> [shape: f32[1,1], index: 8, kind: input, shape index: {}]   ;;  %s9737_s9 = inlined_call_operand.hbm [shape: f32[1,128], index: 9, kind: output, shape index: {}]  }
   0x1   :  { %v14_v0 = vstv %s9736_s8 }
   0x2   :  { %15 = vst [vmem:[#allocation2] sm:$0x1] %v14_v0 }
   0x3   :  { %16 = vsyncpa [#allocation4], 0 }
   0x4   :  { %17 = vsyncpa [#allocation7], 0 }
   0x5   :  { %18 = vsyncpa [#allocation5], 0  ;;  %s25_s13 = sshll.u32 %s9729_s1, 4  ;;  %s6976_s14 = smov [#allocation3]   ;;  %s26_s13 = int_to_ptr.hbm [resolvable:$true] %s25_s13 }
   0x6   :  { %s27_s15 = sshll.u32 %s6976_s14, 4  ;;  %s40_s18 = sshll.u32 %s9731_s3, 4  ;;  %s28_s15 = int_to_ptr.vmem [resolvable:$true] %s27_s15  ;;  %s41_s18 = int_to_ptr.hbm [resolvable:$true] %s40_s18 }
   0x7   :  { %s6977_s19 = smov 512   ;;  %s6978_s20 = smov 32  }
   0x8   :  { %33 = dma.hbm_to_vmem [thread:$0]  %s26_s13, 25600, %s28_s15, [#allocation4], %s6977_s19, %s6977_s19, %s6978_s20  }
   0x9   :  { %s6979_s8 = smov [#allocation6]   ;;  %s6980_s22 = smov 128  }
   0xa   :  { %s42_s21 = sshll.u32 %s6979_s8, 4  ;;  %s6981_s23 = smov 8   ;;  %s43_s21 = int_to_ptr.vmem [resolvable:$true] %s42_s21 }
   0xb   :  { %48 = dma.hbm_to_vmem [thread:$0]  %s41_s18, 16384, %s43_s21, [#allocation7], %s6980_s22, %s6980_s22, %s6981_s23  }
   0xc   :  { %6970 = dma.done.wait [#allocation4], 25600  }
   0xd   :  { %6971 = vsyncadd [#allocation4], 4294941696 }
   0xe   :  { %6972 = dma.done.wait [#allocation7], 16384  }
   0xf   :  { %6973 = vsyncadd [#allocation7], 4294950912  ;;  %v5312_v1 = vld [vmem:[#allocation3 + $0x1c0] sm:$0xf]  ;;  %v87_v10 = vld [vmem:[%s9728_s0 + $0x98] sm:$0xff]  ;;  %vm1382_vm0 = vcmask 130048  }
  0x10   :  { %v6587_v2 = vld [vmem:[#allocation3 + $0x1dc] sm:$0xf0]  ;;  %v91_v11 = vld [vmem:[%s9728_s0 + $0xb8] sm:$0xff]  ;;  %v69_v62 = vld [vmem:[%s9728_s0 + $0x8] sm:$0xff]  ;;  %s6983_s1 = smov [#allocation8]   ;;  %s5075_s25 = sshll.u32 %s9737_s9, 4  ;;  %s5076_s25 = int_to_ptr.hbm [resolvable:$true] %s5075_s25 }
  0x11   :  { %v5568_v3 = vld [vmem:[#allocation3 + $0x3c0] sm:$0xf]  ;;  %v5313_v4 = vor.u32 %v6587_v2, %v5312_v1  ;;  %v7051_v13 = vpack.c.bf16 %v91_v11, %v87_v10  ;;  %v95_v36 = vld [vmem:[%s9728_s0 + $0xd8] sm:$0xff]  ;;  %v73_v63 = vld [vmem:[%s9728_s0 + $0x28] sm:$0xff] }
  0x12   :  { %v6651_v5 = vld [vmem:[#allocation3 + $0x3dc] sm:$0xf0]  ;;  %v99_v38 = vld [vmem:[%s9728_s0 + $0xf8] sm:$0xff]  ;;  %v7088_v2 = vpack.c.bf16 %v73_v63, %v69_v62  ;;  %v5570_v10 = vld [vmem:[#allocation3 + $0x3e0] sm:$0xf0] }
  0x13   :  { %v5856_v6 = vld [vmem:[#allocation3 + $0x600] sm:$0xf]  ;;  %v5569_v8 = vor.u32 %v6651_v5, %v5568_v3  ;;  %1407 = vmatpush.bf16.msra.mxu0 %v5313_v4  ;;  %6871 = vmatpush.bf16.msra.mxu2 %v5313_v4  ;;  %9841 = vst [vmem:[#allocation12_spill] sm:$0xff] %v7051_v13  ;;  %v7062_v43 = vpack.c.bf16 %v99_v38, %v95_v36  ;;  %v103_v3 = vld [vmem:[%s9728_s0 + $0x118] sm:$0xff]  ;;  %v5474_v36 = vld [vmem:[#allocation3 + $0x320] sm:$0xf0] }
  0x14   :  { %v6723_v7 = vld [vmem:[#allocation3 + $0x61c] sm:$0xf0]  ;;  %9845 = vst [vmem:[#allocation16_spill] sm:$0xff] %v7088_v2  ;;  %v107_v4 = vld [vmem:[%s9728_s0 + $0x138] sm:$0xff] }
  0x15   :  { %v7043_v9 = vor.u32 %v6723_v7, %v5856_v6  ;;  %v5280_v12 = vld [vmem:[#allocation3 + $0x180] sm:$0xf]  ;;  %1456 = vmatpush.bf16.msra.mxu1 %v5569_v8  ;;  %9842 = vst [vmem:[#allocation13_spill] sm:$0xff] %v7062_v43  ;;  %v6647_v8 = vld [vmem:[#allocation3 + $0x3c4] sm:$0xf]  ;;  %v7100_v11 = vpack.c.bf16 %v107_v4, %v103_v3 }
  0x16   :  { %v6579_v14 = vld [vmem:[#allocation3 + $0x19c] sm:$0xf0]  ;;  %v6551_v3 = vld [vmem:[#allocation3 + $0xc4] sm:$0xf] }
  0x17   :  { %v5536_v15 = vld [vmem:[#allocation3 + $0x380] sm:$0xf]  ;;  %6879 = vmatpush.bf16.msra.mxu3 %v7043_v9  ;;  %v5281_v17 = vor.u32 %v6579_v14, %v5280_v12  ;;  %9846 = vst [vmem:[#allocation17_spill] sm:$0xff] %v7100_v11  ;;  %v5573_v12 = vor.u32 %v6647_v8, %v5570_v10 }
  0x18   :  { %v6643_v16 = vld [vmem:[#allocation3 + $0x39c] sm:$0xf0] }
  0x19   :  { %v5537_v18 = vor.u32 %v6643_v16, %v5536_v15  ;;  %v5248_v19 = vld [vmem:[#allocation3 + $0x140] sm:$0xf]  ;;  %1408 = vmatpush.bf16.msra.mxu0 %v5281_v17  ;;  %6872 = vmatpush.bf16.msra.mxu2 %v5281_v17  ;;  %v6583_v16 = vld [vmem:[#allocation3 + $0x1c4] sm:$0xf] }
  0x1a   :  { %v6571_v20 = vld [vmem:[#allocation3 + $0x15c] sm:$0xf0]  ;;  %5888 = vmatmul.msk.bf16.vlgmr.msra.gmra.mxu3 %vm1382_vm0, %v7051_v13 }
  0x1b   :  { %v5504_v21 = vld [vmem:[#allocation3 + $0x340] sm:$0xf]  ;;  %v5249_v23 = vor.u32 %v6571_v20, %v5248_v19  ;;  %1457 = vmatpush.bf16.msra.mxu1 %v5537_v18  ;;  %v5314_v18 = vld [vmem:[#allocation3 + $0x1e0] sm:$0xf0] }
  0x1c   :  { %v6635_v22 = vld [vmem:[#allocation3 + $0x35c] sm:$0xf0]  ;;  %v5538_v19 = vld [vmem:[#allocation3 + $0x3a0] sm:$0xf0]  ;;  %v5317_v20 = vor.u32 %v6583_v16, %v5314_v18 }
  0x1d   :  { %v5505_v24 = vor.u32 %v6635_v22, %v5504_v21  ;;  %v5216_v25 = vld [vmem:[#allocation3 + $0x100] sm:$0xf]  ;;  %1409 = vmatpush.bf16.msra.mxu0 %v5249_v23  ;;  %6873 = vmatpush.bf16.msra.mxu2 %v5249_v23  ;;  %v6599_v18 = vld [vmem:[#allocation3 + $0x244] sm:$0xf] }
  0x1e   :  { %v6563_v26 = vld [vmem:[#allocation3 + $0x11c] sm:$0xf0]  ;;  %1603 = vmatpush.bf16.msrb.mxu3 %v5317_v20 }
  0x1f   :  { %v5472_v27 = vld [vmem:[#allocation3 + $0x300] sm:$0xf]  ;;  %v5217_v29 = vor.u32 %v6563_v26, %v5216_v25  ;;  %1458 = vmatpush.bf16.msra.mxu1 %v5505_v24  ;;  %v6575_v24 = vld [vmem:[#allocation3 + $0x184] sm:$0xf] }
  0x20   :  { %v6627_v28 = vld [vmem:[#allocation3 + $0x31c] sm:$0xf0]  ;;  %v5282_v26 = vld [vmem:[#allocation3 + $0x1a0] sm:$0xf0] }
  0x21   :  { %v5473_v30 = vor.u32 %v6627_v28, %v5472_v27  ;;  %v5184_v31 = vld [vmem:[#allocation3 + $0xc0] sm:$0xf]  ;;  %1410 = vmatpush.bf16.msra.mxu0 %v5217_v29  ;;  %6874 = vmatpush.bf16.msra.mxu2 %v5217_v29  ;;  %v6631_v27 = vld [vmem:[#allocation3 + $0x344] sm:$0xf]  ;;  %v5285_v29 = vor.u32 %v6575_v24, %v5282_v26 }
  0x22   :  { %v6555_v32 = vld [vmem:[#allocation3 + $0xdc] sm:$0xf0]  ;;  %v5506_v28 = vld [vmem:[#allocation3 + $0x360] sm:$0xf0] }
  0x23   :  { %v5440_v33 = vld [vmem:[#allocation3 + $0x2c0] sm:$0xf]  ;;  %v5185_v35 = vor.u32 %v6555_v32, %v5184_v31  ;;  %1459 = vmatpush.bf16.msra.mxu1 %v5473_v30  ;;  %v5509_v30 = vor.u32 %v6631_v27, %v5506_v28  ;;  %1604 = vmatpush.bf16.msrb.mxu3 %v5285_v29  ;;  %v5122_v24 = vld [vmem:[#allocation3 + $0x60] sm:$0xf0] }
  0x24   :  { %v6619_v34 = vld [vmem:[#allocation3 + $0x2dc] sm:$0xf0]  ;;  %v85_v29 = vld [vmem:[%s9728_s0 + $0x88] sm:$0xff] }
  0x25   :  { %v5441_v37 = vor.u32 %v6619_v34, %v5440_v33  ;;  %v5152_v39 = vld [vmem:[#allocation3 + $0x80] sm:$0xf]  ;;  %1411 = vmatpush.bf16.msra.mxu0 %v5185_v35  ;;  %6875 = vmatpush.bf16.msra.mxu2 %v5185_v35  ;;  %v6567_v33 = vld [vmem:[#allocation3 + $0x144] sm:$0xf] }
  0x26   :  { %v6547_v40 = vld [vmem:[#allocation3 + $0x9c] sm:$0xf0]  ;;  %v5250_v34 = vld [vmem:[#allocation3 + $0x160] sm:$0xf0] }
  0x27   :  { %v5408_v41 = vld [vmem:[#allocation3 + $0x280] sm:$0xf]  ;;  %v5153_v44 = vor.u32 %v6547_v40, %v5152_v39  ;;  %1460 = vmatpush.bf16.msra.mxu1 %v5441_v37  ;;  %v6623_v35 = vld [vmem:[#allocation3 + $0x304] sm:$0xf] }
  0x28   :  { %v6611_v42 = vld [vmem:[#allocation3 + $0x29c] sm:$0xf0] }
  0x29   :  { %v5409_v45 = vor.u32 %v6611_v42, %v5408_v41  ;;  %v5120_v46 = vld [vmem:[#allocation3 + $0x40] sm:$0xf]  ;;  %1412 = vmatpush.bf16.msra.mxu0 %v5153_v44  ;;  %6876 = vmatpush.bf16.msra.mxu2 %v5153_v44  ;;  %v77_v41 = vld [vmem:[%s9728_s0 + $0x48] sm:$0xff] }
  0x2a   :  { %v6539_v47 = vld [vmem:[#allocation3 + $0x5c] sm:$0xf0]  ;;  %5889 = vmatmul.msk.bf16.gmra.mxu3 %vm1382_vm0, %v7062_v43  ;;  %v81_v42 = vld [vmem:[%s9728_s0 + $0x68] sm:$0xff] }
  0x2b   :  { %v5376_v48 = vld [vmem:[#allocation3 + $0x240] sm:$0xf]  ;;  %v5121_v50 = vor.u32 %v6539_v47, %v5120_v46  ;;  %1461 = vmatpush.bf16.msra.mxu1 %v5409_v45  ;;  %v5253_v45 = vor.u32 %v6567_v33, %v5250_v34  ;;  %v5477_v46 = vor.u32 %v6623_v35, %v5474_v36  ;;  %v6591_v33 = vld [vmem:[#allocation3 + $0x204] sm:$0xf] }
  0x2c   :  { %v6603_v49 = vld [vmem:[#allocation3 + $0x25c] sm:$0xf0]  ;;  %v5346_v34 = vld [vmem:[#allocation3 + $0x220] sm:$0xf0] }
  0x2d   :  { %v5377_v51 = vor.u32 %v6603_v49, %v5376_v48  ;;  %v5088_v52 = vld [vmem:[#allocation3] sm:$0xf]  ;;  %1413 = vmatpush.bf16.msra.mxu0 %v5121_v50  ;;  %6877 = vmatpush.bf16.msra.mxu2 %v5121_v50  ;;  %v7126_v49 = vpack.c.bf16 %v81_v42, %v77_v41  ;;  %v111_v50 = vld [vmem:[%s9728_s0 + $0x158] sm:$0xff]  ;;  %v6527_v41 = vld [vmem:[#allocation3 + $0x4] sm:$0xf] }
  0x2e   :  { %v6531_v53 = vld [vmem:[#allocation3 + $0x1c] sm:$0xf0]  ;;  %1605 = vmatpush.bf16.msrb.mxu3 %v5253_v45  ;;  %v5090_v42 = vld [vmem:[#allocation3 + $0x20] sm:$0xf0] }
  0x2f   :  { %v5344_v54 = vld [vmem:[#allocation3 + $0x200] sm:$0xf]  ;;  %v5089_v56 = vor.u32 %v6531_v53, %v5088_v52  ;;  %1462 = vmatpush.bf16.msra.mxu1 %v5377_v51  ;;  %9849 = vst [vmem:[#allocation20_spill] sm:$0xff] %v7126_v49  ;;  %v115_v51 = vld [vmem:[%s9728_s0 + $0x178] sm:$0xff] }
  0x30   :  { %v6595_v55 = vld [vmem:[#allocation3 + $0x21c] sm:$0xf0] }
  0x31   :  { %v68_v57 = vld [vmem:[%s9728_s0] sm:$0xff]  ;;  %v5345_v60 = vor.u32 %v6595_v55, %v5344_v54  ;;  %1414 = vmatpush.bf16.msra.mxu0 %v5089_v56  ;;  %6878 = vmatpush.bf16.msra.mxu2 %v5089_v56 }
  0x32   :  { %v72_v58 = vld [vmem:[%s9728_s0 + $0x20] sm:$0xff] }
  0x33   :  { %v100_v59 = vld [vmem:[%s9728_s0 + $0x100] sm:$0xff]  ;;  %v7084_v0 = vpack.c.bf16 %v72_v58, %v68_v57  ;;  %1463 = vmatpush.bf16.msra.mxu1 %v5345_v60  ;;  %v7137_v58 = vpack.c.bf16 %v115_v51, %v111_v50 }
  0x34   :  { %v104_v61 = vld [vmem:[%s9728_s0 + $0x120] sm:$0xff] }
  0x35   :  { %9843 = vst [vmem:[#allocation14_spill] sm:$0xff] %v7084_v0  ;;  %v7086_v1 = vpack.c.bf16 %v104_v61, %v100_v59  ;;  %v5824_v5 = vld [vmem:[#allocation3 + $0x5c0] sm:$0xf]  ;;  %1415 = vmatmul.bf16.vlgmr.msra.gmra.mxu0 %v7084_v0  ;;  %v6559_v55 = vld [vmem:[#allocation3 + $0x104] sm:$0xf] }
  0x36   :  { %v6715_v6 = vld [vmem:[#allocation3 + $0x5dc] sm:$0xf0]  ;;  %1464 = vmatmul.bf16.vlgmr.msra.gmra.mxu1 %v7088_v2  ;;  %1652 = vmatpush.bf16.msrb.mxu0 %v5573_v12  ;;  %v5218_v56 = vld [vmem:[#allocation3 + $0x120] sm:$0xf0]  ;;  %9850 = vst [vmem:[#allocation21_spill] sm:$0xff] %v7137_v58 }
  0x37   :  { %9844 = vst [vmem:[#allocation15_spill] sm:$0xff] %v7086_v1  ;;  %1561 = vmatpush.bf16.msrb.mxu1 %v7043_v9  ;;  %v5825_v7 = vor.u32 %v6715_v6, %v5824_v5  ;;  %1435 = vmatmul.bf16.vlgmr.msra.gmra.mxu2 %v7086_v1  ;;  %v5792_v14 = vld [vmem:[#allocation3 + $0x580] sm:$0xf]  ;;  %v6639_v9 = vld [vmem:[#allocation3 + $0x384] sm:$0xf]  ;;  %v5221_v59 = vor.u32 %v6559_v55, %v5218_v56 }
  0x38   :  { %v6707_v15 = vld [vmem:[#allocation3 + $0x59c] sm:$0xf0]  ;;  %v5541_v21 = vor.u32 %v6639_v9, %v5538_v19  ;;  %v6615_v57 = vld [vmem:[#allocation3 + $0x2c4] sm:$0xf] }
  0x39   :  { %1505 = vmatpush.bf16.msrb.mxu2 %v5825_v7  ;;  %v5793_v17 = vor.u32 %v6707_v15, %v5792_v14  ;;  %v5760_v22 = vld [vmem:[#allocation3 + $0x540] sm:$0xf]  ;;  %v5442_v60 = vld [vmem:[#allocation3 + $0x2e0] sm:$0xf0]  ;;  %1606 = vmatpush.bf16.msrb.mxu3 %v5221_v59  ;;  %v127_v59 = vld [vmem:[%s9728_s0 + $0x1d8] sm:$0xff] }
  0x3a   :  { %5890 = vmatmul.msk.bf16.gmra.mxu3 %vm1382_vm0, %v7100_v11  ;;  %v6699_v23 = vld [vmem:[#allocation3 + $0x55c] sm:$0xf0]  ;;  %1653 = vmatpush.bf16.msrb.mxu0 %v5541_v21  ;;  %v5445_v61 = vor.u32 %v6615_v57, %v5442_v60  ;;  %v5186_v5 = vld [vmem:[#allocation3 + $0xe0] sm:$0xf0]  ;;  %v131_v60 = vld [vmem:[%s9728_s0 + $0x1f8] sm:$0xff] }
  0x3b   :  { %v5761_v25 = vor.u32 %v6699_v23, %v5760_v22  ;;  %v5728_v31 = vld [vmem:[#allocation3 + $0x500] sm:$0xf]  ;;  %v6607_v6 = vld [vmem:[#allocation3 + $0x284] sm:$0xf]  ;;  %v5189_v8 = vor.u32 %v6551_v3, %v5186_v5  ;;  %v70_v3 = vld [vmem:[%s9728_s0 + $0x10] sm:$0xff] }
  0x3c   :  { %v6691_v32 = vld [vmem:[#allocation3 + $0x51c] sm:$0xf0]  ;;  %v5410_v7 = vld [vmem:[#allocation3 + $0x2a0] sm:$0xf0] }
  0x3d   :  { %1506 = vmatpush.bf16.msrb.mxu2 %v5793_v17  ;;  %v76_v37 = vld [vmem:[%s9728_s0 + $0x40] sm:$0xff]  ;;  %v5729_v44 = vor.u32 %v6691_v32, %v5728_v31  ;;  %v5413_v10 = vor.u32 %v6607_v6, %v5410_v7  ;;  %1607 = vmatpush.bf16.msrb.mxu3 %v5189_v8  ;;  %v109_v7 = vld [vmem:[%s9728_s0 + $0x148] sm:$0xff] }
  0x3e   :  { %v80_v38 = vld [vmem:[%s9728_s0 + $0x60] sm:$0xff]  ;;  %1654 = vmatpush.bf16.msrb.mxu0 %v5509_v30  ;;  %v89_v30 = vld [vmem:[%s9728_s0 + $0xa8] sm:$0xff] }
  0x3f   :  { %v108_v39 = vld [vmem:[%s9728_s0 + $0x140] sm:$0xff]  ;;  %v7122_v47 = vpack.c.bf16 %v80_v38, %v76_v37  ;;  %v7163_v37 = vpack.c.bf16 %v89_v30, %v85_v29  ;;  %v119_v38 = vld [vmem:[%s9728_s0 + $0x198] sm:$0xff]  ;;  %v113_v8 = vld [vmem:[%s9728_s0 + $0x168] sm:$0xff] }
  0x40   :  { %v112_v40 = vld [vmem:[%s9728_s0 + $0x160] sm:$0xff] }
  0x41   :  { %1507 = vmatpush.bf16.msrb.mxu2 %v5761_v25  ;;  %9847 = vst [vmem:[#allocation18_spill] sm:$0xff] %v7122_v47  ;;  %v7124_v48 = vpack.c.bf16 %v112_v40, %v108_v39  ;;  %v5696_v52 = vld [vmem:[#allocation3 + $0x4c0] sm:$0xf]  ;;  %v6543_v15 = vld [vmem:[#allocation3 + $0x84] sm:$0xf]  ;;  %v123_v39 = vld [vmem:[%s9728_s0 + $0x1b8] sm:$0xff]  ;;  %v5349_v40 = vor.u32 %v6591_v33, %v5346_v34 }
  0x42   :  { %1655 = vmatpush.bf16.msrb.mxu0 %v5477_v46  ;;  %v6683_v53 = vld [vmem:[#allocation3 + $0x4dc] sm:$0xf0]  ;;  %v5154_v17 = vld [vmem:[#allocation3 + $0xa0] sm:$0xf0]  ;;  %9853 = vst [vmem:[#allocation24_spill] sm:$0xff] %v7163_v37  ;;  %v7174_v45 = vpack.c.bf16 %v123_v39, %v119_v38  ;;  %v94_v39 = vld [vmem:[%s9728_s0 + $0xd0] sm:$0xff] }
  0x43   :  { %9848 = vst [vmem:[#allocation19_spill] sm:$0xff] %v7124_v48  ;;  %v5697_v54 = vor.u32 %v6683_v53, %v5696_v52  ;;  %v5664_v62 = vld [vmem:[#allocation3 + $0x480] sm:$0xf]  ;;  %v5378_v9 = vld [vmem:[#allocation3 + $0x260] sm:$0xf0]  ;;  %v5157_v19 = vor.u32 %v6543_v15, %v5154_v17 }
  0x44   :  { %v6675_v63 = vld [vmem:[#allocation3 + $0x49c] sm:$0xf0]  ;;  %v5381_v22 = vor.u32 %v6599_v18, %v5378_v9  ;;  %v6535_v23 = vld [vmem:[#allocation3 + $0x44] sm:$0xf]  ;;  %v86_v18 = vld [vmem:[%s9728_s0 + $0x90] sm:$0xff] }
  0x45   :  { %1508 = vmatpush.bf16.msrb.mxu2 %v5729_v44  ;;  %1420 = vmatmul.bf16.gmra.mxu0 %v7122_v47  ;;  %v5665_v4 = vor.u32 %v6675_v63, %v5664_v62  ;;  %v5632_v12 = vld [vmem:[#allocation3 + $0x440] sm:$0xf]  ;;  %v5125_v32 = vor.u32 %v6535_v23, %v5122_v24  ;;  %v5093_v44 = vor.u32 %v6527_v41, %v5090_v42  ;;  %v93_v53 = vld [vmem:[%s9728_s0 + $0xc8] sm:$0xff]  ;;  %v90_v9 = vld [vmem:[%s9728_s0 + $0xb0] sm:$0xff] }
  0x46   :  { %1469 = vmatmul.bf16.gmra.mxu1 %v7126_v49  ;;  %1656 = vmatpush.bf16.msrb.mxu0 %v5445_v61  ;;  %v6667_v14 = vld [vmem:[#allocation3 + $0x45c] sm:$0xf0]  ;;  %v7211_v61 = vpack.c.bf16 %v131_v60, %v127_v59  ;;  %v101_v62 = vld [vmem:[%s9728_s0 + $0x108] sm:$0xff] }
  0x47   :  { %1440 = vmatmul.bf16.gmra.mxu2 %v7124_v48  ;;  %v5633_v16 = vor.u32 %v6667_v14, %v5632_v12  ;;  %v5600_v20 = vld [vmem:[#allocation3 + $0x400] sm:$0xf]  ;;  %1608 = vmatpush.bf16.msrb.mxu3 %v5157_v19  ;;  %v105_v63 = vld [vmem:[%s9728_s0 + $0x128] sm:$0xff]  ;;  %v82_v12 = vld [vmem:[%s9728_s0 + $0x70] sm:$0xff]  ;;  %v7247_v14 = vpack.c.bf16 %v113_v8, %v109_v7 }
  0x48   :  { %v6659_v21 = vld [vmem:[#allocation3 + $0x41c] sm:$0xf0]  ;;  %9856 = vst [vmem:[#allocation27_spill] sm:$0xff] %v7211_v61  ;;  %v7227_v5 = vpack.c.bf16 %v105_v63, %v101_v62  ;;  %v121_v17 = vld [vmem:[%s9728_s0 + $0x1a8] sm:$0xff] }
  0x49   :  { %1509 = vmatpush.bf16.msrb.mxu2 %v5697_v54  ;;  %v84_v25 = vld [vmem:[%s9728_s0 + $0x80] sm:$0xff]  ;;  %v5601_v31 = vor.u32 %v6659_v21, %v5600_v20  ;;  %v97_v54 = vld [vmem:[%s9728_s0 + $0xe8] sm:$0xff]  ;;  %9858 = vst [vmem:[#allocation29_spill] sm:$0xff] %v7247_v14  ;;  %v7269_v20 = vpack.c.bf16 %v90_v9, %v86_v18 }
  0x4a   :  { %5891 = vmatmul.msk.bf16.gmra.mxu3 %vm1382_vm0, %v7137_v58  ;;  %1657 = vmatpush.bf16.msrb.mxu0 %v5413_v10  ;;  %v88_v26 = vld [vmem:[%s9728_s0 + $0xa0] sm:$0xff]  ;;  %v7200_v57 = vpack.c.bf16 %v97_v54, %v93_v53  ;;  %9857 = vst [vmem:[#allocation28_spill] sm:$0xff] %v7227_v5  ;;  %v78_v10 = vld [vmem:[%s9728_s0 + $0x50] sm:$0xff]  ;;  %v125_v34 = vld [vmem:[%s9728_s0 + $0x1c8] sm:$0xff] }
  0x4b   :  { %v116_v27 = vld [vmem:[%s9728_s0 + $0x180] sm:$0xff]  ;;  %v7159_v35 = vpack.c.bf16 %v88_v26, %v84_v25  ;;  %1609 = vmatpush.bf16.msrb.mxu3 %v5125_v32  ;;  %v7249_v15 = vpack.c.bf16 %v82_v12, %v78_v10  ;;  %9860 = vst [vmem:[#allocation31_spill] sm:$0xff] %v7269_v20  ;;  %v129_v38 = vld [vmem:[%s9728_s0 + $0x1e8] sm:$0xff]  ;;  %v102_v10 = vld [vmem:[%s9728_s0 + $0x110] sm:$0xff] }
  0x4c   :  { %v120_v28 = vld [vmem:[%s9728_s0 + $0x1a0] sm:$0xff]  ;;  %v106_v12 = vld [vmem:[%s9728_s0 + $0x130] sm:$0xff] }
  0x4d   :  { %1510 = vmatpush.bf16.msrb.mxu2 %v5665_v4  ;;  %9851 = vst [vmem:[#allocation22_spill] sm:$0xff] %v7159_v35  ;;  %v7161_v36 = vpack.c.bf16 %v120_v28, %v116_v27  ;;  %v92_v46 = vld [vmem:[%s9728_s0 + $0xc0] sm:$0xff]  ;;  %v74_v4 = vld [vmem:[%s9728_s0 + $0x30] sm:$0xff] }
  0x4e   :  { %1658 = vmatpush.bf16.msrb.mxu0 %v5381_v22  ;;  %v96_v50 = vld [vmem:[%s9728_s0 + $0xe0] sm:$0xff]  ;;  %v7229_v6 = vpack.c.bf16 %v74_v4, %v70_v3  ;;  %9859 = vst [vmem:[#allocation30_spill] sm:$0xff] %v7249_v15 }
  0x4f   :  { %9852 = vst [vmem:[#allocation23_spill] sm:$0xff] %v7161_v36  ;;  %1610 = vmatpush.bf16.msrb.mxu3 %v5093_v44  ;;  %v124_v51 = vld [vmem:[%s9728_s0 + $0x1c0] sm:$0xff]  ;;  %v7196_v55 = vpack.c.bf16 %v96_v50, %v92_v46  ;;  %v7289_v46 = vpack.c.bf16 %v129_v38, %v125_v34  ;;  %v5320_v34 = vld [vmem:[#allocation3 + $0x1c8] sm:$0xf] }
  0x50   :  { %v128_v52 = vld [vmem:[%s9728_s0 + $0x1e0] sm:$0xff]  ;;  %v6588_v38 = vld [vmem:[#allocation3 + $0x1e4] sm:$0xf0] }
  0x51   :  { %1511 = vmatpush.bf16.msrb.mxu2 %v5633_v16  ;;  %9854 = vst [vmem:[#allocation25_spill] sm:$0xff] %v7196_v55  ;;  %v7198_v56 = vpack.c.bf16 %v128_v52, %v124_v51  ;;  %v117_v16 = vld [vmem:[%s9728_s0 + $0x188] sm:$0xff]  ;;  %v7304_v8 = vld [vmem:[%s9730_s2] sm:$0xff] }
  0x52   :  { %1659 = vmatpush.bf16.msrb.mxu0 %v5349_v40  ;;  %v7267_v19 = vpack.c.bf16 %v121_v17, %v117_v16  ;;  %v6711_v21 = vld [vmem:[#allocation3 + $0x5c4] sm:$0xf]  ;;  %v98_v40 = vld [vmem:[%s9728_s0 + $0xf0] sm:$0xff]  ;;  %9861 = vst [vmem:[#allocation32_spill] sm:$0xff] %v7289_v46  ;;  %v71_v16 = vld [vmem:[%s9728_s0 + $0x18] sm:$0xff] }
  0x53   :  { %9855 = vst [vmem:[#allocation26_spill] sm:$0xff] %v7198_v56  ;;  %v5826_v22 = vld [vmem:[#allocation3 + $0x5e0] sm:$0xf0]  ;;  %v7291_v50 = vpack.c.bf16 %v98_v40, %v94_v39  ;;  %v75_v17 = vld [vmem:[%s9728_s0 + $0x38] sm:$0xff]  ;;  %v5544_v39 = vld [vmem:[#allocation3 + $0x388] sm:$0xf] }
  0x54   :  { %v5829_v23 = vor.u32 %v6711_v21, %v5826_v22  ;;  %v6719_v24 = vld [vmem:[#allocation3 + $0x604] sm:$0xf]  ;;  %v7319_v21 = vperm.slane %v7304_v8, 0 }
  0x55   :  { %1512 = vmatpush.bf16.msrb.mxu2 %v5601_v31  ;;  %1425 = vmatmul.bf16.gmra.mxu0 %v7159_v35  ;;  %v5858_v25 = vld [vmem:[#allocation3 + $0x620] sm:$0xf0]  ;;  %9862 = vst [vmem:[#allocation33_spill] sm:$0xff] %v7291_v50 }
  0x56   :  { %1474 = vmatmul.bf16.gmra.mxu1 %v7163_v37  ;;  %v5861_v26 = vor.u32 %v6719_v24, %v5858_v25  ;;  %v6703_v27 = vld [vmem:[#allocation3 + $0x584] sm:$0xf]  ;;  %v7321_v24 = vpack.c.bf16 %v106_v12, %v102_v10  ;;  %v7323_v25 = vpack.c.bf16 %v75_v17, %v71_v16  ;;  %v6636_v12 = vld [vmem:[#allocation3 + $0x364] sm:$0xf0]  ;;  %v110_v16 = vld [vmem:[%s9728_s0 + $0x150] sm:$0xff] }
  0x57   :  { %1445 = vmatmul.bf16.gmra.mxu2 %v7161_v36  ;;  %1701 = vmatpush.bf16.msra.mxu1 %v5829_v23  ;;  %v5794_v28 = vld [vmem:[#allocation3 + $0x5a0] sm:$0xf0] }
  0x58   :  { %v5797_v29 = vor.u32 %v6703_v27, %v5794_v28  ;;  %v6695_v30 = vld [vmem:[#allocation3 + $0x544] sm:$0xf]  ;;  %9863 = vst [vmem:[#allocation34_spill] sm:$0xff] %v7321_v24  ;;  %v5576_v28 = vld [vmem:[#allocation3 + $0x3c8] sm:$0xf] }
  0x59   :  { %1757 = vmatpush.bf16.msra.mxu2 %v5861_v26  ;;  %v5762_v31 = vld [vmem:[#allocation3 + $0x560] sm:$0xf0]  ;;  %9864 = vst [vmem:[#allocation35_spill] sm:$0xff] %v7323_v25 }
  0x5a   :  { %5892 = vmatmul.msk.bf16.gmra.mxu3 %vm1382_vm0, %v7174_v45  ;;  %v5765_v33 = vor.u32 %v6695_v30, %v5762_v31  ;;  %v6687_v41 = vld [vmem:[#allocation3 + $0x504] sm:$0xf] }
  0x5b   :  { %1702 = vmatpush.bf16.msra.mxu1 %v5797_v29  ;;  %v5730_v42 = vld [vmem:[#allocation3 + $0x520] sm:$0xf0]  ;;  %v6652_v29 = vld [vmem:[#allocation3 + $0x3e4] sm:$0xf0] }
  0x5c   :  { %v5733_v44 = vor.u32 %v6687_v41, %v5730_v42  ;;  %v6679_v51 = vld [vmem:[#allocation3 + $0x4c4] sm:$0xf]  ;;  %v5321_v41 = vor.u32 %v6588_v38, %v5320_v34  ;;  %v6644_v42 = vld [vmem:[#allocation3 + $0x3a4] sm:$0xf0] }
  0x5d   :  { %v5698_v52 = vld [vmem:[#allocation3 + $0x4e0] sm:$0xf0] }
  0x5e   :  { %v5701_v54 = vor.u32 %v6679_v51, %v5698_v52  ;;  %v6671_v59 = vld [vmem:[#allocation3 + $0x484] sm:$0xf]  ;;  %v5545_v52 = vor.u32 %v6644_v42, %v5544_v39  ;;  %1799 = vmatpush.bf16.msra.mxu3 %v5321_v41 }
  0x5f   :  { %1703 = vmatpush.bf16.msra.mxu1 %v5765_v33  ;;  %v5666_v60 = vld [vmem:[#allocation3 + $0x4a0] sm:$0xf0]  ;;  %v5577_v33 = vor.u32 %v6652_v29, %v5576_v28 }
  0x60   :  { %v5669_v62 = vor.u32 %v6671_v59, %v5666_v60  ;;  %v6663_v63 = vld [vmem:[#allocation3 + $0x444] sm:$0xf]  ;;  %v5288_v60 = vld [vmem:[#allocation3 + $0x188] sm:$0xf] }
  0x61   :  { %v5634_v3 = vld [vmem:[#allocation3 + $0x460] sm:$0xf0]  ;;  %1848 = vmatpush.bf16.msra.mxu0 %v5577_v33  ;;  %v6628_v33 = vld [vmem:[#allocation3 + $0x324] sm:$0xf0] }
  0x62   :  { %v5637_v7 = vor.u32 %v6663_v63, %v5634_v3  ;;  %v6655_v18 = vld [vmem:[#allocation3 + $0x404] sm:$0xf]  ;;  %v5512_v63 = vld [vmem:[#allocation3 + $0x348] sm:$0xf] }
  0x63   :  { %1704 = vmatpush.bf16.msra.mxu1 %v5733_v44  ;;  %v5602_v9 = vld [vmem:[#allocation3 + $0x420] sm:$0xf0]  ;;  %v5513_v17 = vor.u32 %v6636_v12, %v5512_v63 }
  0x64   :  { %v5605_v22 = vor.u32 %v6655_v18, %v5602_v9  ;;  %v114_v18 = vld [vmem:[%s9728_s0 + $0x170] sm:$0xff]  ;;  %v79_v9 = vld [vmem:[%s9728_s0 + $0x58] sm:$0xff] }
  0x65   :  { %1430 = vmatmul.bf16.gmra.mxu0 %v7196_v55  ;;  %v7358_v39 = vpack.c.bf16 %v114_v18, %v110_v16  ;;  %v5192_v16 = vld [vmem:[#allocation3 + $0xc8] sm:$0xf] }
  0x66   :  { %1479 = vmatmul.bf16.gmra.mxu1 %v7200_v57  ;;  %1849 = vmatpush.bf16.msra.mxu0 %v5545_v52  ;;  %v5224_v52 = vld [vmem:[#allocation3 + $0x108] sm:$0xf] }
  0x67   :  { %1450 = vmatmul.bf16.gmra.mxu2 %v7198_v56  ;;  %1705 = vmatpush.bf16.msra.mxu1 %v5701_v54  ;;  %9865 = vst [vmem:[#allocation36_spill] sm:$0xff] %v7358_v39  ;;  %v5416_v18 = vld [vmem:[#allocation3 + $0x288] sm:$0xf] }
  0x6a   :  { %5893 = vmatmul.msk.bf16.gmra.mxu3 %vm1382_vm0, %v7211_v61  ;;  %1850 = vmatpush.bf16.msra.mxu0 %v5513_v17  ;;  %v6556_v17 = vld [vmem:[#allocation3 + $0xe4] sm:$0xf0] }
  0x6b   :  { %1706 = vmatpush.bf16.msra.mxu1 %v5669_v62  ;;  %v6580_v62 = vld [vmem:[#allocation3 + $0x1a4] sm:$0xf0] }
  0x6c   :  { %v5289_v10 = vor.u32 %v6580_v62, %v5288_v60 }
  0x6e   :  { %1800 = vmatpush.bf16.msra.mxu3 %v5289_v10  ;;  %v6620_v10 = vld [vmem:[#allocation3 + $0x2e4] sm:$0xf0] }
  0x6f   :  { %1707 = vmatpush.bf16.msra.mxu1 %v5637_v7 }
  0x73   :  { %1708 = vmatpush.bf16.msra.mxu1 %v5605_v22  ;;  %v83_v22 = vld [vmem:[%s9728_s0 + $0x78] sm:$0xff] }
  0x75   :  { %1660 = vmatmul.bf16.vlgmr.msrb.gmra.mxu0 %v7088_v2 }
  0x76   :  { %1484 = vmatmul.bf16.gmra.mxu1 %v7227_v5 }
  0x77   :  { %1513 = vmatmul.bf16.vlgmr.msrb.gmra.mxu2 %v7229_v6 }
  0x7a   :  { %1611 = vmatmul.bf16.vlgmr.msrb.gmra.mxu3 %v7084_v0 }
  0x85   :  { %1665 = vmatmul.bf16.gmra.mxu0 %v7126_v49 }
  0x86   :  { %1489 = vmatmul.bf16.gmra.mxu1 %v7247_v14 }
  0x87   :  { %1518 = vmatmul.bf16.gmra.mxu2 %v7249_v15 }
  0x8a   :  { %1616 = vmatmul.bf16.gmra.mxu3 %v7122_v47 }
  0x95   :  { %1670 = vmatmul.bf16.gmra.mxu0 %v7163_v37 }
  0x96   :  { %1494 = vmatmul.bf16.gmra.mxu1 %v7267_v19 }
  0x97   :  { %1523 = vmatmul.bf16.gmra.mxu2 %v7269_v20 }
  0x9a   :  { %1621 = vmatmul.bf16.gmra.mxu3 %v7159_v35 }
  0x9d   :  { %v7275_v32 = vpop.f32.mrf.mxu3 }
  0xa5   :  { %v7293_v53 = vpop.f32.mrf.mxu3  ;;  %1675 = vmatmul.bf16.gmra.mxu0 %v7200_v57 }
  0xa6   :  { %1499 = vmatmul.bf16.gmra.mxu1 %v7289_v46 }
  0xa7   :  { %1528 = vmatmul.bf16.gmra.mxu2 %v7291_v50 }
  0xaa   :  { %1626 = vmatmul.bf16.gmra.mxu3 %v7196_v55 }
  0xad   :  { %v7299_v4 = vpop.f32.mrf.mxu3 }
  0xb2   :  { %v1416_v23 = vpop.f32.mrf.mxu0 }
  0xb3   :  { %v1417_v26 = vadd.f32 %v1416_v23, %v7319_v21  ;;  %v1465_v27 = vpop.f32.mrf.mxu1  ;;  %v5256_v23 = vld [vmem:[#allocation3 + $0x148] sm:$0xf] }
  0xb5   :  { %v7326_v30 = vadd.f32 %v1465_v27, %v1417_v26  ;;  %v7328_v31 = vpop.f32.mrf.mxu3  ;;  %1680 = vmatmul.bf16.gmra.mxu0 %v7227_v5  ;;  %v6572_v26 = vld [vmem:[#allocation3 + $0x164] sm:$0xf0] }
  0xb6   :  { %5886 = vmatmul.msk.bf16.vlgmr.msrb.gmra.mxu1 %vm1382_vm0, %v7323_v25  ;;  %v5480_v27 = vld [vmem:[#allocation3 + $0x308] sm:$0xf]  ;;  %v5257_v29 = vor.u32 %v6572_v26, %v5256_v23 }
  0xb7   :  { %1533 = vmatmul.bf16.gmra.mxu2 %v7321_v24  ;;  %v5481_v41 = vor.u32 %v6628_v33, %v5480_v27  ;;  %v6612_v23 = vld [vmem:[#allocation3 + $0x2a4] sm:$0xf0] }
  0xb8   :  { %1801 = vmatpush.bf16.msra.mxu3 %v5257_v29 }
  0xb9   :  { %1851 = vmatpush.bf16.msra.mxu0 %v5481_v41  ;;  %v6548_v41 = vld [vmem:[#allocation3 + $0xa4] sm:$0xf0] }
  0xba   :  { %v1436_v40 = vpop.f32.mrf.mxu2  ;;  %1631 = vmatmul.bf16.gmra.mxu3 %v7086_v1  ;;  %v1418_v51 = vpop.f32.mrf.mxu0 }
  0xbb   :  { %v7335_v44 = vadd.f32 %v1436_v40, %v7319_v21  ;;  %v1419_v54 = vadd.f32 %v1418_v51, %v7319_v21  ;;  %v1467_v59 = vpop.f32.mrf.mxu1  ;;  %v7360_v40 = vpack.c.bf16 %v83_v22, %v79_v9  ;;  %v5193_v22 = vor.u32 %v6556_v17, %v5192_v16  ;;  %v5128_v16 = vld [vmem:[#allocation3 + $0x48] sm:$0xf] }
  0xbc   :  { %v6540_v17 = vld [vmem:[#allocation3 + $0x64] sm:$0xf0] }
  0xbd   :  { %v7339_v3 = vadd.f32 %v1467_v59, %v1419_v54  ;;  %v7341_v7 = vpop.f32.mrf.mxu3  ;;  %9866 = vst [vmem:[#allocation37_spill] sm:$0xff] %v7360_v40  ;;  %v6564_v54 = vld [vmem:[#allocation3 + $0x124] sm:$0xf0] }
  0xbe   :  { %v5448_v59 = vld [vmem:[#allocation3 + $0x2c8] sm:$0xf]  ;;  %v5225_v63 = vor.u32 %v6564_v54, %v5224_v52 }
  0xbf   :  { %v5449_v12 = vor.u32 %v6620_v10, %v5448_v59  ;;  %v6604_v59 = vld [vmem:[#allocation3 + $0x264] sm:$0xf0]  ;;  %v118_v10 = vld [vmem:[%s9728_s0 + $0x190] sm:$0xff] }
  0xc0   :  { %1802 = vmatpush.bf16.msra.mxu3 %v5225_v63 }
  0xc1   :  { %1852 = vmatpush.bf16.msra.mxu0 %v5449_v12  ;;  %v122_v12 = vld [vmem:[%s9728_s0 + $0x1b0] sm:$0xff] }
  0xc2   :  { %v1438_v28 = vpop.f32.mrf.mxu2  ;;  %v1421_v38 = vpop.f32.mrf.mxu0 }
  0xc3   :  { %v7356_v34 = vadd.f32 %v1438_v28, %v7319_v21  ;;  %v1422_v42 = vadd.f32 %v1421_v38, %v7319_v21  ;;  %v1470_v51 = vpop.f32.mrf.mxu1  ;;  %v5417_v28 = vor.u32 %v6612_v23, %v5416_v18  ;;  %v5160_v38 = vld [vmem:[#allocation3 + $0x88] sm:$0xf] }
  0xc4   :  { %1803 = vmatpush.bf16.msra.mxu3 %v5193_v22  ;;  %v5161_v54 = vor.u32 %v6548_v41, %v5160_v38  ;;  %v5352_v18 = vld [vmem:[#allocation3 + $0x208] sm:$0xf]  ;;  %v5129_v22 = vor.u32 %v6540_v17, %v5128_v16 }
  0xc5   :  { %v7363_v60 = vadd.f32 %v1470_v51, %v1422_v42  ;;  %v7365_v62 = vpop.f32.mrf.mxu3  ;;  %1685 = vmatmul.bf16.gmra.mxu0 %v7247_v14  ;;  %v5384_v42 = vld [vmem:[#allocation3 + $0x248] sm:$0xf] }
  0xc6   :  { %5887 = vmatmul.msk.bf16.gmra.mxu1 %vm1382_vm0, %v7360_v40  ;;  %1853 = vmatpush.bf16.msra.mxu0 %v5417_v28  ;;  %v5385_v63 = vor.u32 %v6604_v59, %v5384_v42  ;;  %v6596_v23 = vld [vmem:[#allocation3 + $0x224] sm:$0xf0] }
  0xc7   :  { %1538 = vmatmul.bf16.gmra.mxu2 %v7358_v39  ;;  %v5096_v42 = vld [vmem:[#allocation3 + $0x8] sm:$0xf] }
  0xc8   :  { %1804 = vmatpush.bf16.msra.mxu3 %v5161_v54  ;;  %v6532_v54 = vld [vmem:[#allocation3 + $0x24] sm:$0xf0] }
  0xc9   :  { %v5097_v16 = vor.u32 %v6532_v54, %v5096_v42 }
  0xca   :  { %v1441_v9 = vpop.f32.mrf.mxu2  ;;  %1636 = vmatmul.bf16.gmra.mxu3 %v7124_v48  ;;  %v1423_v27 = vpop.f32.mrf.mxu0  ;;  %1854 = vmatpush.bf16.msra.mxu0 %v5385_v63 }
  0xcb   :  { %v7372_v26 = vadd.f32 %v1441_v9, %v7319_v21  ;;  %v1424_v29 = vadd.f32 %v1423_v27, %v7319_v21  ;;  %v1472_v33 = vpop.f32.mrf.mxu1 }
  0xcc   :  { %1805 = vmatpush.bf16.msra.mxu3 %v5129_v22 }
  0xcd   :  { %v7376_v51 = vadd.f32 %v1472_v33, %v1424_v29  ;;  %v7378_v52 = vpop.f32.mrf.mxu3  ;;  %v7389_v29 = vpack.c.bf16 %v122_v12, %v118_v10  ;;  %v5353_v33 = vor.u32 %v6596_v23, %v5352_v18 }
  0xcf   :  { %9867 = vst [vmem:[#allocation38_spill] sm:$0xff] %v7389_v29  ;;  %1855 = vmatpush.bf16.msra.mxu0 %v5353_v33  ;;  %v130_v33 = vld [vmem:[%s9728_s0 + $0x1f0] sm:$0xff] }
  0xd0   :  { %1806 = vmatpush.bf16.msra.mxu3 %v5097_v16 }
  0xd2   :  { %v1443_v9 = vpop.f32.mrf.mxu2  ;;  %v1426_v28 = vpop.f32.mrf.mxu0 }
  0xd3   :  { %v7387_v27 = vadd.f32 %v1443_v9, %v7319_v21  ;;  %v1427_v38 = vadd.f32 %v1426_v28, %v7319_v21  ;;  %v1475_v41 = vpop.f32.mrf.mxu1  ;;  %v126_v28 = vld [vmem:[%s9728_s0 + $0x1d0] sm:$0xff] }
  0xd4   :  { %v7417_v54 = vpack.c.bf16 %v130_v33, %v126_v28 }
  0xd5   :  { %v7392_v59 = vadd.f32 %v1475_v41, %v1427_v38  ;;  %v7394_v63 = vpop.f32.mrf.mxu3  ;;  %1690 = vmatmul.bf16.gmra.mxu0 %v7267_v19 }
  0xd6   :  { %1709 = vmatmul.bf16.vlgmr.msra.gmra.mxu1 %v7229_v6  ;;  %9869 = vst [vmem:[#allocation40_spill] sm:$0xff] %v7417_v54 }
  0xd7   :  { %1543 = vmatmul.bf16.gmra.mxu2 %v7389_v29 }
  0xda   :  { %v1446_v10 = vpop.f32.mrf.mxu2  ;;  %1641 = vmatmul.bf16.gmra.mxu3 %v7161_v36  ;;  %v1428_v17 = vpop.f32.mrf.mxu0 }
  0xdb   :  { %v7400_v12 = vadd.f32 %v1446_v10, %v7319_v21  ;;  %v1429_v18 = vadd.f32 %v1428_v17, %v7319_v21  ;;  %v1477_v9 = vpop.f32.mrf.mxu1 }
  0xdd   :  { %v7404_v22 = vadd.f32 %v1477_v9, %v1429_v18  ;;  %v7406_v23 = vpop.f32.mrf.mxu3 }
  0xde   :  { %9868 = vst [vmem:[#allocation39_spill] sm:$0xff] %v7406_v23 }
  0xe2   :  { %v1448_v38 = vpop.f32.mrf.mxu2  ;;  %v1431_v42 = vpop.f32.mrf.mxu0 }
  0xe3   :  { %v7415_v41 = vadd.f32 %v1448_v38, %v7319_v21  ;;  %v1432_v16 = vadd.f32 %v1431_v42, %v7319_v21  ;;  %v1480_v10 = vpop.f32.mrf.mxu1 }
  0xe5   :  { %v7420_v17 = vadd.f32 %v1480_v10, %v1432_v16  ;;  %v7422_v18 = vpop.f32.mrf.mxu3  ;;  %1695 = vmatmul.bf16.gmra.mxu0 %v7289_v46 }
  0xe6   :  { %9870 = vst [vmem:[#allocation41_spill] sm:$0xff] %v7422_v18  ;;  %1714 = vmatmul.bf16.gmra.mxu1 %v7249_v15 }
  0xe7   :  { %1548 = vmatmul.bf16.gmra.mxu2 %v7417_v54 }
  0xea   :  { %v1451_v9 = vpop.f32.mrf.mxu2  ;;  %1646 = vmatmul.bf16.gmra.mxu3 %v7198_v56  ;;  %v1433_v28 = vpop.f32.mrf.mxu0  ;;  %v6708_v56 = vld [vmem:[#allocation3 + $0x5a4] sm:$0xf0] }
  0xeb   :  { %v7428_v38 = vadd.f32 %v1451_v9, %v7319_v21  ;;  %v1434_v33 = vadd.f32 %v1433_v28, %v7319_v21  ;;  %v1482_v42 = vpop.f32.mrf.mxu1 }
  0xed   :  { %v7432_v16 = vadd.f32 %v1482_v42, %v1434_v33  ;;  %v7434_v10 = vpop.f32.mrf.mxu3 }
  0xee   :  { %9871 = vst [vmem:[#allocation42_spill] sm:$0xff] %v7434_v10  ;;  %v5800_v10 = vld [vmem:[#allocation3 + $0x588] sm:$0xf] }
  0xf2   :  { %v1453_v61 = vpop.f32.mrf.mxu2  ;;  %v7439_v18 = vpop.f32.mrf.mxu0 }
  0xf3   :  { %v7437_v46 = vadd.f32 %v1453_v61, %v7319_v21  ;;  %v1485_v15 = vpop.f32.mrf.mxu1 }
  0xf4   :  { %v7442_v9 = vadd.f32 %v1485_v15, %v7335_v44 }
  0xf5   :  { %v7444_v23 = vpop.f32.mrf.mxu3  ;;  %1856 = vmatmul.bf16.vlgmr.msra.gmra.mxu0 %v7088_v2 }
  0xf6   :  { %9872 = vst [vmem:[#allocation43_spill] sm:$0xff] %v7444_v23  ;;  %1719 = vmatmul.bf16.gmra.mxu1 %v7269_v20 }
  0xf7   :  { %5894 = vmatmul.msk.bf16.vlgmr.msra.gmra.mxu2 %vm1382_vm0, %v7323_v25 }
  0xfa   :  { %v1514_v28 = vpop.f32.mrf.mxu2  ;;  %1807 = vmatmul.bf16.vlgmr.msra.gmra.mxu3 %v7084_v0  ;;  %v7454_v61 = vpop.f32.mrf.mxu0 }
  0xfb   :  { %v7451_v33 = vadd.f32 %v1514_v28, %v7326_v30  ;;  %v1487_v21 = vpop.f32.mrf.mxu1 }
  0xfc   :  { %v7457_v15 = vadd.f32 %v1487_v21, %v7356_v34 }
  0xfd   :  { %v7459_v44 = vpop.f32.mrf.mxu3 }
 0x102   :  { %v1516_v42 = vpop.f32.mrf.mxu2  ;;  %v7464_v2 = vpop.f32.mrf.mxu0 }
 0x103   :  { %v7462_v20 = vadd.f32 %v1516_v42, %v7339_v3  ;;  %v1490_v25 = vpop.f32.mrf.mxu1 }
 0x104   :  { %v7467_v30 = vadd.f32 %v1490_v25, %v7372_v26 }
 0x105   :  { %v7469_v28 = vpop.f32.mrf.mxu3  ;;  %1861 = vmatmul.bf16.gmra.mxu0 %v7126_v49 }
 0x106   :  { %1724 = vmatmul.bf16.gmra.mxu1 %v7291_v50 }
 0x107   :  { %5895 = vmatmul.msk.bf16.gmra.mxu2 %vm1382_vm0, %v7360_v40 }
 0x10a   :  { %v1519_v34 = vpop.f32.mrf.mxu2  ;;  %1812 = vmatmul.bf16.gmra.mxu3 %v7122_v47  ;;  %v7479_v3 = vpop.f32.mrf.mxu0  ;;  %v6716_v47 = vld [vmem:[#allocation3 + $0x5e4] sm:$0xf0] }
 0x10b   :  { %v7476_v21 = vadd.f32 %v1519_v34, %v7363_v60  ;;  %v1492_v42 = vpop.f32.mrf.mxu1  ;;  %v5832_v34 = vld [vmem:[#allocation3 + $0x5c8] sm:$0xf] }
 0x10c   :  { %v7482_v25 = vadd.f32 %v1492_v42, %v7387_v27  ;;  %v5833_v27 = vor.u32 %v6716_v47, %v5832_v34 }
 0x10d   :  { %v7484_v26 = vpop.f32.mrf.mxu3 }
 0x10e   :  { %1897 = vmatpush.bf16.msrb.mxu1 %v5833_v27 }
 0x112   :  { %v1521_v49 = vpop.f32.mrf.mxu2  ;;  %v7489_v0 = vpop.f32.mrf.mxu0 }
 0x113   :  { %v7487_v50 = vadd.f32 %v1521_v49, %v7376_v51  ;;  %v1495_v40 = vpop.f32.mrf.mxu1  ;;  %v5864_v49 = vld [vmem:[#allocation3 + $0x608] sm:$0xf] }
 0x114   :  { %v7492_v60 = vadd.f32 %v1495_v40, %v7400_v12  ;;  %v6724_v51 = vld [vmem:[#allocation3 + $0x624] sm:$0xf0]  ;;  %v5801_v12 = vor.u32 %v6708_v56, %v5800_v10 }
 0x115   :  { %v7494_v23 = vpop.f32.mrf.mxu3  ;;  %1866 = vmatmul.bf16.gmra.mxu0 %v7163_v37  ;;  %v5865_v42 = vor.u32 %v6724_v51, %v5864_v49  ;;  %v5736_v51 = vld [vmem:[#allocation3 + $0x508] sm:$0xf] }
 0x116   :  { %1729 = vmatmul.bf16.gmra.mxu1 %v7321_v24  ;;  %v6700_v24 = vld [vmem:[#allocation3 + $0x564] sm:$0xf0] }
 0x117   :  { %5896 = vmatmul.msk.bf16.gmra.mxu2 %vm1382_vm0, %v7051_v13  ;;  %1898 = vmatpush.bf16.msrb.mxu1 %v5801_v12  ;;  %v5768_v13 = vld [vmem:[#allocation3 + $0x548] sm:$0xf] }
 0x118   :  { %1953 = vmatpush.bf16.msrb.mxu2 %v5865_v42  ;;  %v5769_v49 = vor.u32 %v6700_v24, %v5768_v13  ;;  %v6692_v42 = vld [vmem:[#allocation3 + $0x524] sm:$0xf0] }
 0x119   :  { %v5737_v10 = vor.u32 %v6692_v42, %v5736_v51  ;;  %v6684_v13 = vld [vmem:[#allocation3 + $0x4e4] sm:$0xf0] }
 0x11a   :  { %v1524_v40 = vpop.f32.mrf.mxu2  ;;  %1817 = vmatmul.bf16.gmra.mxu3 %v7159_v35  ;;  %v7502_v37 = vpop.f32.mrf.mxu0 }
 0x11b   :  { %v1525_v36 = vadd.f32 %v1524_v40, %v7392_v59  ;;  %v1497_v47 = vpop.f32.mrf.mxu1  ;;  %1899 = vmatpush.bf16.msrb.mxu1 %v5769_v49 }
 0x11c   :  { %v7505_v34 = vadd.f32 %v1497_v47, %v7415_v41 }
 0x11d   :  { %v7507_v27 = vpop.f32.mrf.mxu3  ;;  %v1574_v59 = vadd.f32 %v7275_v32, %v1525_v36  ;;  %v5672_v32 = vld [vmem:[#allocation3 + $0x488] sm:$0xf] }
 0x11e   :  { %9873 = vst [vmem:[#allocation44_spill] sm:$0xff] %v7505_v34  ;;  %v5704_v34 = vld [vmem:[#allocation3 + $0x4c8] sm:$0xf] }
 0x11f   :  { %1900 = vmatpush.bf16.msrb.mxu1 %v5737_v10  ;;  %v5705_v49 = vor.u32 %v6684_v13, %v5704_v34  ;;  %v3007_v51 = vmax.f32 %v1574_v59, 0.0 }
 0x122   :  { %v1526_v56 = vpop.f32.mrf.mxu2  ;;  %v7511_v35 = vpop.f32.mrf.mxu0 }
 0x123   :  { %v1527_v40 = vadd.f32 %v1526_v56, %v7404_v22  ;;  %v1500_v12 = vpop.f32.mrf.mxu1  ;;  %1901 = vmatpush.bf16.msrb.mxu1 %v5705_v49  ;;  %v7535_v49 = vperm.slane %v7304_v8, 1 }
 0x124   :  { %v7515_v47 = vadd.f32 %v1500_v12, %v7428_v38  ;;  %v6668_v12 = vld [vmem:[#allocation3 + $0x464] sm:$0xf0] }
 0x125   :  { %v1576_v41 = vadd.f32 %v7293_v53, %v1527_v40  ;;  %v7517_v24 = vpop.f32.mrf.mxu3  ;;  %1871 = vmatmul.bf16.gmra.mxu0 %v7200_v57  ;;  %v6676_v53 = vld [vmem:[#allocation3 + $0x4a4] sm:$0xf0] }
 0x126   :  { %1734 = vmatmul.bf16.gmra.mxu1 %v7358_v39  ;;  %v5673_v42 = vor.u32 %v6676_v53, %v5672_v32  ;;  %v5640_v40 = vld [vmem:[#allocation3 + $0x448] sm:$0xf]  ;;  %v1613_v53 = vadd.f32 %v7459_v44, %v7535_v49 }
 0x127   :  { %v3015_v36 = vmax.f32 %v1576_v41, 0.0  ;;  %5897 = vmatmul.msk.bf16.gmra.mxu2 %vm1382_vm0, %v7062_v43  ;;  %v5641_v13 = vor.u32 %v6668_v12, %v5640_v40  ;;  %v6648_v12 = vld [vmem:[#allocation3 + $0x3cc] sm:$0xf] }
 0x128   :  { %1902 = vmatpush.bf16.msrb.mxu1 %v5673_v42 }
 0x129   :  { %v7523_v22 = vpack.c.bf16 %v3015_v36, %v3007_v51  ;;  %v5608_v51 = vld [vmem:[#allocation3 + $0x408] sm:$0xf] }
 0x12a   :  { %v1529_v38 = vpop.f32.mrf.mxu2  ;;  %1822 = vmatmul.bf16.gmra.mxu3 %v7196_v55  ;;  %v7527_v10 = vpop.f32.mrf.mxu0 }
 0x12b   :  { %9874 = vst [vmem:[#allocation45_spill] sm:$0xff] %v7523_v22  ;;  %v1530_v56 = vadd.f32 %v1529_v38, %v7420_v17  ;;  %v1502_v34 = vpop.f32.mrf.mxu1  ;;  %v6660_v17 = vld [vmem:[#allocation3 + $0x424] sm:$0xf0] }
 0x12c   :  { %v7530_v59 = vadd.f32 %v1502_v34, %v7437_v46  ;;  %1903 = vmatpush.bf16.msrb.mxu1 %v5641_v13  ;;  %v5609_v32 = vor.u32 %v6660_v17, %v5608_v51  ;;  %v5578_v13 = vld [vmem:[#allocation3 + $0x3e8] sm:$0xf0] }
 0x12d   :  { %v7532_v41 = vpop.f32.mrf.mxu3  ;;  %v1579_v38 = vadd.f32 %v7299_v4, %v1530_v56  ;;  %v5581_v51 = vor.u32 %v6648_v12, %v5578_v13  ;;  %v7552_v4 = vadd.f32 %v7439_v18, %v1613_v53  ;;  %v6576_v13 = vld [vmem:[#allocation3 + $0x18c] sm:$0xf] }
 0x12f   :  { %v3023_v44 = vmax.f32 %v1579_v38, 0.0  ;;  %2044 = vmatpush.bf16.msrb.mxu0 %v5581_v51  ;;  %v1615_v38 = vadd.f32 %v7469_v28, %v7535_v49  ;;  %v5290_v51 = vld [vmem:[#allocation3 + $0x1a8] sm:$0xf0] }
 0x130   :  { %1904 = vmatpush.bf16.msrb.mxu1 %v5609_v32 }
 0x132   :  { %v1531_v36 = vpop.f32.mrf.mxu2  ;;  %v7541_v42 = vpop.f32.mrf.mxu0 }
 0x133   :  { %v1532_v46 = vadd.f32 %v1531_v36, %v7432_v16  ;;  %v1563_v34 = vpop.f32.mrf.mxu1  ;;  %v5322_v16 = vld [vmem:[#allocation3 + $0x1e8] sm:$0xf0] }
 0x134   :  { %v1564_v8 = vadd.f32 %v1563_v34, %v7451_v33  ;;  %v6640_v33 = vld [vmem:[#allocation3 + $0x38c] sm:$0xf] }
 0x135   :  { %v1581_v40 = vadd.f32 %v7328_v31, %v1532_v46  ;;  %v7545_v22 = vpop.f32.mrf.mxu3  ;;  %1876 = vmatmul.bf16.gmra.mxu0 %v7227_v5  ;;  %v6584_v31 = vld [vmem:[#allocation3 + $0x1cc] sm:$0xf] }
 0x136   :  { %1739 = vmatmul.bf16.gmra.mxu1 %v7389_v29  ;;  %v5325_v32 = vor.u32 %v6584_v31, %v5322_v16  ;;  %v5546_v46 = vld [vmem:[#allocation3 + $0x3a8] sm:$0xf0]  ;;  %v5293_v31 = vor.u32 %v6576_v13, %v5290_v51  ;;  %v2975_v28 = vmax.f32 %v1564_v8, 0.0  ;;  %v1618_v13 = vadd.f32 %v7484_v26, %v7535_v49 }
 0x137   :  { %v3031_v17 = vmax.f32 %v1581_v40, 0.0  ;;  %5898 = vmatmul.msk.bf16.gmra.mxu2 %vm1382_vm0, %v7100_v11  ;;  %v5549_v18 = vor.u32 %v6640_v33, %v5546_v46  ;;  %v5514_v16 = vld [vmem:[#allocation3 + $0x368] sm:$0xf0] }
 0x138   :  { %1995 = vmatpush.bf16.msrb.mxu3 %v5325_v32  ;;  %v6568_v32 = vld [vmem:[#allocation3 + $0x14c] sm:$0xf] }
 0x139   :  { %v7554_v56 = vpack.c.bf16 %v3031_v17, %v3023_v44  ;;  %2045 = vmatpush.bf16.msrb.mxu0 %v5549_v18  ;;  %v6632_v44 = vld [vmem:[#allocation3 + $0x34c] sm:$0xf] }
 0x13a   :  { %v1534_v36 = vpop.f32.mrf.mxu2  ;;  %1827 = vmatmul.bf16.gmra.mxu3 %v7086_v1  ;;  %v7560_v40 = vpop.f32.mrf.mxu0  ;;  %v5258_v46 = vld [vmem:[#allocation3 + $0x168] sm:$0xf0] }
 0x13b   :  { %9875 = vst [vmem:[#allocation46_spill] sm:$0xff] %v7554_v56  ;;  %v1535_v34 = vadd.f32 %v1534_v36, %v7442_v9  ;;  %v1565_v53 = vpop.f32.mrf.mxu1  ;;  %v7566_v9 = vadd.f32 %v7454_v61, %v1615_v38  ;;  %v5517_v36 = vor.u32 %v6632_v44, %v5514_v16  ;;  %v5482_v1 = vld [vmem:[#allocation3 + $0x328] sm:$0xf0] }
 0x13c   :  { %v1566_v12 = vadd.f32 %v1565_v53, %v7462_v20  ;;  %1996 = vmatpush.bf16.msrb.mxu3 %v5293_v31  ;;  %v6624_v20 = vld [vmem:[#allocation3 + $0x30c] sm:$0xf]  ;;  %v5261_v53 = vor.u32 %v6568_v32, %v5258_v46 }
 0x13d   :  { %v7563_v17 = vpop.f32.mrf.mxu3  ;;  %2046 = vmatpush.bf16.msrb.mxu0 %v5517_v36  ;;  %v1584_v8 = vadd.f32 %v7341_v7, %v1535_v34  ;;  %v6560_v31 = vld [vmem:[#allocation3 + $0x10c] sm:$0xf] }
 0x13e   :  { %v2983_v56 = vmax.f32 %v1566_v12, 0.0  ;;  %v5226_v16 = vld [vmem:[#allocation3 + $0x128] sm:$0xf0] }
 0x13f   :  { %v5229_v26 = vor.u32 %v6560_v31, %v5226_v16  ;;  %v5450_v7 = vld [vmem:[#allocation3 + $0x2e8] sm:$0xf0]  ;;  %v3039_v34 = vmax.f32 %v1584_v8, 0.0 }
 0x140   :  { %v7568_v33 = vpack.c.bf16 %v2983_v56, %v2975_v28  ;;  %1997 = vmatpush.bf16.msrb.mxu3 %v5261_v53  ;;  %v5485_v56 = vor.u32 %v6624_v20, %v5482_v1  ;;  %v6616_v28 = vld [vmem:[#allocation3 + $0x2cc] sm:$0xf]  ;;  %v7585_v1 = vadd.f32 %v7464_v2, %v1618_v13 }
 0x141   :  { %v5194_v32 = vld [vmem:[#allocation3 + $0xe8] sm:$0xf0] }
 0x142   :  { %9876 = vst [vmem:[#allocation47_spill] sm:$0xff] %v7568_v33  ;;  %v1536_v18 = vpop.f32.mrf.mxu2  ;;  %v7574_v61 = vpop.f32.mrf.mxu0  ;;  %2047 = vmatpush.bf16.msrb.mxu0 %v5485_v56  ;;  %v6608_v46 = vld [vmem:[#allocation3 + $0x28c] sm:$0xf] }
 0x143   :  { %v1537_v12 = vadd.f32 %v1536_v18, %v7457_v15  ;;  %v1568_v38 = vpop.f32.mrf.mxu1  ;;  %v5418_v8 = vld [vmem:[#allocation3 + $0x2a8] sm:$0xf0] }
 0x144   :  { %v1569_v44 = vadd.f32 %v1568_v38, %v7476_v21  ;;  %1998 = vmatpush.bf16.msrb.mxu3 %v5229_v26  ;;  %v6552_v21 = vld [vmem:[#allocation3 + $0xcc] sm:$0xf]  ;;  %v5421_v56 = vor.u32 %v6608_v46, %v5418_v8 }
 0x145   :  { %v1586_v51 = vadd.f32 %v7365_v62, %v1537_v12  ;;  %v7578_v36 = vpop.f32.mrf.mxu3  ;;  %1881 = vmatmul.bf16.gmra.mxu0 %v7247_v14  ;;  %v5453_v62 = vor.u32 %v6616_v28, %v5450_v7  ;;  %v5197_v53 = vor.u32 %v6552_v21, %v5194_v32  ;;  %v1620_v12 = vadd.f32 %v7494_v23, %v7535_v49  ;;  %v6544_v31 = vld [vmem:[#allocation3 + $0x8c] sm:$0xf] }
 0x146   :  { %1744 = vmatmul.bf16.gmra.mxu1 %v7417_v54  ;;  %v5162_v16 = vld [vmem:[#allocation3 + $0xa8] sm:$0xf0]  ;;  %v2991_v23 = vmax.f32 %v1569_v44, 0.0 }
 0x147   :  { %v3047_v15 = vmax.f32 %v1586_v51, 0.0  ;;  %5899 = vmatmul.msk.bf16.gmra.mxu2 %vm1382_vm0, %v7137_v58  ;;  %2048 = vmatpush.bf16.msrb.mxu0 %v5453_v62  ;;  %v6600_v28 = vld [vmem:[#allocation3 + $0x24c] sm:$0xf]  ;;  %v5165_v7 = vor.u32 %v6544_v31, %v5162_v16 }
 0x148   :  { %1999 = vmatpush.bf16.msrb.mxu3 %v5197_v53  ;;  %v6536_v62 = vld [vmem:[#allocation3 + $0x4c] sm:$0xf] }
 0x149   :  { %v7587_v20 = vpack.c.bf16 %v3047_v15, %v3039_v34  ;;  %v5386_v34 = vld [vmem:[#allocation3 + $0x268] sm:$0xf0] }
 0x14a   :  { %v1539_v18 = vpop.f32.mrf.mxu2  ;;  %1832 = vmatmul.bf16.gmra.mxu3 %v7124_v48  ;;  %v7593_v2 = vpop.f32.mrf.mxu0  ;;  %v5389_v21 = vor.u32 %v6600_v28, %v5386_v34  ;;  %v5130_v32 = vld [vmem:[#allocation3 + $0x68] sm:$0xf0] }
 0x14b   :  { %9877 = vst [vmem:[#allocation48_spill] sm:$0xff] %v7587_v20  ;;  %v1540_v38 = vadd.f32 %v1539_v18, %v7467_v30  ;;  %v1570_v13 = vpop.f32.mrf.mxu1  ;;  %v7599_v30 = vadd.f32 %v7479_v3, %v1620_v12  ;;  %2049 = vmatpush.bf16.msrb.mxu0 %v5421_v56  ;;  %v6592_v46 = vld [vmem:[#allocation3 + $0x20c] sm:$0xf]  ;;  %v5133_v53 = vor.u32 %v6536_v62, %v5130_v32 }
 0x14c   :  { %v1571_v51 = vadd.f32 %v1570_v13, %v7487_v50  ;;  %2000 = vmatpush.bf16.msrb.mxu3 %v5165_v7  ;;  %v5354_v8 = vld [vmem:[#allocation3 + $0x228] sm:$0xf0]  ;;  %v1623_v13 = vadd.f32 %v7507_v27, %v7535_v49 }
 0x14d   :  { %v7596_v26 = vpop.f32.mrf.mxu3  ;;  %v1589_v44 = vadd.f32 %v7378_v52, %v1540_v38  ;;  %v5357_v56 = vor.u32 %v6592_v46, %v5354_v8  ;;  %v6528_v28 = vld [vmem:[#allocation3 + $0xc] sm:$0xf]  ;;  %v9881_v8 = vld [vmem:[#allocation39_spill] sm:$0xff] }
 0x14e   :  { %v2999_v15 = vmax.f32 %v1571_v51, 0.0  ;;  %v5098_v7 = vld [vmem:[#allocation3 + $0x28] sm:$0xf0]  ;;  %v1672_v38 = vadd.f32 %v7489_v0, %v1623_v13 }
 0x14f   :  { %2050 = vmatpush.bf16.msrb.mxu0 %v5389_v21  ;;  %v5101_v52 = vor.u32 %v6528_v28, %v5098_v7  ;;  %v3055_v27 = vmax.f32 %v1589_v44, 0.0  ;;  %v9880_v21 = vld [vmem:[#allocation23_spill] sm:$0xff]  ;;  %v9882_v44 = vld [vmem:[#allocation44_spill] sm:$0xff] }
 0x150   :  { %v7601_v18 = vpack.c.bf16 %v2999_v15, %v2991_v23  ;;  %2001 = vmatpush.bf16.msrb.mxu3 %v5133_v53 }
 0x152   :  { %9878 = vst [vmem:[#allocation49_spill] sm:$0xff] %v7601_v18  ;;  %v1541_v50 = vpop.f32.mrf.mxu2  ;;  %v7607_v3 = vpop.f32.mrf.mxu0 }
 0x153   :  { %v1542_v51 = vadd.f32 %v1541_v50, %v7482_v25  ;;  %v1710_v12 = vpop.f32.mrf.mxu1  ;;  %2051 = vmatpush.bf16.msrb.mxu0 %v5357_v56  ;;  %v9883_v56 = vld [vmem:[#allocation41_spill] sm:$0xff] }
 0x154   :  { %v7611_v16 = vadd.f32 %v1710_v12, %v7552_v4  ;;  %2002 = vmatpush.bf16.msrb.mxu3 %v5101_v52 }
 0x155   :  { %v1591_v31 = vadd.f32 %v7394_v63, %v1542_v51  ;;  %v7613_v34 = vpop.f32.mrf.mxu3  ;;  %1886 = vmatmul.bf16.gmra.mxu0 %v7267_v19  ;;  %v1625_v63 = vadd.f32 %v7517_v24, %v7535_v49  ;;  %v1628_v24 = vadd.f32 %v7532_v41, %v7535_v49  ;;  %v9886_v41 = vld [vmem:[#allocation30_spill] sm:$0xff] }
 0x156   :  { %1905 = vmatmul.bf16.vlgmr.msrb.gmra.mxu1 %v7229_v6 }
 0x157   :  { %v3063_v25 = vmax.f32 %v1591_v31, 0.0  ;;  %5900 = vmatmul.msk.bf16.gmra.mxu2 %vm1382_vm0, %v7174_v45  ;;  %v1674_v50 = vadd.f32 %v7502_v37, %v1625_v63  ;;  %v9884_v37 = vld [vmem:[#allocation32_spill] sm:$0xff]  ;;  %v1630_v63 = vadd.f32 %v7545_v22, %v7535_v49 }
 0x159   :  { %v7622_v4 = vpack.c.bf16 %v3063_v25, %v3055_v27  ;;  %v9885_v27 = vld [vmem:[#allocation27_spill] sm:$0xff]  ;;  %v1677_v25 = vadd.f32 %v7511_v35, %v1628_v24  ;;  %v1633_v35 = vadd.f32 %v7563_v17, %v7535_v49  ;;  %v9889_v24 = vld [vmem:[#allocation42_spill] sm:$0xff] }
 0x15a   :  { %v1544_v23 = vpop.f32.mrf.mxu2  ;;  %1837 = vmatmul.bf16.gmra.mxu3 %v9880_v21  ;;  %v7626_v62 = vpop.f32.mrf.mxu0 }
 0x15b   :  { %9879 = vst [vmem:[#allocation50_spill] sm:$0xff] %v7622_v4  ;;  %v1545_v15 = vadd.f32 %v1544_v23, %v7492_v60  ;;  %v1712_v32 = vpop.f32.mrf.mxu1 }
 0x15c   :  { %v1713_v46 = vadd.f32 %v1712_v32, %v7566_v9  ;;  %v9888_v32 = vld [vmem:[#allocation26_spill] sm:$0xff] }
 0x15d   :  { %v7630_v0 = vpop.f32.mrf.mxu3  ;;  %v1594_v13 = vadd.f32 %v9881_v8, %v1545_v15 }
 0x15f   :  { %v3071_v7 = vmax.f32 %v1594_v13, 0.0 }
 0x162   :  { %v1546_v53 = vpop.f32.mrf.mxu2  ;;  %v7636_v60 = vpop.f32.mrf.mxu0 }
 0x163   :  { %v1547_v51 = vadd.f32 %v1546_v53, %v9882_v44  ;;  %v1715_v12 = vpop.f32.mrf.mxu1  ;;  %v1679_v44 = vadd.f32 %v7527_v10, %v1630_v63  ;;  %v9891_v63 = vld [vmem:[#allocation16_spill] sm:$0xff] }
 0x164   :  { %v1716_v28 = vadd.f32 %v1715_v12, %v7585_v1 }
 0x165   :  { %v1596_v31 = vadd.f32 %v9883_v56, %v1547_v51  ;;  %v7640_v9 = vpop.f32.mrf.mxu3  ;;  %1891 = vmatmul.bf16.gmra.mxu0 %v9884_v37 }
 0x166   :  { %1910 = vmatmul.bf16.gmra.mxu1 %v9886_v41 }
 0x167   :  { %v3079_v52 = vmax.f32 %v1596_v31, 0.0  ;;  %5901 = vmatmul.msk.bf16.gmra.mxu2 %vm1382_vm0, %v9885_v27 }
 0x169   :  { %v7649_v23 = vpack.c.bf16 %v3079_v52, %v3071_v7  ;;  %v9890_v7 = vld [vmem:[#allocation43_spill] sm:$0xff] }
 0x16a   :  { %v1549_v15 = vpop.f32.mrf.mxu2  ;;  %1842 = vmatmul.bf16.gmra.mxu3 %v9888_v32  ;;  %v7653_v53 = vpop.f32.mrf.mxu0 }
 0x16b   :  { %9887 = vst [vmem:[#allocation23_spill] sm:$0xff] %v7649_v23  ;;  %v1550_v1 = vadd.f32 %v1549_v15, %v7515_v47  ;;  %v1717_v8 = vpop.f32.mrf.mxu1  ;;  %v9892_v23 = vld [vmem:[#allocation31_spill] sm:$0xff] }
 0x16c   :  { %v1718_v13 = vadd.f32 %v1717_v8, %v7599_v30  ;;  %v1682_v30 = vadd.f32 %v7541_v42, %v1633_v35  ;;  %v9895_v42 = vld [vmem:[#allocation14_spill] sm:$0xff] }
 0x16d   :  { %v7657_v51 = vpop.f32.mrf.mxu3  ;;  %v1599_v12 = vadd.f32 %v9889_v24, %v1550_v1  ;;  %v9893_v1 = vld [vmem:[#allocation35_spill] sm:$0xff] }
 0x16f   :  { %v3087_v8 = vmax.f32 %v1599_v12, 0.0 }
 0x172   :  { %v1551_v22 = vpop.f32.mrf.mxu2  ;;  %v7663_v47 = vpop.f32.mrf.mxu0 }
 0x173   :  { %v1552_v56 = vadd.f32 %v1551_v22, %v7530_v59  ;;  %v1720_v31 = vpop.f32.mrf.mxu1  ;;  %v1635_v59 = vadd.f32 %v7578_v36, %v7535_v49 }
 0x174   :  { %v7666_v15 = vadd.f32 %v1720_v31, %v1672_v38 }
 0x175   :  { %v1601_v52 = vadd.f32 %v9890_v7, %v1552_v56  ;;  %v7669_v10 = vpop.f32.mrf.mxu3  ;;  %2052 = vmatmul.bf16.vlgmr.msrb.gmra.mxu0 %v9891_v63  ;;  %v1684_v31 = vadd.f32 %v7560_v40, %v1635_v59  ;;  %v9896_v40 = vld [vmem:[#allocation20_spill] sm:$0xff] }
 0x176   :  { %1915 = vmatmul.bf16.gmra.mxu1 %v9892_v23 }
 0x177   :  { %v3095_v17 = vmax.f32 %v1601_v52, 0.0  ;;  %5902 = vmatmul.msk.bf16.vlgmr.msrb.gmra.mxu2 %vm1382_vm0, %v9893_v1  ;;  %v1638_v52 = vadd.f32 %v7596_v26, %v7535_v49  ;;  %v9899_v26 = vld [vmem:[#allocation37_spill] sm:$0xff] }
 0x179   :  { %v7677_v22 = vpack.c.bf16 %v3095_v17, %v3087_v8  ;;  %v7695_v20 = vadd.f32 %v7574_v61, %v1638_v52 }
 0x17a   :  { %v1759_v38 = vpop.f32.mrf.mxu2  ;;  %2003 = vmatmul.bf16.vlgmr.msrb.gmra.mxu3 %v9895_v42  ;;  %v7681_v35 = vpop.f32.mrf.mxu0 }
 0x17b   :  { %9894 = vst [vmem:[#allocation39_spill] sm:$0xff] %v7677_v22  ;;  %v1760_v24 = vadd.f32 %v1759_v38, %v7611_v16  ;;  %v1722_v56 = vpop.f32.mrf.mxu1 }
 0x17c   :  { %v7683_v12 = vadd.f32 %v1722_v56, %v1674_v50  ;;  %v9898_v56 = vld [vmem:[#allocation33_spill] sm:$0xff] }
 0x17d   :  { %v7686_v7 = vpop.f32.mrf.mxu3  ;;  %v2976_v16 = vmax.f32 %v1760_v24, 0.0 }
 0x182   :  { %v1761_v36 = vpop.f32.mrf.mxu2  ;;  %v7690_v17 = vpop.f32.mrf.mxu0 }
 0x183   :  { %v1762_v8 = vadd.f32 %v1761_v36, %v1713_v46  ;;  %v1725_v22 = vpop.f32.mrf.mxu1  ;;  %v1640_v46 = vadd.f32 %v7613_v34, %v7535_v49 }
 0x184   :  { %v7692_v4 = vadd.f32 %v1725_v22, %v1677_v25  ;;  %v9900_v22 = vld [vmem:[#allocation18_spill] sm:$0xff] }
 0x185   :  { %v2984_v38 = vmax.f32 %v1762_v8, 0.0  ;;  %v7697_v50 = vpop.f32.mrf.mxu3  ;;  %2057 = vmatmul.bf16.gmra.mxu0 %v9896_v40  ;;  %v7713_v8 = vadd.f32 %v7593_v2, %v1640_v46  ;;  %v5834_v2 = vld [vmem:[#allocation3 + $0x5e8] sm:$0xf0] }
 0x186   :  { %1920 = vmatmul.bf16.gmra.mxu1 %v9898_v56 }
 0x187   :  { %v7700_v59 = vpack.c.bf16 %v2984_v38, %v2976_v16  ;;  %5903 = vmatmul.msk.bf16.gmra.mxu2 %vm1382_vm0, %v9899_v26  ;;  %v1643_v38 = vadd.f32 %v7630_v0, %v7535_v49  ;;  %v9901_v26 = vld [vmem:[#allocation24_spill] sm:$0xff]  ;;  %v9902_v0 = vld [vmem:[#allocation34_spill] sm:$0xff] }
 0x189   :  { %9897 = vst [vmem:[#allocation44_spill] sm:$0xff] %v7700_v59 }
 0x18a   :  { %v1764_v24 = vpop.f32.mrf.mxu2  ;;  %2008 = vmatmul.bf16.gmra.mxu3 %v9900_v22  ;;  %v7708_v61 = vpop.f32.mrf.mxu0 }
 0x18b   :  { %v1765_v25 = vadd.f32 %v1764_v24, %v1716_v28  ;;  %v1727_v52 = vpop.f32.mrf.mxu1 }
 0x18c   :  { %v7710_v36 = vadd.f32 %v1727_v52, %v1679_v44  ;;  %v7724_v44 = vadd.f32 %v7607_v3, %v1643_v38  ;;  %v6712_v52 = vld [vmem:[#allocation3 + $0x5cc] sm:$0xf]  ;;  %v1645_v3 = vadd.f32 %v7640_v9, %v7535_v49 }
 0x18d   :  { %v7715_v16 = vpop.f32.mrf.mxu3  ;;  %v2992_v24 = vmax.f32 %v1765_v25, 0.0  ;;  %v5837_v56 = vor.u32 %v6712_v52, %v5834_v2  ;;  %v5866_v25 = vld [vmem:[#allocation3 + $0x628] sm:$0xf0]  ;;  %v9905_v2 = vld [vmem:[#allocation22_spill] sm:$0xff] }
 0x18e   :  { %v6704_v38 = vld [vmem:[#allocation3 + $0x58c] sm:$0xf] }
 0x18f   :  { %2093 = vmatpush.bf16.msra.mxu1 %v5837_v56  ;;  %v7743_v56 = vadd.f32 %v7626_v62, %v1645_v3  ;;  %v5770_v9 = vld [vmem:[#allocation3 + $0x568] sm:$0xf0] }
 0x192   :  { %v1766_v18 = vpop.f32.mrf.mxu2  ;;  %v7719_v34 = vpop.f32.mrf.mxu0 }
 0x193   :  { %v1767_v33 = vadd.f32 %v1766_v18, %v1718_v13  ;;  %v1730_v28 = vpop.f32.mrf.mxu1  ;;  %v9903_v18 = vld [vmem:[#allocation12_spill] sm:$0xff]  ;;  %v6720_v13 = vld [vmem:[#allocation3 + $0x60c] sm:$0xf] }
 0x194   :  { %v7721_v22 = vadd.f32 %v1730_v28, %v1682_v30  ;;  %v5869_v30 = vor.u32 %v6720_v13, %v5866_v25  ;;  %v5802_v28 = vld [vmem:[#allocation3 + $0x5a8] sm:$0xf0] }
 0x195   :  { %v3000_v59 = vmax.f32 %v1767_v33, 0.0  ;;  %v7726_v46 = vpop.f32.mrf.mxu3  ;;  %2062 = vmatmul.bf16.gmra.mxu0 %v9901_v26  ;;  %v5805_v26 = vor.u32 %v6704_v38, %v5802_v28 }
 0x196   :  { %1925 = vmatmul.bf16.gmra.mxu1 %v9902_v0  ;;  %2149 = vmatpush.bf16.msra.mxu2 %v5869_v30  ;;  %v5738_v30 = vld [vmem:[#allocation3 + $0x528] sm:$0xf0] }
 0x197   :  { %5904 = vmatmul.msk.bf16.gmra.mxu2 %vm1382_vm0, %v9903_v18  ;;  %v7732_v33 = vpack.c.bf16 %v3000_v59, %v2992_v24  ;;  %2094 = vmatpush.bf16.msra.mxu1 %v5805_v26  ;;  %v6696_v24 = vld [vmem:[#allocation3 + $0x54c] sm:$0xf] }
 0x198   :  { %v5773_v25 = vor.u32 %v6696_v24, %v5770_v9  ;;  %v6680_v9 = vld [vmem:[#allocation3 + $0x4cc] sm:$0xf] }
 0x199   :  { %9904 = vst [vmem:[#allocation41_spill] sm:$0xff] %v7732_v33 }
 0x19a   :  { %v1769_v40 = vpop.f32.mrf.mxu2  ;;  %2013 = vmatmul.bf16.gmra.mxu3 %v9905_v2  ;;  %v7738_v0 = vpop.f32.mrf.mxu0 }
 0x19b   :  { %v1770_v52 = vadd.f32 %v1769_v40, %v7666_v15  ;;  %v1732_v18 = vpop.f32.mrf.mxu1  ;;  %2095 = vmatpush.bf16.msra.mxu1 %v5773_v25  ;;  %v1648_v15 = vadd.f32 %v7657_v51, %v7535_v49  ;;  %v6688_v40 = vld [vmem:[#allocation3 + $0x50c] sm:$0xf] }
 0x19c   :  { %v7740_v59 = vadd.f32 %v1732_v18, %v1684_v31  ;;  %v5741_v28 = vor.u32 %v6688_v40, %v5738_v30  ;;  %v5706_v51 = vld [vmem:[#allocation3 + $0x4e8] sm:$0xf0] }
 0x19d   :  { %v7745_v13 = vpop.f32.mrf.mxu3  ;;  %v3008_v62 = vmax.f32 %v1770_v52, 0.0  ;;  %v7756_v24 = vadd.f32 %v7636_v60, %v1648_v15  ;;  %v5709_v40 = vor.u32 %v6680_v9, %v5706_v51  ;;  %v6672_v60 = vld [vmem:[#allocation3 + $0x48c] sm:$0xf] }
 0x19e   :  { %v5674_v52 = vld [vmem:[#allocation3 + $0x4a8] sm:$0xf0] }
 0x19f   :  { %2096 = vmatpush.bf16.msra.mxu1 %v5741_v28  ;;  %v5677_v30 = vor.u32 %v6672_v60, %v5674_v52  ;;  %v6656_v60 = vld [vmem:[#allocation3 + $0x40c] sm:$0xf] }
 0x1a0   :  { %v5610_v52 = vld [vmem:[#allocation3 + $0x428] sm:$0xf0] }
 0x1a2   :  { %v1771_v38 = vpop.f32.mrf.mxu2  ;;  %v7750_v31 = vpop.f32.mrf.mxu0 }
 0x1a3   :  { %v1772_v26 = vadd.f32 %v1771_v38, %v7683_v12  ;;  %v1735_v18 = vpop.f32.mrf.mxu1  ;;  %2097 = vmatpush.bf16.msra.mxu1 %v5709_v40 }
 0x1a4   :  { %v7753_v33 = vadd.f32 %v1735_v18, %v7695_v20  ;;  %v1650_v20 = vadd.f32 %v7669_v10, %v7535_v49  ;;  %v7775_v18 = vld [vmem:[%s9730_s2] sm:$0xff] }
 0x1a5   :  { %v3016_v3 = vmax.f32 %v1772_v26, 0.0  ;;  %v7758_v25 = vpop.f32.mrf.mxu3  ;;  %2067 = vmatmul.bf16.gmra.mxu0 %v7200_v57  ;;  %9907 = vst [vmem:[#allocation27_spill] sm:$0xff] %v7775_v18 }
 0x1a6   :  { %1930 = vmatmul.bf16.gmra.mxu1 %v7358_v39  ;;  %v7784_v10 = vadd.f32 %v7653_v53, %v1650_v20 }
 0x1a7   :  { %5905 = vmatmul.msk.bf16.gmra.mxu2 %vm1382_vm0, %v7062_v43  ;;  %v7764_v12 = vpack.c.bf16 %v3016_v3, %v3008_v62  ;;  %2098 = vmatpush.bf16.msra.mxu1 %v5677_v30  ;;  %v7778_v62 = vperm.slane %v7775_v18, 2  ;;  %v5642_v3 = vld [vmem:[#allocation3 + $0x468] sm:$0xf0]  ;;  %v5613_v30 = vor.u32 %v6656_v60, %v5610_v52 }
 0x1a9   :  { %9906 = vst [vmem:[#allocation32_spill] sm:$0xff] %v7764_v12  ;;  %v1809_v40 = vadd.f32 %v7686_v7, %v7778_v62  ;;  %v6653_v7 = vld [vmem:[#allocation3 + $0x3ec] sm:$0xf0] }
 0x1aa   :  { %v1774_v15 = vpop.f32.mrf.mxu2  ;;  %2018 = vmatmul.bf16.gmra.mxu3 %v7196_v55  ;;  %v7770_v28 = vpop.f32.mrf.mxu0 }
 0x1ab   :  { %v1775_v38 = vadd.f32 %v1774_v15, %v7692_v4  ;;  %v1737_v26 = vpop.f32.mrf.mxu1  ;;  %v6664_v4 = vld [vmem:[#allocation3 + $0x44c] sm:$0xf] }
 0x1ac   :  { %v7781_v49 = vadd.f32 %v1737_v26, %v7713_v8  ;;  %v5645_v51 = vor.u32 %v6664_v4, %v5642_v3  ;;  %v7797_v4 = vadd.f32 %v7663_v47, %v1809_v40  ;;  %v5584_v3 = vld [vmem:[#allocation3 + $0x3d0] sm:$0xf] }
 0x1ad   :  { %v7786_v9 = vpop.f32.mrf.mxu3  ;;  %v3024_v53 = vmax.f32 %v1775_v38, 0.0  ;;  %v5585_v60 = vor.u32 %v6653_v7, %v5584_v3  ;;  %v5328_v47 = vld [vmem:[#allocation3 + $0x1d0] sm:$0xf] }
 0x1ae   :  { %2099 = vmatpush.bf16.msra.mxu1 %v5645_v51  ;;  %v5552_v38 = vld [vmem:[#allocation3 + $0x390] sm:$0xf] }
 0x1af   :  { %2240 = vmatpush.bf16.msra.mxu0 %v5585_v60  ;;  %v6581_v60 = vld [vmem:[#allocation3 + $0x1ac] sm:$0xf0] }
 0x1b2   :  { %v1776_v15 = vpop.f32.mrf.mxu2  ;;  %v7791_v8 = vpop.f32.mrf.mxu0  ;;  %2100 = vmatpush.bf16.msra.mxu1 %v5613_v30 }
 0x1b3   :  { %v1777_v12 = vadd.f32 %v1776_v15, %v7710_v36  ;;  %v1740_v26 = vpop.f32.mrf.mxu1  ;;  %v6645_v15 = vld [vmem:[#allocation3 + $0x3ac] sm:$0xf0] }
 0x1b4   :  { %v7794_v18 = vadd.f32 %v1740_v26, %v7724_v44  ;;  %v1811_v44 = vadd.f32 %v7697_v50, %v7778_v62  ;;  %v9909_v26 = vld [vmem:[#allocation15_spill] sm:$0xff]  ;;  %v5553_v7 = vor.u32 %v6645_v15, %v5552_v38  ;;  %v1814_v38 = vadd.f32 %v7715_v16, %v7778_v62 }
 0x1b5   :  { %v3032_v20 = vmax.f32 %v1777_v12, 0.0  ;;  %v7799_v51 = vpop.f32.mrf.mxu3  ;;  %2072 = vmatmul.bf16.gmra.mxu0 %v7227_v5  ;;  %v6589_v12 = vld [vmem:[#allocation3 + $0x1ec] sm:$0xf0] }
 0x1b6   :  { %1935 = vmatmul.bf16.gmra.mxu1 %v7389_v29  ;;  %v5329_v52 = vor.u32 %v6589_v12, %v5328_v47  ;;  %v7817_v50 = vadd.f32 %v7681_v35, %v1811_v44  ;;  %2241 = vmatpush.bf16.msra.mxu0 %v5553_v7  ;;  %v6629_v44 = vld [vmem:[#allocation3 + $0x32c] sm:$0xf0]  ;;  %v7830_v16 = vadd.f32 %v7690_v17, %v1814_v38 }
 0x1b7   :  { %5906 = vmatmul.msk.bf16.gmra.mxu2 %vm1382_vm0, %v7100_v11  ;;  %v7805_v36 = vpack.c.bf16 %v3032_v20, %v3024_v53  ;;  %v5296_v20 = vld [vmem:[#allocation3 + $0x190] sm:$0xf] }
 0x1b8   :  { %2191 = vmatpush.bf16.msra.mxu3 %v5329_v52  ;;  %v5297_v12 = vor.u32 %v6581_v60, %v5296_v20  ;;  %v5264_v52 = vld [vmem:[#allocation3 + $0x150] sm:$0xf] }
 0x1b9   :  { %9908 = vst [vmem:[#allocation30_spill] sm:$0xff] %v7805_v36  ;;  %v5200_v17 = vld [vmem:[#allocation3 + $0xd0] sm:$0xf] }
 0x1ba   :  { %v1779_v40 = vpop.f32.mrf.mxu2  ;;  %2023 = vmatmul.bf16.gmra.mxu3 %v9909_v26  ;;  %v7811_v3 = vpop.f32.mrf.mxu0  ;;  %v6557_v38 = vld [vmem:[#allocation3 + $0xec] sm:$0xf0] }
 0x1bb   :  { %v1780_v30 = vadd.f32 %v1779_v40, %v7721_v22  ;;  %v1742_v11 = vpop.f32.mrf.mxu1  ;;  %v5520_v22 = vld [vmem:[#allocation3 + $0x350] sm:$0xf] }
 0x1bc   :  { %v7814_v53 = vadd.f32 %v1742_v11, %v7743_v56  ;;  %v6637_v40 = vld [vmem:[#allocation3 + $0x36c] sm:$0xf0]  ;;  %2192 = vmatpush.bf16.msra.mxu3 %v5297_v12 }
 0x1bd   :  { %v7819_v47 = vpop.f32.mrf.mxu3  ;;  %v5521_v36 = vor.u32 %v6637_v40, %v5520_v22  ;;  %v6573_v11 = vld [vmem:[#allocation3 + $0x16c] sm:$0xf0]  ;;  %v3040_v60 = vmax.f32 %v1780_v30, 0.0 }
 0x1be   :  { %v5488_v56 = vld [vmem:[#allocation3 + $0x310] sm:$0xf]  ;;  %v5265_v35 = vor.u32 %v6573_v11, %v5264_v52 }
 0x1bf   :  { %2242 = vmatpush.bf16.msra.mxu0 %v5521_v36  ;;  %v5489_v29 = vor.u32 %v6629_v44, %v5488_v56  ;;  %v5232_v36 = vld [vmem:[#allocation3 + $0x110] sm:$0xf]  ;;  %v5201_v44 = vor.u32 %v6557_v38, %v5200_v17 }
 0x1c0   :  { %2193 = vmatpush.bf16.msra.mxu3 %v5265_v35  ;;  %v6565_v40 = vld [vmem:[#allocation3 + $0x12c] sm:$0xf0] }
 0x1c1   :  { %v5456_v11 = vld [vmem:[#allocation3 + $0x2d0] sm:$0xf] }
 0x1c2   :  { %v1781_v15 = vpop.f32.mrf.mxu2  ;;  %v7824_v26 = vpop.f32.mrf.mxu0  ;;  %v6621_v56 = vld [vmem:[#allocation3 + $0x2ec] sm:$0xf0] }
 0x1c3   :  { %v1782_v7 = vadd.f32 %v1781_v15, %v7740_v59  ;;  %v1745_v20 = vpop.f32.mrf.mxu1  ;;  %2243 = vmatpush.bf16.msra.mxu0 %v5489_v29  ;;  %v5233_v59 = vor.u32 %v6565_v40, %v5232_v36  ;;  %v1816_v29 = vadd.f32 %v7726_v46, %v7778_v62  ;;  %v5424_v15 = vld [vmem:[#allocation3 + $0x290] sm:$0xf] }
 0x1c4   :  { %v7827_v12 = vadd.f32 %v1745_v20, %v7756_v24  ;;  %v5457_v24 = vor.u32 %v6621_v56, %v5456_v11  ;;  %v6549_v11 = vld [vmem:[#allocation3 + $0xac] sm:$0xf0] }
 0x1c5   :  { %v3048_v22 = vmax.f32 %v1782_v7, 0.0  ;;  %v7832_v52 = vpop.f32.mrf.mxu3  ;;  %2077 = vmatmul.bf16.gmra.mxu0 %v7247_v14  ;;  %2194 = vmatpush.bf16.msra.mxu3 %v5233_v59  ;;  %v6613_v7 = vld [vmem:[#allocation3 + $0x2ac] sm:$0xf0]  ;;  %v7850_v46 = vadd.f32 %v7708_v61, %v1816_v29 }
 0x1c6   :  { %1940 = vmatmul.bf16.gmra.mxu1 %v7417_v54  ;;  %v5425_v40 = vor.u32 %v6613_v7, %v5424_v15  ;;  %v5168_v59 = vld [vmem:[#allocation3 + $0x90] sm:$0xf]  ;;  %v1819_v15 = vadd.f32 %v7745_v13, %v7778_v62 }
 0x1c7   :  { %5907 = vmatmul.msk.bf16.gmra.mxu2 %vm1382_vm0, %v7137_v58  ;;  %v7838_v30 = vpack.c.bf16 %v3048_v22, %v3040_v60  ;;  %2244 = vmatpush.bf16.msra.mxu0 %v5457_v24  ;;  %v5169_v24 = vor.u32 %v6549_v11, %v5168_v59  ;;  %v6605_v17 = vld [vmem:[#allocation3 + $0x26c] sm:$0xf0] }
 0x1c8   :  { %v6597_v29 = vld [vmem:[#allocation3 + $0x22c] sm:$0xf0]  ;;  %v1868_v13 = vadd.f32 %v7719_v34, %v1819_v15 }
 0x1c9   :  { %9910 = vst [vmem:[#allocation26_spill] sm:$0xff] %v7838_v30  ;;  %2195 = vmatpush.bf16.msra.mxu3 %v5201_v44  ;;  %v5360_v44 = vld [vmem:[#allocation3 + $0x210] sm:$0xf] }
 0x1ca   :  { %v1784_v35 = vpop.f32.mrf.mxu2  ;;  %2028 = vmatmul.bf16.gmra.mxu3 %v7124_v48  ;;  %v7844_v36 = vpop.f32.mrf.mxu0  ;;  %v5361_v30 = vor.u32 %v6597_v29, %v5360_v44  ;;  %v1824_v29 = vadd.f32 %v7786_v9, %v7778_v62 }
 0x1cb   :  { %v1785_v20 = vadd.f32 %v1784_v35, %v7753_v33  ;;  %v1747_v60 = vpop.f32.mrf.mxu1  ;;  %2245 = vmatpush.bf16.msra.mxu0 %v5425_v40  ;;  %v5392_v33 = vld [vmem:[#allocation3 + $0x250] sm:$0xf] }
 0x1cc   :  { %v7847_v22 = vadd.f32 %v1747_v60, %v7784_v10  ;;  %v5393_v38 = vor.u32 %v6605_v17, %v5392_v33  ;;  %v5136_v35 = vld [vmem:[#allocation3 + $0x50] sm:$0xf] }
 0x1cd   :  { %v7852_v56 = vpop.f32.mrf.mxu3  ;;  %2196 = vmatpush.bf16.msra.mxu3 %v5169_v24  ;;  %v6541_v10 = vld [vmem:[#allocation3 + $0x6c] sm:$0xf0]  ;;  %v3056_v11 = vmax.f32 %v1785_v20, 0.0 }
 0x1ce   :  { %v5137_v61 = vor.u32 %v6541_v10, %v5136_v35  ;;  %v5104_v17 = vld [vmem:[#allocation3 + $0x10] sm:$0xf] }
 0x1cf   :  { %2246 = vmatpush.bf16.msra.mxu0 %v5393_v38  ;;  %v6533_v38 = vld [vmem:[#allocation3 + $0x2c] sm:$0xf0] }
 0x1d0   :  { %v5105_v35 = vor.u32 %v6533_v38, %v5104_v17 }
 0x1d1   :  { %2197 = vmatpush.bf16.msra.mxu3 %v5137_v61 }
 0x1d2   :  { %v1786_v7 = vpop.f32.mrf.mxu2  ;;  %v7857_v60 = vpop.f32.mrf.mxu0 }
 0x1d3   :  { %v1787_v40 = vadd.f32 %v1786_v7, %v7781_v49  ;;  %v1906_v59 = vpop.f32.mrf.mxu1  ;;  %2247 = vmatpush.bf16.msra.mxu0 %v5361_v30 }
 0x1d4   :  { %v1907_v24 = vadd.f32 %v1906_v59, %v7797_v4  ;;  %v1821_v4 = vadd.f32 %v7758_v25, %v7778_v62 }
 0x1d5   :  { %v3064_v33 = vmax.f32 %v1787_v40, 0.0  ;;  %v7861_v48 = vpop.f32.mrf.mxu3  ;;  %2082 = vmatmul.bf16.gmra.mxu0 %v7267_v19  ;;  %2198 = vmatpush.bf16.msra.mxu3 %v5105_v35 }
 0x1d6   :  { %2101 = vmatmul.bf16.vlgmr.msra.gmra.mxu1 %v7229_v6  ;;  %v1870_v44 = vadd.f32 %v7738_v0, %v1821_v4  ;;  %v1873_v0 = vadd.f32 %v7750_v31, %v1824_v29  ;;  %v1829_v31 = vadd.f32 %v7819_v47, %v7778_v62  ;;  %v1831_v47 = vadd.f32 %v7832_v52, %v7778_v62 }
 0x1d7   :  { %5908 = vmatmul.msk.bf16.gmra.mxu2 %vm1382_vm0, %v7174_v45  ;;  %v7867_v49 = vpack.c.bf16 %v3064_v33, %v3056_v11 }
 0x1d9   :  { %9911 = vst [vmem:[#allocation42_spill] sm:$0xff] %v7867_v49  ;;  %v9919_v49 = vld [vmem:[#allocation24_spill] sm:$0xff] }
 0x1da   :  { %v1789_v34 = vpop.f32.mrf.mxu2  ;;  %2033 = vmatmul.bf16.gmra.mxu3 %v9880_v21  ;;  %v7873_v20 = vpop.f32.mrf.mxu0 }
 0x1db   :  { %v1790_v30 = vadd.f32 %v1789_v34, %v7794_v18  ;;  %v1908_v15 = vpop.f32.mrf.mxu1 }
 0x1dc   :  { %v1909_v10 = vadd.f32 %v1908_v15, %v7817_v50 }
 0x1dd   :  { %v7877_v7 = vpop.f32.mrf.mxu3  ;;  %v3072_v59 = vmax.f32 %v1790_v30, 0.0 }
 0x1e2   :  { %v1791_v61 = vpop.f32.mrf.mxu2  ;;  %v7882_v40 = vpop.f32.mrf.mxu0 }
 0x1e3   :  { %v1792_v25 = vadd.f32 %v1791_v61, %v7814_v53  ;;  %v1911_v18 = vpop.f32.mrf.mxu1  ;;  %v1826_v53 = vadd.f32 %v7799_v51, %v7778_v62 }
 0x1e4   :  { %v1912_v33 = vadd.f32 %v1911_v18, %v7830_v16 }
 0x1e5   :  { %v3080_v11 = vmax.f32 %v1792_v25, 0.0  ;;  %v7885_v17 = vpop.f32.mrf.mxu3  ;;  %2087 = vmatmul.bf16.gmra.mxu0 %v9884_v37  ;;  %v1875_v34 = vadd.f32 %v7770_v28, %v1826_v53 }
 0x1e6   :  { %2106 = vmatmul.bf16.gmra.mxu1 %v9886_v41 }
 0x1e7   :  { %5909 = vmatmul.msk.bf16.gmra.mxu2 %vm1382_vm0, %v9885_v27  ;;  %v7892_v9 = vpack.c.bf16 %v3080_v11, %v3072_v59  ;;  %v1878_v59 = vadd.f32 %v7791_v8, %v1829_v31 }
 0x1e9   :  { %9912 = vst [vmem:[#allocation43_spill] sm:$0xff] %v7892_v9 }
 0x1ea   :  { %v1794_v50 = vpop.f32.mrf.mxu2  ;;  %2038 = vmatmul.bf16.gmra.mxu3 %v9888_v32  ;;  %v7898_v16 = vpop.f32.mrf.mxu0 }
 0x1eb   :  { %v1795_v38 = vadd.f32 %v1794_v50, %v7827_v12  ;;  %v1913_v35 = vpop.f32.mrf.mxu1  ;;  %v1880_v50 = vadd.f32 %v7811_v3, %v1831_v47  ;;  %v9914_v3 = vld [vmem:[#allocation20_spill] sm:$0xff] }
 0x1ec   :  { %v1914_v4 = vadd.f32 %v1913_v35, %v7850_v46  ;;  %v1834_v35 = vadd.f32 %v7852_v56, %v7778_v62  ;;  %v9917_v56 = vld [vmem:[#allocation37_spill] sm:$0xff] }
 0x1ed   :  { %v7902_v30 = vpop.f32.mrf.mxu3  ;;  %v3088_v29 = vmax.f32 %v1795_v38, 0.0 }
 0x1f2   :  { %v1796_v15 = vpop.f32.mrf.mxu2  ;;  %v7907_v61 = vpop.f32.mrf.mxu0 }
 0x1f3   :  { %v1797_v51 = vadd.f32 %v1796_v15, %v7847_v22  ;;  %v1916_v12 = vpop.f32.mrf.mxu1 }
 0x1f4   :  { %v7909_v18 = vadd.f32 %v1916_v12, %v1868_v13 }
 0x1f5   :  { %v3096_v25 = vmax.f32 %v1797_v51, 0.0  ;;  %v7912_v46 = vpop.f32.mrf.mxu3  ;;  %2248 = vmatmul.bf16.vlgmr.msra.gmra.mxu0 %v9891_v63 }
 0x1f6   :  { %2111 = vmatmul.bf16.gmra.mxu1 %v9892_v23 }
 0x1f7   :  { %5910 = vmatmul.msk.bf16.vlgmr.msra.gmra.mxu2 %vm1382_vm0, %v9893_v1  ;;  %v7918_v28 = vpack.c.bf16 %v3096_v25, %v3088_v29  ;;  %v7937_v25 = vadd.f32 %v7824_v26, %v1834_v35 }
 0x1f9   :  { %9913 = vst [vmem:[#allocation16_spill] sm:$0xff] %v7918_v28 }
 0x1fa   :  { %v1955_v22 = vpop.f32.mrf.mxu2  ;;  %2199 = vmatmul.bf16.vlgmr.msra.gmra.mxu3 %v9895_v42  ;;  %v7923_v13 = vpop.f32.mrf.mxu0 }
 0x1fb   :  { %v1956_v11 = vadd.f32 %v1955_v22, %v1907_v24  ;;  %v1918_v8 = vpop.f32.mrf.mxu1  ;;  %v9916_v22 = vld [vmem:[#allocation33_spill] sm:$0xff] }
 0x1fc   :  { %v7925_v53 = vadd.f32 %v1918_v8, %v1870_v44  ;;  %v9918_v8 = vld [vmem:[#allocation18_spill] sm:$0xff] }
 0x1fd   :  { %v7928_v38 = vpop.f32.mrf.mxu3  ;;  %v2977_v24 = vmax.f32 %v1956_v11, 0.0 }
 0x202   :  { %v1957_v31 = vpop.f32.mrf.mxu2  ;;  %v7932_v51 = vpop.f32.mrf.mxu0 }
 0x203   :  { %v1958_v15 = vadd.f32 %v1957_v31, %v1909_v10  ;;  %v1921_v52 = vpop.f32.mrf.mxu1  ;;  %v1836_v10 = vadd.f32 %v7861_v48, %v7778_v62 }
 0x204   :  { %v7934_v29 = vadd.f32 %v1921_v52, %v1873_v0 }
 0x205   :  { %v2985_v12 = vmax.f32 %v1958_v15, 0.0  ;;  %v7939_v44 = vpop.f32.mrf.mxu3  ;;  %2253 = vmatmul.bf16.gmra.mxu0 %v9914_v3  ;;  %v7955_v15 = vadd.f32 %v7844_v36, %v1836_v10  ;;  %v6717_v36 = vld [vmem:[#allocation3 + $0x5ec] sm:$0xf0] }
 0x206   :  { %2116 = vmatmul.bf16.gmra.mxu1 %v9916_v22 }
 0x207   :  { %v7942_v47 = vpack.c.bf16 %v2985_v12, %v2977_v24  ;;  %5911 = vmatmul.msk.bf16.gmra.mxu2 %vm1382_vm0, %v9917_v56  ;;  %v1839_v24 = vadd.f32 %v7877_v7, %v7778_v62  ;;  %v9920_v7 = vld [vmem:[#allocation34_spill] sm:$0xff] }
 0x209   :  { %9915 = vst [vmem:[#allocation31_spill] sm:$0xff] %v7942_v47 }
 0x20a   :  { %v1960_v11 = vpop.f32.mrf.mxu2  ;;  %2204 = vmatmul.bf16.gmra.mxu3 %v9918_v8  ;;  %v7950_v26 = vpop.f32.mrf.mxu0 }
 0x20b   :  { %v1961_v0 = vadd.f32 %v1960_v11, %v1912_v33  ;;  %v1923_v35 = vpop.f32.mrf.mxu1 }
 0x20c   :  { %v7952_v31 = vadd.f32 %v1923_v35, %v1875_v34  ;;  %v7966_v34 = vadd.f32 %v7857_v60, %v1839_v24  ;;  %v5840_v35 = vld [vmem:[#allocation3 + $0x5d0] sm:$0xf]  ;;  %v1841_v60 = vadd.f32 %v7885_v17, %v7778_v62 }
 0x20d   :  { %v7957_v52 = vpop.f32.mrf.mxu3  ;;  %v2993_v11 = vmax.f32 %v1961_v0, 0.0  ;;  %v5841_v8 = vor.u32 %v6717_v36, %v5840_v35  ;;  %v6725_v0 = vld [vmem:[#allocation3 + $0x62c] sm:$0xf0] }
 0x20e   :  { %v5808_v24 = vld [vmem:[#allocation3 + $0x590] sm:$0xf] }
 0x20f   :  { %2289 = vmatpush.bf16.msrb.mxu1 %v5841_v8  ;;  %v7985_v8 = vadd.f32 %v7873_v20, %v1841_v60  ;;  %v6701_v17 = vld [vmem:[#allocation3 + $0x56c] sm:$0xf0] }
 0x212   :  { %v1962_v12 = vpop.f32.mrf.mxu2  ;;  %v7961_v48 = vpop.f32.mrf.mxu0 }
 0x213   :  { %v1963_v28 = vadd.f32 %v1962_v12, %v1914_v4  ;;  %v1926_v33 = vpop.f32.mrf.mxu1  ;;  %v9921_v4 = vld [vmem:[#allocation12_spill] sm:$0xff]  ;;  %v5872_v12 = vld [vmem:[#allocation3 + $0x610] sm:$0xf] }
 0x214   :  { %v7963_v9 = vadd.f32 %v1926_v33, %v1878_v59  ;;  %v5873_v59 = vor.u32 %v6725_v0, %v5872_v12  ;;  %v6709_v33 = vld [vmem:[#allocation3 + $0x5ac] sm:$0xf0] }
 0x215   :  { %v3001_v47 = vmax.f32 %v1963_v28, 0.0  ;;  %v7968_v10 = vpop.f32.mrf.mxu3  ;;  %2258 = vmatmul.bf16.gmra.mxu0 %v9919_v49  ;;  %v5809_v49 = vor.u32 %v6709_v33, %v5808_v24 }
 0x216   :  { %2121 = vmatmul.bf16.gmra.mxu1 %v9920_v7  ;;  %2345 = vmatpush.bf16.msrb.mxu2 %v5873_v59  ;;  %v6693_v59 = vld [vmem:[#allocation3 + $0x52c] sm:$0xf0] }
 0x217   :  { %5912 = vmatmul.msk.bf16.gmra.mxu2 %vm1382_vm0, %v9921_v4  ;;  %v7974_v28 = vpack.c.bf16 %v3001_v47, %v2993_v11  ;;  %2290 = vmatpush.bf16.msrb.mxu1 %v5809_v49  ;;  %v5776_v11 = vld [vmem:[#allocation3 + $0x550] sm:$0xf] }
 0x218   :  { %v5777_v0 = vor.u32 %v6701_v17, %v5776_v11  ;;  %v5712_v17 = vld [vmem:[#allocation3 + $0x4d0] sm:$0xf] }
 0x219   :  { %9922 = vst [vmem:[#allocation35_spill] sm:$0xff] %v7974_v28 }
 0x21a   :  { %v1965_v56 = vpop.f32.mrf.mxu2  ;;  %2209 = vmatmul.bf16.gmra.mxu3 %v9905_v2  ;;  %v7980_v36 = vpop.f32.mrf.mxu0 }
 0x21b   :  { %v1966_v35 = vadd.f32 %v1965_v56, %v7909_v18  ;;  %v1928_v4 = vpop.f32.mrf.mxu1  ;;  %2291 = vmatpush.bf16.msrb.mxu1 %v5777_v0  ;;  %v1844_v18 = vadd.f32 %v7902_v30, %v7778_v62  ;;  %v5744_v56 = vld [vmem:[#allocation3 + $0x510] sm:$0xf] }
 0x21c   :  { %v7982_v47 = vadd.f32 %v1928_v4, %v1880_v50  ;;  %v5745_v33 = vor.u32 %v6693_v59, %v5744_v56  ;;  %v6685_v30 = vld [vmem:[#allocation3 + $0x4ec] sm:$0xf0] }
 0x21d   :  { %v7987_v12 = vpop.f32.mrf.mxu3  ;;  %v3009_v20 = vmax.f32 %v1966_v35, 0.0  ;;  %v7998_v11 = vadd.f32 %v7882_v40, %v1844_v18  ;;  %v5713_v56 = vor.u32 %v6685_v30, %v5712_v17  ;;  %v5680_v40 = vld [vmem:[#allocation3 + $0x490] sm:$0xf] }
 0x21e   :  { %v6677_v35 = vld [vmem:[#allocation3 + $0x4ac] sm:$0xf0] }
 0x21f   :  { %2292 = vmatpush.bf16.msrb.mxu1 %v5745_v33  ;;  %v5681_v59 = vor.u32 %v6677_v35, %v5680_v40  ;;  %v5616_v40 = vld [vmem:[#allocation3 + $0x410] sm:$0xf] }
 0x220   :  { %v6661_v35 = vld [vmem:[#allocation3 + $0x42c] sm:$0xf0] }
 0x222   :  { %v1967_v24 = vpop.f32.mrf.mxu2  ;;  %v7992_v50 = vpop.f32.mrf.mxu0 }
 0x223   :  { %v1968_v49 = vadd.f32 %v1967_v24, %v7925_v53  ;;  %v1931_v4 = vpop.f32.mrf.mxu1  ;;  %2293 = vmatpush.bf16.msrb.mxu1 %v5713_v56 }
 0x224   :  { %v7995_v28 = vadd.f32 %v1931_v4, %v7937_v25  ;;  %v1846_v25 = vadd.f32 %v7912_v46, %v7778_v62  ;;  %v9924_v4 = vld [vmem:[#allocation27_spill] sm:$0xff]  ;;  %v5648_v46 = vld [vmem:[#allocation3 + $0x450] sm:$0xf] }
 0x225   :  { %v3017_v60 = vmax.f32 %v1968_v49, 0.0  ;;  %v8000_v0 = vpop.f32.mrf.mxu3  ;;  %2263 = vmatmul.bf16.gmra.mxu0 %v7200_v57  ;;  %v8015_v17 = vperm.slane %v9924_v4, 3 }
 0x226   :  { %2126 = vmatmul.bf16.gmra.mxu1 %v7358_v39  ;;  %v8021_v62 = vadd.f32 %v7898_v16, %v1846_v25 }
 0x227   :  { %5913 = vmatmul.msk.bf16.gmra.mxu2 %vm1382_vm0, %v7062_v43  ;;  %v8006_v53 = vpack.c.bf16 %v3017_v60, %v3009_v20  ;;  %2294 = vmatpush.bf16.msrb.mxu1 %v5681_v59  ;;  %v6669_v60 = vld [vmem:[#allocation3 + $0x46c] sm:$0xf0]  ;;  %v2005_v56 = vadd.f32 %v7928_v38, %v8015_v17  ;;  %v5617_v59 = vor.u32 %v6661_v35, %v5616_v40  ;;  %v5586_v38 = vld [vmem:[#allocation3 + $0x3f0] sm:$0xf0] }
 0x228   :  { %v9926_v35 = vld [vmem:[#allocation17_spill] sm:$0xff] }
 0x229   :  { %9923 = vst [vmem:[#allocation14_spill] sm:$0xff] %v8006_v53 }
 0x22a   :  { %v1970_v18 = vpop.f32.mrf.mxu2  ;;  %2214 = vmatmul.bf16.gmra.mxu3 %v7196_v55  ;;  %v8012_v33 = vpop.f32.mrf.mxu0 }
 0x22b   :  { %v1971_v24 = vadd.f32 %v1970_v18, %v7934_v29  ;;  %v1933_v49 = vpop.f32.mrf.mxu1  ;;  %v5649_v29 = vor.u32 %v6669_v60, %v5648_v46  ;;  %v8034_v46 = vadd.f32 %v7907_v61, %v2005_v56  ;;  %v6649_v60 = vld [vmem:[#allocation3 + $0x3d4] sm:$0xf] }
 0x22c   :  { %v8018_v20 = vadd.f32 %v1933_v49, %v7955_v15  ;;  %v5589_v40 = vor.u32 %v6649_v60, %v5586_v38  ;;  %v6585_v61 = vld [vmem:[#allocation3 + $0x1d4] sm:$0xf]  ;;  %v9928_v60 = vld [vmem:[#allocation15_spill] sm:$0xff] }
 0x22d   :  { %v8023_v30 = vpop.f32.mrf.mxu3  ;;  %2295 = vmatpush.bf16.msrb.mxu1 %v5649_v29  ;;  %v3025_v16 = vmax.f32 %v1971_v24, 0.0  ;;  %v5330_v56 = vld [vmem:[#allocation3 + $0x1f0] sm:$0xf0] }
 0x22e   :  { %2436 = vmatpush.bf16.msrb.mxu0 %v5589_v40  ;;  %v5298_v40 = vld [vmem:[#allocation3 + $0x1b0] sm:$0xf0] }
 0x231   :  { %2296 = vmatpush.bf16.msrb.mxu1 %v5617_v59 }
 0x232   :  { %v1972_v18 = vpop.f32.mrf.mxu2  ;;  %v8028_v15 = vpop.f32.mrf.mxu0 }
 0x233   :  { %v1973_v4 = vadd.f32 %v1972_v18, %v7952_v31  ;;  %v1936_v49 = vpop.f32.mrf.mxu1  ;;  %v9925_v31 = vld [vmem:[#allocation38_spill] sm:$0xff] }
 0x234   :  { %v8031_v53 = vadd.f32 %v1936_v49, %v7966_v34  ;;  %v2007_v34 = vadd.f32 %v7939_v44, %v8015_v17  ;;  %v6641_v18 = vld [vmem:[#allocation3 + $0x394] sm:$0xf] }
 0x235   :  { %v3033_v25 = vmax.f32 %v1973_v4, 0.0  ;;  %v8036_v29 = vpop.f32.mrf.mxu3  ;;  %2268 = vmatmul.bf16.gmra.mxu0 %v7227_v5  ;;  %v5333_v4 = vor.u32 %v6585_v61, %v5330_v56  ;;  %v5554_v49 = vld [vmem:[#allocation3 + $0x3b0] sm:$0xf0] }
 0x236   :  { %2131 = vmatmul.bf16.gmra.mxu1 %v9925_v31  ;;  %v5557_v31 = vor.u32 %v6641_v18, %v5554_v49  ;;  %v8054_v44 = vadd.f32 %v7923_v13, %v2007_v34  ;;  %v2010_v18 = vadd.f32 %v7957_v52, %v8015_v17  ;;  %v5490_v34 = vld [vmem:[#allocation3 + $0x330] sm:$0xf0] }
 0x237   :  { %5914 = vmatmul.msk.bf16.gmra.mxu2 %vm1382_vm0, %v9926_v35  ;;  %v8042_v24 = vpack.c.bf16 %v3033_v25, %v3025_v16  ;;  %2387 = vmatpush.bf16.msrb.mxu3 %v5333_v4  ;;  %v6577_v25 = vld [vmem:[#allocation3 + $0x194] sm:$0xf] }
 0x238   :  { %2437 = vmatpush.bf16.msrb.mxu0 %v5557_v31  ;;  %v5301_v56 = vor.u32 %v6577_v25, %v5298_v40  ;;  %v6569_v4 = vld [vmem:[#allocation3 + $0x154] sm:$0xf]  ;;  %v8067_v52 = vadd.f32 %v7932_v51, %v2010_v18 }
 0x239   :  { %9927 = vst [vmem:[#allocation22_spill] sm:$0xff] %v8042_v24  ;;  %v6553_v51 = vld [vmem:[#allocation3 + $0xd4] sm:$0xf] }
 0x23a   :  { %v1975_v59 = vpop.f32.mrf.mxu2  ;;  %2219 = vmatmul.bf16.gmra.mxu3 %v9928_v60  ;;  %v8048_v38 = vpop.f32.mrf.mxu0  ;;  %v5202_v18 = vld [vmem:[#allocation3 + $0xf0] sm:$0xf0] }
 0x23b   :  { %v1976_v5 = vadd.f32 %v1975_v59, %v7963_v9  ;;  %v1938_v35 = vpop.f32.mrf.mxu1  ;;  %v6633_v9 = vld [vmem:[#allocation3 + $0x354] sm:$0xf]  ;;  %2388 = vmatpush.bf16.msrb.mxu3 %v5301_v56 }
 0x23c   :  { %v8051_v16 = vadd.f32 %v1938_v35, %v7985_v8  ;;  %v5522_v59 = vld [vmem:[#allocation3 + $0x370] sm:$0xf0] }
 0x23d   :  { %v8056_v61 = vpop.f32.mrf.mxu3  ;;  %v5525_v24 = vor.u32 %v6633_v9, %v5522_v59  ;;  %v5266_v8 = vld [vmem:[#allocation3 + $0x170] sm:$0xf0]  ;;  %v3041_v40 = vmax.f32 %v1976_v5, 0.0 }
 0x23e   :  { %v6625_v35 = vld [vmem:[#allocation3 + $0x314] sm:$0xf]  ;;  %v5269_v13 = vor.u32 %v6569_v4, %v5266_v8 }
 0x23f   :  { %2438 = vmatpush.bf16.msrb.mxu0 %v5525_v24  ;;  %v5493_v55 = vor.u32 %v6625_v35, %v5490_v34  ;;  %v6561_v24 = vld [vmem:[#allocation3 + $0x114] sm:$0xf]  ;;  %v5205_v34 = vor.u32 %v6553_v51, %v5202_v18 }
 0x240   :  { %2389 = vmatpush.bf16.msrb.mxu3 %v5269_v13  ;;  %v5234_v59 = vld [vmem:[#allocation3 + $0x130] sm:$0xf0] }
 0x241   :  { %v6617_v8 = vld [vmem:[#allocation3 + $0x2d4] sm:$0xf] }
 0x242   :  { %v1977_v49 = vpop.f32.mrf.mxu2  ;;  %v8061_v60 = vpop.f32.mrf.mxu0  ;;  %v5458_v35 = vld [vmem:[#allocation3 + $0x2f0] sm:$0xf0] }
 0x243   :  { %v1978_v31 = vadd.f32 %v1977_v49, %v7982_v47  ;;  %v1941_v25 = vpop.f32.mrf.mxu1  ;;  %2439 = vmatpush.bf16.msrb.mxu0 %v5493_v55  ;;  %v5237_v47 = vor.u32 %v6561_v24, %v5234_v59  ;;  %v5461_v5 = vor.u32 %v6617_v8, %v5458_v35  ;;  %v2012_v55 = vadd.f32 %v7968_v10, %v8015_v17  ;;  %v6609_v49 = vld [vmem:[#allocation3 + $0x294] sm:$0xf]  ;;  %v9930_v24 = vld [vmem:[#allocation19_spill] sm:$0xff] }
 0x244   :  { %v8064_v56 = vadd.f32 %v1941_v25, %v7998_v11  ;;  %v5170_v35 = vld [vmem:[#allocation3 + $0xb0] sm:$0xf0] }
 0x245   :  { %v3049_v9 = vmax.f32 %v1978_v31, 0.0  ;;  %v8069_v4 = vpop.f32.mrf.mxu3  ;;  %2273 = vmatmul.bf16.gmra.mxu0 %v7247_v14  ;;  %2390 = vmatpush.bf16.msrb.mxu3 %v5237_v47  ;;  %v5426_v31 = vld [vmem:[#allocation3 + $0x2b0] sm:$0xf0]  ;;  %v8087_v10 = vadd.f32 %v7950_v26, %v2012_v55 }
 0x246   :  { %2136 = vmatmul.bf16.gmra.mxu1 %v7417_v54  ;;  %v5429_v8 = vor.u32 %v6609_v49, %v5426_v31  ;;  %v6545_v47 = vld [vmem:[#allocation3 + $0x94] sm:$0xf]  ;;  %v2015_v49 = vadd.f32 %v7987_v12, %v8015_v17 }
 0x247   :  { %5915 = vmatmul.msk.bf16.gmra.mxu2 %vm1382_vm0, %v7137_v58  ;;  %v8075_v11 = vpack.c.bf16 %v3049_v9, %v3041_v40  ;;  %2440 = vmatpush.bf16.msrb.mxu0 %v5461_v5  ;;  %v5173_v51 = vor.u32 %v6545_v47, %v5170_v35  ;;  %v5394_v18 = vld [vmem:[#allocation3 + $0x270] sm:$0xf0] }
 0x248   :  { %v6593_v31 = vld [vmem:[#allocation3 + $0x214] sm:$0xf]  ;;  %v2064_v12 = vadd.f32 %v7961_v48, %v2015_v49 }
 0x249   :  { %9929 = vst [vmem:[#allocation20_spill] sm:$0xff] %v8075_v11  ;;  %2391 = vmatpush.bf16.msrb.mxu3 %v5205_v34  ;;  %v6537_v34 = vld [vmem:[#allocation3 + $0x54] sm:$0xf] }
 0x24a   :  { %v1980_v13 = vpop.f32.mrf.mxu2  ;;  %2224 = vmatmul.bf16.gmra.mxu3 %v9930_v24  ;;  %v8081_v59 = vpop.f32.mrf.mxu0  ;;  %v5362_v55 = vld [vmem:[#allocation3 + $0x230] sm:$0xf0] }
 0x24b   :  { %v1981_v25 = vadd.f32 %v1980_v13, %v7995_v28  ;;  %v1943_v40 = vpop.f32.mrf.mxu1  ;;  %2441 = vmatpush.bf16.msrb.mxu0 %v5429_v8  ;;  %v6601_v28 = vld [vmem:[#allocation3 + $0x254] sm:$0xf]  ;;  %v5365_v24 = vor.u32 %v6593_v31, %v5362_v55  ;;  %v2020_v55 = vadd.f32 %v8023_v30, %v8015_v17 }
 0x24c   :  { %v8084_v9 = vadd.f32 %v1943_v40, %v8021_v62  ;;  %v5397_v13 = vor.u32 %v6601_v28, %v5394_v18  ;;  %v5138_v62 = vld [vmem:[#allocation3 + $0x70] sm:$0xf0] }
 0x24d   :  { %v8089_v5 = vpop.f32.mrf.mxu3  ;;  %2392 = vmatpush.bf16.msrb.mxu3 %v5173_v51  ;;  %v5141_v26 = vor.u32 %v6537_v34, %v5138_v62  ;;  %v3057_v35 = vmax.f32 %v1981_v25, 0.0  ;;  %v6529_v18 = vld [vmem:[#allocation3 + $0x14] sm:$0xf] }
 0x24f   :  { %2442 = vmatpush.bf16.msrb.mxu0 %v5397_v13  ;;  %v5106_v13 = vld [vmem:[#allocation3 + $0x30] sm:$0xf0] }
 0x250   :  { %v5109_v34 = vor.u32 %v6529_v18, %v5106_v13 }
 0x251   :  { %2393 = vmatpush.bf16.msrb.mxu3 %v5141_v26 }
 0x252   :  { %v1982_v40 = vpop.f32.mrf.mxu2  ;;  %v8094_v11 = vpop.f32.mrf.mxu0 }
 0x253   :  { %v1983_v8 = vadd.f32 %v1982_v40, %v8018_v20  ;;  %v2102_v47 = vpop.f32.mrf.mxu1  ;;  %2443 = vmatpush.bf16.msrb.mxu0 %v5365_v24 }
 0x254   :  { %v2103_v51 = vadd.f32 %v2102_v47, %v8034_v46  ;;  %v2017_v46 = vadd.f32 %v8000_v0, %v8015_v17 }
 0x255   :  { %v3065_v28 = vmax.f32 %v1983_v8, 0.0  ;;  %v8098_v58 = vpop.f32.mrf.mxu3  ;;  %2278 = vmatmul.bf16.gmra.mxu0 %v7267_v19  ;;  %2394 = vmatpush.bf16.msrb.mxu3 %v5109_v34 }
 0x256   :  { %2297 = vmatmul.bf16.vlgmr.msrb.gmra.mxu1 %v7229_v6  ;;  %v2066_v31 = vadd.f32 %v7980_v36, %v2017_v46  ;;  %v2069_v36 = vadd.f32 %v7992_v50, %v2020_v55  ;;  %v2025_v50 = vadd.f32 %v8056_v61, %v8015_v17  ;;  %v2027_v61 = vadd.f32 %v8069_v4, %v8015_v17 }
 0x257   :  { %5916 = vmatmul.msk.bf16.gmra.mxu2 %vm1382_vm0, %v7174_v45  ;;  %v8104_v20 = vpack.c.bf16 %v3065_v28, %v3057_v35 }
 0x259   :  { %9931 = vst [vmem:[#allocation33_spill] sm:$0xff] %v8104_v20 }
 0x25a   :  { %v1985_v48 = vpop.f32.mrf.mxu2  ;;  %2229 = vmatmul.bf16.gmra.mxu3 %v9880_v21  ;;  %v8110_v24 = vpop.f32.mrf.mxu0 }
 0x25b   :  { %v1986_v25 = vadd.f32 %v1985_v48, %v8031_v53  ;;  %v2104_v49 = vpop.f32.mrf.mxu1 }
 0x25c   :  { %v2105_v62 = vadd.f32 %v2104_v49, %v8054_v44 }
 0x25d   :  { %v8114_v40 = vpop.f32.mrf.mxu3  ;;  %v3073_v47 = vmax.f32 %v1986_v25, 0.0 }
 0x262   :  { %v1987_v26 = vpop.f32.mrf.mxu2  ;;  %v8119_v8 = vpop.f32.mrf.mxu0 }
 0x263   :  { %v1988_v0 = vadd.f32 %v1987_v26, %v8051_v16  ;;  %v2107_v53 = vpop.f32.mrf.mxu1  ;;  %v2022_v16 = vadd.f32 %v8036_v29, %v8015_v17 }
 0x264   :  { %v2108_v28 = vadd.f32 %v2107_v53, %v8067_v52 }
 0x265   :  { %v3081_v35 = vmax.f32 %v1988_v0, 0.0  ;;  %v8122_v18 = vpop.f32.mrf.mxu3  ;;  %2283 = vmatmul.bf16.gmra.mxu0 %v9884_v37  ;;  %v2071_v48 = vadd.f32 %v8012_v33, %v2022_v16 }
 0x266   :  { %2302 = vmatmul.bf16.gmra.mxu1 %v9886_v41 }
 0x267   :  { %5917 = vmatmul.msk.bf16.gmra.mxu2 %vm1382_vm0, %v9885_v27  ;;  %v8129_v30 = vpack.c.bf16 %v3081_v35, %v3073_v47  ;;  %v2074_v47 = vadd.f32 %v8028_v15, %v2025_v50 }
 0x269   :  { %9932 = vst [vmem:[#allocation34_spill] sm:$0xff] %v8129_v30  ;;  %v9937_v30 = vld [vmem:[#allocation24_spill] sm:$0xff] }
 0x26a   :  { %v1990_v44 = vpop.f32.mrf.mxu2  ;;  %2234 = vmatmul.bf16.gmra.mxu3 %v9888_v32  ;;  %v8135_v52 = vpop.f32.mrf.mxu0 }
 0x26b   :  { %v1991_v13 = vadd.f32 %v1990_v44, %v8064_v56  ;;  %v2109_v34 = vpop.f32.mrf.mxu1  ;;  %v2076_v44 = vadd.f32 %v8048_v38, %v2027_v61 }
 0x26c   :  { %v2110_v46 = vadd.f32 %v2109_v34, %v8087_v10  ;;  %v2030_v34 = vadd.f32 %v8089_v5, %v8015_v17  ;;  %v9935_v5 = vld [vmem:[#allocation37_spill] sm:$0xff] }
 0x26d   :  { %v8139_v25 = vpop.f32.mrf.mxu3  ;;  %v3089_v55 = vmax.f32 %v1991_v13, 0.0 }
 0x272   :  { %v1992_v49 = vpop.f32.mrf.mxu2  ;;  %v8144_v26 = vpop.f32.mrf.mxu0 }
 0x273   :  { %v1993_v29 = vadd.f32 %v1992_v49, %v8084_v9  ;;  %v2112_v56 = vpop.f32.mrf.mxu1 }
 0x274   :  { %v8146_v53 = vadd.f32 %v2112_v56, %v2064_v12 }
 0x275   :  { %v3097_v0 = vmax.f32 %v1993_v29, 0.0  ;;  %v8149_v10 = vpop.f32.mrf.mxu3  ;;  %2444 = vmatmul.bf16.vlgmr.msrb.gmra.mxu0 %v9891_v63 }
 0x276   :  { %2307 = vmatmul.bf16.gmra.mxu1 %v9892_v23 }
 0x277   :  { %5918 = vmatmul.msk.bf16.vlgmr.msrb.gmra.mxu2 %vm1382_vm0, %v9893_v1  ;;  %v8155_v33 = vpack.c.bf16 %v3097_v0, %v3089_v55  ;;  %v8174_v0 = vadd.f32 %v8061_v60, %v2030_v34 }
 0x279   :  { %9933 = vst [vmem:[#allocation27_spill] sm:$0xff] %v8155_v33 }
 0x27a   :  { %v2151_v9 = vpop.f32.mrf.mxu2  ;;  %2395 = vmatmul.bf16.vlgmr.msrb.gmra.mxu3 %v9895_v42  ;;  %v8160_v12 = vpop.f32.mrf.mxu0 }
 0x27b   :  { %v2152_v35 = vadd.f32 %v2151_v9, %v2103_v51  ;;  %v2114_v15 = vpop.f32.mrf.mxu1  ;;  %v9936_v9 = vld [vmem:[#allocation18_spill] sm:$0xff] }
 0x27c   :  { %v8162_v16 = vadd.f32 %v2114_v15, %v2066_v31 }
 0x27d   :  { %v8165_v13 = vpop.f32.mrf.mxu3  ;;  %v2978_v51 = vmax.f32 %v2152_v35, 0.0 }
 0x282   :  { %v2153_v50 = vpop.f32.mrf.mxu2  ;;  %v8169_v29 = vpop.f32.mrf.mxu0 }
 0x283   :  { %v2154_v49 = vadd.f32 %v2153_v50, %v2105_v62  ;;  %v2117_v4 = vpop.f32.mrf.mxu1  ;;  %v2032_v62 = vadd.f32 %v8098_v58, %v8015_v17 }
 0x284   :  { %v8171_v55 = vadd.f32 %v2117_v4, %v2069_v36 }
 0x285   :  { %v2986_v56 = vmax.f32 %v2154_v49, 0.0  ;;  %v8176_v31 = vpop.f32.mrf.mxu3  ;;  %2449 = vmatmul.bf16.gmra.mxu0 %v9914_v3  ;;  %v8192_v34 = vadd.f32 %v8081_v59, %v2032_v62  ;;  %v2035_v49 = vadd.f32 %v8114_v40, %v8015_v17  ;;  %v5842_v59 = vld [vmem:[#allocation3 + $0x5f0] sm:$0xf0]  ;;  %v9938_v40 = vld [vmem:[#allocation12_spill] sm:$0xff] }
 0x286   :  { %2312 = vmatmul.bf16.gmra.mxu1 %v9916_v22 }
 0x287   :  { %v8179_v38 = vpack.c.bf16 %v2986_v56, %v2978_v51  ;;  %5919 = vmatmul.msk.bf16.gmra.mxu2 %vm1382_vm0, %v9935_v5 }
 0x289   :  { %9934 = vst [vmem:[#allocation51_spill] sm:$0xff] %v8179_v38 }
 0x28a   :  { %v2156_v61 = vpop.f32.mrf.mxu2  ;;  %2400 = vmatmul.bf16.gmra.mxu3 %v9936_v9  ;;  %v8187_v60 = vpop.f32.mrf.mxu0 }
 0x28b   :  { %v2157_v36 = vadd.f32 %v2156_v61, %v2108_v28  ;;  %v2119_v35 = vpop.f32.mrf.mxu1 }
 0x28c   :  { %v8189_v15 = vadd.f32 %v2119_v35, %v2071_v48  ;;  %v8203_v48 = vadd.f32 %v8094_v11, %v2035_v49  ;;  %v6713_v35 = vld [vmem:[#allocation3 + $0x5d4] sm:$0xf]  ;;  %v2037_v11 = vadd.f32 %v8122_v18, %v8015_v17 }
 0x28d   :  { %v8194_v50 = vpop.f32.mrf.mxu3  ;;  %v2994_v56 = vmax.f32 %v2157_v36, 0.0  ;;  %v5845_v20 = vor.u32 %v6713_v35, %v5842_v59  ;;  %v5874_v36 = vld [vmem:[#allocation3 + $0x630] sm:$0xf0] }
 0x28e   :  { %v6705_v49 = vld [vmem:[#allocation3 + $0x594] sm:$0xf] }
 0x28f   :  { %2485 = vmatpush.bf16.msra.mxu1 %v5845_v20  ;;  %v8222_v20 = vadd.f32 %v8110_v24, %v2037_v11  ;;  %v5778_v18 = vld [vmem:[#allocation3 + $0x570] sm:$0xf0] }
 0x292   :  { %v2158_v4 = vpop.f32.mrf.mxu2  ;;  %v8198_v58 = vpop.f32.mrf.mxu0 }
 0x293   :  { %v2159_v51 = vadd.f32 %v2158_v4, %v2110_v46  ;;  %v2122_v28 = vpop.f32.mrf.mxu1  ;;  %v6721_v46 = vld [vmem:[#allocation3 + $0x614] sm:$0xf] }
 0x294   :  { %v8200_v33 = vadd.f32 %v2122_v28, %v2074_v47  ;;  %v5877_v47 = vor.u32 %v6721_v46, %v5874_v36 }
 0x295   :  { %v3002_v61 = vmax.f32 %v2159_v51, 0.0  ;;  %v8205_v62 = vpop.f32.mrf.mxu3  ;;  %2454 = vmatmul.bf16.gmra.mxu0 %v9937_v30  ;;  %v5810_v51 = vld [vmem:[#allocation3 + $0x5b0] sm:$0xf0] }
 0x296   :  { %2317 = vmatmul.bf16.gmra.mxu1 %v9920_v7  ;;  %2541 = vmatpush.bf16.msra.mxu2 %v5877_v47  ;;  %v5813_v38 = vor.u32 %v6705_v49, %v5810_v51  ;;  %v6689_v47 = vld [vmem:[#allocation3 + $0x514] sm:$0xf] }
 0x297   :  { %5920 = vmatmul.msk.bf16.gmra.mxu2 %vm1382_vm0, %v9938_v40  ;;  %v8211_v4 = vpack.c.bf16 %v3002_v61, %v2994_v56  ;;  %v6697_v61 = vld [vmem:[#allocation3 + $0x554] sm:$0xf] }
 0x298   :  { %2486 = vmatpush.bf16.msra.mxu1 %v5813_v38  ;;  %v5781_v36 = vor.u32 %v6697_v61, %v5778_v18  ;;  %v5746_v49 = vld [vmem:[#allocation3 + $0x530] sm:$0xf0] }
 0x299   :  { %9939 = vst [vmem:[#allocation37_spill] sm:$0xff] %v8211_v4  ;;  %v6681_v18 = vld [vmem:[#allocation3 + $0x4d4] sm:$0xf] }
 0x29a   :  { %v2161_v28 = vpop.f32.mrf.mxu2  ;;  %2405 = vmatmul.bf16.gmra.mxu3 %v9905_v2  ;;  %v8217_v59 = vpop.f32.mrf.mxu0 }
 0x29b   :  { %v2162_v35 = vadd.f32 %v2161_v28, %v8146_v53  ;;  %v2124_v40 = vpop.f32.mrf.mxu1  ;;  %v2040_v53 = vadd.f32 %v8139_v25, %v8015_v17  ;;  %v5749_v28 = vor.u32 %v6689_v47, %v5746_v49  ;;  %v5714_v25 = vld [vmem:[#allocation3 + $0x4f0] sm:$0xf0] }
 0x29c   :  { %v8219_v56 = vadd.f32 %v2124_v40, %v2076_v44  ;;  %2487 = vmatpush.bf16.msra.mxu1 %v5781_v36  ;;  %v5717_v47 = vor.u32 %v6681_v18, %v5714_v25  ;;  %v5650_v18 = vld [vmem:[#allocation3 + $0x470] sm:$0xf0] }
 0x29d   :  { %v8224_v46 = vpop.f32.mrf.mxu3  ;;  %v3010_v24 = vmax.f32 %v2162_v35, 0.0  ;;  %v8235_v61 = vadd.f32 %v8119_v8, %v2040_v53  ;;  %v6673_v8 = vld [vmem:[#allocation3 + $0x494] sm:$0xf] }
 0x29e   :  { %v5682_v35 = vld [vmem:[#allocation3 + $0x4b0] sm:$0xf0] }
 0x29f   :  { %v5685_v49 = vor.u32 %v6673_v8, %v5682_v35  ;;  %v6657_v35 = vld [vmem:[#allocation3 + $0x414] sm:$0xf] }
 0x2a0   :  { %2488 = vmatpush.bf16.msra.mxu1 %v5749_v28  ;;  %v9941_v28 = vld [vmem:[#allocation25_spill] sm:$0xff] }
 0x2a2   :  { %v2163_v51 = vpop.f32.mrf.mxu2  ;;  %v8229_v44 = vpop.f32.mrf.mxu0 }
 0x2a3   :  { %v2164_v38 = vadd.f32 %v2163_v51, %v8162_v16  ;;  %v2127_v40 = vpop.f32.mrf.mxu1 }
 0x2a4   :  { %v8232_v4 = vadd.f32 %v2127_v40, %v8174_v0  ;;  %2489 = vmatpush.bf16.msra.mxu1 %v5717_v47  ;;  %v2042_v0 = vadd.f32 %v8149_v10, %v8015_v17 }
 0x2a5   :  { %v3018_v11 = vmax.f32 %v2164_v38, 0.0  ;;  %v8237_v36 = vpop.f32.mrf.mxu3  ;;  %2459 = vmatmul.bf16.gmra.mxu0 %v7200_v57 }
 0x2a6   :  { %2322 = vmatmul.bf16.gmra.mxu1 %v7358_v39  ;;  %v8263_v10 = vadd.f32 %v8135_v52, %v2042_v0 }
 0x2a7   :  { %5921 = vmatmul.msk.bf16.gmra.mxu2 %vm1382_vm0, %v7062_v43  ;;  %v8243_v16 = vpack.c.bf16 %v3018_v11, %v3010_v24  ;;  %v8254_v24 = vld [vmem:[%s9730_s2] sm:$0xff] }
 0x2a8   :  { %2490 = vmatpush.bf16.msra.mxu1 %v5685_v49  ;;  %9942 = vst [vmem:[#allocation24_spill] sm:$0xff] %v8254_v24  ;;  %v8257_v11 = vperm.slane %v8254_v24, 4  ;;  %v9943_v43 = vld [vmem:[#allocation28_spill] sm:$0xff] }
 0x2a9   :  { %9940 = vst [vmem:[#allocation18_spill] sm:$0xff] %v8243_v16 }
 0x2aa   :  { %v2166_v53 = vpop.f32.mrf.mxu2  ;;  %2410 = vmatmul.bf16.gmra.mxu3 %v9941_v28  ;;  %v8249_v38 = vpop.f32.mrf.mxu0  ;;  %v2201_v8 = vadd.f32 %v8165_v13, %v8257_v11  ;;  %v6654_v13 = vld [vmem:[#allocation3 + $0x3f4] sm:$0xf0] }
 0x2ab   :  { %v2167_v51 = vadd.f32 %v2166_v53, %v8171_v55  ;;  %v2129_v40 = vpop.f32.mrf.mxu1  ;;  %v6665_v55 = vld [vmem:[#allocation3 + $0x454] sm:$0xf] }
 0x2ac   :  { %v8260_v17 = vadd.f32 %v2129_v40, %v8192_v34  ;;  %v5653_v47 = vor.u32 %v6665_v55, %v5650_v18  ;;  %v5618_v53 = vld [vmem:[#allocation3 + $0x430] sm:$0xf0]  ;;  %v8276_v55 = vadd.f32 %v8144_v26, %v2201_v8  ;;  %v5592_v18 = vld [vmem:[#allocation3 + $0x3d8] sm:$0xf] }
 0x2ad   :  { %v8265_v25 = vpop.f32.mrf.mxu3  ;;  %v5621_v16 = vor.u32 %v6657_v35, %v5618_v53  ;;  %v3026_v52 = vmax.f32 %v2167_v51, 0.0  ;;  %v5593_v35 = vor.u32 %v6654_v13, %v5592_v18  ;;  %v9945_v53 = vld [vmem:[#allocation17_spill] sm:$0xff]  ;;  %v5336_v26 = vld [vmem:[#allocation3 + $0x1d8] sm:$0xf] }
 0x2ae   :  { %2491 = vmatpush.bf16.msra.mxu1 %v5653_v47  ;;  %v6590_v51 = vld [vmem:[#allocation3 + $0x1f4] sm:$0xf0] }
 0x2af   :  { %2632 = vmatpush.bf16.msra.mxu0 %v5593_v35  ;;  %v9947_v18 = vld [vmem:[#allocation15_spill] sm:$0xff] }
 0x2b0   :  { %v6582_v35 = vld [vmem:[#allocation3 + $0x1b4] sm:$0xf0] }
 0x2b2   :  { %v2168_v49 = vpop.f32.mrf.mxu2  ;;  %v8270_v34 = vpop.f32.mrf.mxu0  ;;  %2492 = vmatpush.bf16.msra.mxu1 %v5621_v16 }
 0x2b3   :  { %v2169_v24 = vadd.f32 %v2168_v49, %v8189_v15  ;;  %v2132_v40 = vpop.f32.mrf.mxu1  ;;  %v9944_v15 = vld [vmem:[#allocation38_spill] sm:$0xff]  ;;  %v5337_v49 = vor.u32 %v6590_v51, %v5336_v26 }
 0x2b4   :  { %v8273_v28 = vadd.f32 %v2132_v40, %v8203_v48  ;;  %v2203_v48 = vadd.f32 %v8176_v31, %v8257_v11  ;;  %v6646_v40 = vld [vmem:[#allocation3 + $0x3b4] sm:$0xf0] }
 0x2b5   :  { %v3034_v0 = vmax.f32 %v2169_v24, 0.0  ;;  %v8278_v47 = vpop.f32.mrf.mxu3  ;;  %2464 = vmatmul.bf16.gmra.mxu0 %v9943_v43  ;;  %v5560_v24 = vld [vmem:[#allocation3 + $0x398] sm:$0xf]  ;;  %2583 = vmatpush.bf16.msra.mxu3 %v5337_v49 }
 0x2b6   :  { %2327 = vmatmul.bf16.gmra.mxu1 %v9944_v15  ;;  %v5561_v15 = vor.u32 %v6646_v40, %v5560_v24  ;;  %v8296_v31 = vadd.f32 %v8160_v12, %v2203_v48  ;;  %v2206_v24 = vadd.f32 %v8194_v50, %v8257_v11  ;;  %v5272_v49 = vld [vmem:[#allocation3 + $0x158] sm:$0xf] }
 0x2b7   :  { %5922 = vmatmul.msk.bf16.gmra.mxu2 %vm1382_vm0, %v9945_v53  ;;  %v8284_v16 = vpack.c.bf16 %v3034_v0, %v3026_v52  ;;  %v5304_v0 = vld [vmem:[#allocation3 + $0x198] sm:$0xf] }
 0x2b8   :  { %2633 = vmatpush.bf16.msra.mxu0 %v5561_v15  ;;  %v5305_v51 = vor.u32 %v6582_v35, %v5304_v0  ;;  %v6630_v48 = vld [vmem:[#allocation3 + $0x334] sm:$0xf0]  ;;  %v8309_v50 = vadd.f32 %v8169_v29, %v2206_v24 }
 0x2b9   :  { %9946 = vst [vmem:[#allocation52_spill] sm:$0xff] %v8284_v16  ;;  %v5208_v29 = vld [vmem:[#allocation3 + $0xd8] sm:$0xf] }
 0x2ba   :  { %v2171_v8 = vpop.f32.mrf.mxu2  ;;  %2415 = vmatmul.bf16.gmra.mxu3 %v9947_v18  ;;  %v8290_v13 = vpop.f32.mrf.mxu0  ;;  %v6558_v24 = vld [vmem:[#allocation3 + $0xf4] sm:$0xf0] }
 0x2bb   :  { %v2172_v43 = vadd.f32 %v2171_v8, %v8200_v33  ;;  %v2134_v53 = vpop.f32.mrf.mxu1  ;;  %v5528_v33 = vld [vmem:[#allocation3 + $0x358] sm:$0xf]  ;;  %2584 = vmatpush.bf16.msra.mxu3 %v5305_v51 }
 0x2bc   :  { %v8293_v52 = vadd.f32 %v2134_v53, %v8222_v20  ;;  %v6638_v8 = vld [vmem:[#allocation3 + $0x374] sm:$0xf0] }
 0x2bd   :  { %v8298_v26 = vpop.f32.mrf.mxu3  ;;  %v5529_v16 = vor.u32 %v6638_v8, %v5528_v33  ;;  %v6574_v20 = vld [vmem:[#allocation3 + $0x174] sm:$0xf0]  ;;  %v3042_v35 = vmax.f32 %v2172_v43, 0.0  ;;  %v9948_v43 = vld [vmem:[#allocation21_spill] sm:$0xff] }
 0x2be   :  { %v5496_v53 = vld [vmem:[#allocation3 + $0x318] sm:$0xf]  ;;  %v5273_v12 = vor.u32 %v6574_v20, %v5272_v49 }
 0x2bf   :  { %2634 = vmatpush.bf16.msra.mxu0 %v5529_v16  ;;  %v5497_v39 = vor.u32 %v6630_v48, %v5496_v53  ;;  %v5240_v16 = vld [vmem:[#allocation3 + $0x118] sm:$0xf] }
 0x2c0   :  { %2585 = vmatpush.bf16.msra.mxu3 %v5273_v12  ;;  %v6566_v8 = vld [vmem:[#allocation3 + $0x134] sm:$0xf0] }
 0x2c1   :  { %v5464_v20 = vld [vmem:[#allocation3 + $0x2d8] sm:$0xf] }
 0x2c2   :  { %v2173_v40 = vpop.f32.mrf.mxu2  ;;  %v8303_v18 = vpop.f32.mrf.mxu0  ;;  %v6622_v53 = vld [vmem:[#allocation3 + $0x2f4] sm:$0xf0] }
 0x2c3   :  { %v2174_v15 = vadd.f32 %v2173_v40, %v8219_v56  ;;  %v2137_v0 = vpop.f32.mrf.mxu1  ;;  %2635 = vmatpush.bf16.msra.mxu0 %v5497_v39  ;;  %v5241_v56 = vor.u32 %v6566_v8, %v5240_v16  ;;  %v2208_v39 = vadd.f32 %v8205_v62, %v8257_v11  ;;  %v5432_v12 = vld [vmem:[#allocation3 + $0x298] sm:$0xf] }
 0x2c4   :  { %v8306_v51 = vadd.f32 %v2137_v0, %v8235_v61  ;;  %v5465_v61 = vor.u32 %v6622_v53, %v5464_v20  ;;  %v6614_v0 = vld [vmem:[#allocation3 + $0x2b4] sm:$0xf0] }
 0x2c5   :  { %v3050_v33 = vmax.f32 %v2174_v15, 0.0  ;;  %v8311_v49 = vpop.f32.mrf.mxu3  ;;  %2469 = vmatmul.bf16.gmra.mxu0 %v7247_v14  ;;  %2586 = vmatpush.bf16.msra.mxu3 %v5241_v56  ;;  %v5209_v15 = vor.u32 %v6558_v24, %v5208_v29  ;;  %v9950_v8 = vld [vmem:[#allocation19_spill] sm:$0xff]  ;;  %v5433_v20 = vor.u32 %v6614_v0, %v5432_v12  ;;  %v8329_v62 = vadd.f32 %v8187_v60, %v2208_v39 }
 0x2c6   :  { %2332 = vmatmul.bf16.gmra.mxu1 %v7417_v54  ;;  %v5176_v56 = vld [vmem:[#allocation3 + $0x98] sm:$0xf]  ;;  %v2211_v12 = vadd.f32 %v8224_v46, %v8257_v11 }
 0x2c7   :  { %5923 = vmatmul.msk.bf16.gmra.mxu2 %vm1382_vm0, %v9948_v43  ;;  %v8317_v40 = vpack.c.bf16 %v3050_v33, %v3042_v35  ;;  %2636 = vmatpush.bf16.msra.mxu0 %v5465_v61  ;;  %v6550_v53 = vld [vmem:[#allocation3 + $0xb4] sm:$0xf0] }
 0x2c8   :  { %v5177_v29 = vor.u32 %v6550_v53, %v5176_v56  ;;  %v6606_v24 = vld [vmem:[#allocation3 + $0x274] sm:$0xf0]  ;;  %v2260_v46 = vadd.f32 %v8198_v58, %v2211_v12 }
 0x2c9   :  { %9949 = vst [vmem:[#allocation53_spill] sm:$0xff] %v8317_v40  ;;  %2587 = vmatpush.bf16.msra.mxu3 %v5209_v15  ;;  %v5144_v15 = vld [vmem:[#allocation3 + $0x58] sm:$0xf] }
 0x2ca   :  { %v2176_v48 = vpop.f32.mrf.mxu2  ;;  %2420 = vmatmul.bf16.gmra.mxu3 %v9950_v8  ;;  %v8323_v54 = vpop.f32.mrf.mxu0  ;;  %v5368_v0 = vld [vmem:[#allocation3 + $0x218] sm:$0xf] }
 0x2cb   :  { %v2177_v16 = vadd.f32 %v2176_v48, %v8232_v4  ;;  %v2139_v35 = vpop.f32.mrf.mxu1  ;;  %2637 = vmatpush.bf16.msra.mxu0 %v5433_v20  ;;  %v5400_v4 = vld [vmem:[#allocation3 + $0x258] sm:$0xf] }
 0x2cc   :  { %v8326_v33 = vadd.f32 %v2139_v35, %v8263_v10  ;;  %v5401_v48 = vor.u32 %v6606_v24, %v5400_v4  ;;  %v6542_v10 = vld [vmem:[#allocation3 + $0x74] sm:$0xf0] }
 0x2cd   :  { %v8331_v61 = vpop.f32.mrf.mxu3  ;;  %2588 = vmatpush.bf16.msra.mxu3 %v5177_v29  ;;  %v5145_v60 = vor.u32 %v6542_v10, %v5144_v15  ;;  %v6598_v39 = vld [vmem:[#allocation3 + $0x234] sm:$0xf0]  ;;  %v3058_v53 = vmax.f32 %v2177_v16, 0.0 }
 0x2ce   :  { %v5369_v8 = vor.u32 %v6598_v39, %v5368_v0  ;;  %v5112_v24 = vld [vmem:[#allocation3 + $0x18] sm:$0xf]  ;;  %v2216_v39 = vadd.f32 %v8265_v25, %v8257_v11 }
 0x2cf   :  { %2638 = vmatpush.bf16.msra.mxu0 %v5401_v48  ;;  %v6534_v48 = vld [vmem:[#allocation3 + $0x34] sm:$0xf0] }
 0x2d0   :  { %v5113_v15 = vor.u32 %v6534_v48, %v5112_v24 }
 0x2d1   :  { %2589 = vmatpush.bf16.msra.mxu3 %v5145_v60 }
 0x2d2   :  { %v2178_v35 = vpop.f32.mrf.mxu2  ;;  %v8336_v40 = vpop.f32.mrf.mxu0 }
 0x2d3   :  { %v2179_v20 = vadd.f32 %v2178_v35, %v8260_v17  ;;  %v2298_v56 = vpop.f32.mrf.mxu1  ;;  %2639 = vmatpush.bf16.msra.mxu0 %v5369_v8 }
 0x2d4   :  { %v2299_v29 = vadd.f32 %v2298_v56, %v8276_v55  ;;  %v2213_v55 = vadd.f32 %v8237_v36, %v8257_v11 }
 0x2d5   :  { %v3066_v4 = vmax.f32 %v2179_v20, 0.0  ;;  %v8340_v43 = vpop.f32.mrf.mxu3  ;;  %2474 = vmatmul.bf16.gmra.mxu0 %v7267_v19  ;;  %2590 = vmatpush.bf16.msra.mxu3 %v5113_v15 }
 0x2d6   :  { %2493 = vmatmul.bf16.vlgmr.msra.gmra.mxu1 %v7229_v6  ;;  %v2262_v0 = vadd.f32 %v8217_v59, %v2213_v55  ;;  %v2265_v59 = vadd.f32 %v8229_v44, %v2216_v39  ;;  %v2221_v44 = vadd.f32 %v8298_v26, %v8257_v11  ;;  %v2223_v26 = vadd.f32 %v8311_v49, %v8257_v11 }
 0x2d7   :  { %5924 = vmatmul.msk.bf16.gmra.mxu2 %vm1382_vm0, %v7174_v45  ;;  %v8346_v17 = vpack.c.bf16 %v3066_v4, %v3058_v53 }
 0x2d9   :  { %9951 = vst [vmem:[#allocation54_spill] sm:$0xff] %v8346_v17 }
 0x2da   :  { %v2181_v58 = vpop.f32.mrf.mxu2  ;;  %2425 = vmatmul.bf16.gmra.mxu3 %v9880_v21  ;;  %v8352_v8 = vpop.f32.mrf.mxu0 }
 0x2db   :  { %v2182_v16 = vadd.f32 %v2181_v58, %v8273_v28  ;;  %v2300_v12 = vpop.f32.mrf.mxu1 }
 0x2dc   :  { %v2301_v10 = vadd.f32 %v2300_v12, %v8296_v31 }
 0x2dd   :  { %v8356_v35 = vpop.f32.mrf.mxu3  ;;  %v3074_v56 = vmax.f32 %v2182_v16, 0.0 }
 0x2e2   :  { %v2183_v60 = vpop.f32.mrf.mxu2  ;;  %v8361_v20 = vpop.f32.mrf.mxu0 }
 0x2e3   :  { %v2184_v36 = vadd.f32 %v2183_v60, %v8293_v52  ;;  %v2303_v28 = vpop.f32.mrf.mxu1  ;;  %v2218_v52 = vadd.f32 %v8278_v47, %v8257_v11 }
 0x2e4   :  { %v2304_v4 = vadd.f32 %v2303_v28, %v8309_v50 }
 0x2e5   :  { %v3082_v53 = vmax.f32 %v2184_v36, 0.0  ;;  %v8364_v24 = vpop.f32.mrf.mxu3  ;;  %2479 = vmatmul.bf16.gmra.mxu0 %v9884_v37  ;;  %v2267_v58 = vadd.f32 %v8249_v38, %v2218_v52 }
 0x2e6   :  { %2498 = vmatmul.bf16.gmra.mxu1 %v9886_v41 }
 0x2e7   :  { %5925 = vmatmul.msk.bf16.gmra.mxu2 %vm1382_vm0, %v9885_v27  ;;  %v8371_v25 = vpack.c.bf16 %v3082_v53, %v3074_v56  ;;  %v2270_v56 = vadd.f32 %v8270_v34, %v2221_v44 }
 0x2e9   :  { %9952 = vst [vmem:[#allocation55_spill] sm:$0xff] %v8371_v25 }
 0x2ea   :  { %v2186_v31 = vpop.f32.mrf.mxu2  ;;  %2430 = vmatmul.bf16.gmra.mxu3 %v9888_v32  ;;  %v8377_v50 = vpop.f32.mrf.mxu0 }
 0x2eb   :  { %v2187_v48 = vadd.f32 %v2186_v31, %v8306_v51  ;;  %v2305_v15 = vpop.f32.mrf.mxu1  ;;  %v2272_v31 = vadd.f32 %v8290_v13, %v2223_v26 }
 0x2ec   :  { %v2306_v55 = vadd.f32 %v2305_v15, %v8329_v62  ;;  %v2226_v15 = vadd.f32 %v8331_v61, %v8257_v11  ;;  %v2228_v61 = vadd.f32 %v8340_v43, %v8257_v11 }
 0x2ed   :  { %v8381_v16 = vpop.f32.mrf.mxu3  ;;  %v3090_v39 = vmax.f32 %v2187_v48, 0.0 }
 0x2f2   :  { %v2188_v12 = vpop.f32.mrf.mxu2  ;;  %v8386_v60 = vpop.f32.mrf.mxu0 }
 0x2f3   :  { %v2189_v47 = vadd.f32 %v2188_v12, %v8326_v33  ;;  %v2308_v51 = vpop.f32.mrf.mxu1 }
 0x2f4   :  { %v8388_v28 = vadd.f32 %v2308_v51, %v2260_v46 }
 0x2f5   :  { %v3098_v36 = vmax.f32 %v2189_v47, 0.0  ;;  %v8391_v62 = vpop.f32.mrf.mxu3  ;;  %2640 = vmatmul.bf16.vlgmr.msra.gmra.mxu0 %v9891_v63 }
 0x2f6   :  { %2503 = vmatmul.bf16.gmra.mxu1 %v9892_v23 }
 0x2f7   :  { %5926 = vmatmul.msk.bf16.vlgmr.msra.gmra.mxu2 %vm1382_vm0, %v9893_v1  ;;  %v8397_v38 = vpack.c.bf16 %v3098_v36, %v3090_v39  ;;  %v8416_v36 = vadd.f32 %v8303_v18, %v2226_v15  ;;  %v2231_v15 = vadd.f32 %v8356_v35, %v8257_v11  ;;  %v9955_v35 = vld [vmem:[#allocation12_spill] sm:$0xff] }
 0x2f9   :  { %9953 = vst [vmem:[#allocation56_spill] sm:$0xff] %v8397_v38 }
 0x2fa   :  { %v2347_v33 = vpop.f32.mrf.mxu2  ;;  %2591 = vmatmul.bf16.vlgmr.msra.gmra.mxu3 %v9895_v42  ;;  %v8402_v46 = vpop.f32.mrf.mxu0 }
 0x2fb   :  { %v2348_v53 = vadd.f32 %v2347_v33, %v2299_v29  ;;  %v2310_v34 = vpop.f32.mrf.mxu1 }
 0x2fc   :  { %v8404_v52 = vadd.f32 %v2310_v34, %v2262_v0 }
 0x2fd   :  { %v8407_v48 = vpop.f32.mrf.mxu3  ;;  %v2979_v29 = vmax.f32 %v2348_v53, 0.0  ;;  %v8434_v53 = vadd.f32 %v8323_v54, %v2228_v61  ;;  %v6718_v54 = vld [vmem:[#allocation3 + $0x5f4] sm:$0xf0] }
 0x302   :  { %v2349_v44 = vpop.f32.mrf.mxu2  ;;  %v8411_v47 = vpop.f32.mrf.mxu0 }
 0x303   :  { %v2350_v12 = vadd.f32 %v2349_v44, %v2301_v10  ;;  %v2313_v49 = vpop.f32.mrf.mxu1 }
 0x304   :  { %v8413_v39 = vadd.f32 %v2313_v49, %v2265_v59 }
 0x305   :  { %v2987_v51 = vmax.f32 %v2350_v12, 0.0  ;;  %v8418_v0 = vpop.f32.mrf.mxu3  ;;  %2645 = vmatmul.bf16.gmra.mxu0 %v9914_v3 }
 0x306   :  { %2508 = vmatmul.bf16.gmra.mxu1 %v9916_v22 }
 0x307   :  { %v8421_v13 = vpack.c.bf16 %v2987_v51, %v2979_v29  ;;  %5927 = vmatmul.msk.bf16.gmra.mxu2 %vm1382_vm0, %v9935_v5 }
 0x309   :  { %9954 = vst [vmem:[#allocation57_spill] sm:$0xff] %v8421_v13 }
 0x30a   :  { %v2352_v10 = vpop.f32.mrf.mxu2  ;;  %2596 = vmatmul.bf16.gmra.mxu3 %v9936_v9  ;;  %v8429_v18 = vpop.f32.mrf.mxu0 }
 0x30b   :  { %v2353_v59 = vadd.f32 %v2352_v10, %v2304_v4  ;;  %v2315_v26 = vpop.f32.mrf.mxu1  ;;  %v5848_v10 = vld [vmem:[#allocation3 + $0x5d8] sm:$0xf] }
 0x30c   :  { %v8431_v33 = vadd.f32 %v2315_v26, %v2267_v58  ;;  %v8445_v58 = vadd.f32 %v8336_v40, %v2231_v15  ;;  %v5849_v26 = vor.u32 %v6718_v54, %v5848_v10  ;;  %v2233_v40 = vadd.f32 %v8364_v24, %v8257_v11  ;;  %v5816_v15 = vld [vmem:[#allocation3 + $0x598] sm:$0xf] }
 0x30d   :  { %v8436_v34 = vpop.f32.mrf.mxu3  ;;  %v2995_v49 = vmax.f32 %v2353_v59, 0.0  ;;  %v6726_v59 = vld [vmem:[#allocation3 + $0x634] sm:$0xf0] }
 0x30e   :  { %2681 = vmatpush.bf16.msrb.mxu1 %v5849_v26  ;;  %v5784_v26 = vld [vmem:[#allocation3 + $0x558] sm:$0xf] }
 0x30f   :  { %v6702_v24 = vld [vmem:[#allocation3 + $0x574] sm:$0xf0] }
 0x312   :  { %v2354_v44 = vpop.f32.mrf.mxu2  ;;  %v8440_v43 = vpop.f32.mrf.mxu0 }
 0x313   :  { %v2355_v12 = vadd.f32 %v2354_v44, %v2306_v55  ;;  %v2318_v4 = vpop.f32.mrf.mxu1  ;;  %v5880_v55 = vld [vmem:[#allocation3 + $0x618] sm:$0xf] }
 0x314   :  { %v8442_v51 = vadd.f32 %v2318_v4, %v2270_v56  ;;  %v5881_v56 = vor.u32 %v6726_v59, %v5880_v55  ;;  %v5785_v59 = vor.u32 %v6702_v24, %v5784_v26  ;;  %v5720_v24 = vld [vmem:[#allocation3 + $0x4d8] sm:$0xf] }
 0x315   :  { %v3003_v29 = vmax.f32 %v2355_v12, 0.0  ;;  %v8447_v61 = vpop.f32.mrf.mxu3  ;;  %2650 = vmatmul.bf16.gmra.mxu0 %v9937_v30  ;;  %v6710_v12 = vld [vmem:[#allocation3 + $0x5b4] sm:$0xf0] }
 0x316   :  { %2513 = vmatmul.bf16.gmra.mxu1 %v9920_v7  ;;  %2737 = vmatpush.bf16.msrb.mxu2 %v5881_v56  ;;  %v5817_v38 = vor.u32 %v6710_v12, %v5816_v15  ;;  %v5752_v56 = vld [vmem:[#allocation3 + $0x518] sm:$0xf] }
 0x317   :  { %5928 = vmatmul.msk.bf16.gmra.mxu2 %vm1382_vm0, %v9955_v35  ;;  %v8453_v44 = vpack.c.bf16 %v3003_v29, %v2995_v49  ;;  %v8464_v29 = vadd.f32 %v8352_v8, %v2233_v40  ;;  %v6694_v15 = vld [vmem:[#allocation3 + $0x534] sm:$0xf0] }
 0x318   :  { %2682 = vmatpush.bf16.msrb.mxu1 %v5817_v38 }
 0x319   :  { %9956 = vst [vmem:[#allocation12_spill] sm:$0xff] %v8453_v44  ;;  %v9961_v44 = vld [vmem:[#allocation24_spill] sm:$0xff] }
 0x31a   :  { %v2357_v4 = vpop.f32.mrf.mxu2  ;;  %2601 = vmatmul.bf16.gmra.mxu3 %v9905_v2  ;;  %v8459_v54 = vpop.f32.mrf.mxu0  ;;  %v8494_v13 = vperm.slane %v9961_v44, 5 }
 0x31b   :  { %v2358_v10 = vadd.f32 %v2357_v4, %v8388_v28  ;;  %v2320_v25 = vpop.f32.mrf.mxu1  ;;  %v2236_v28 = vadd.f32 %v8381_v16, %v8257_v11  ;;  %v5753_v4 = vor.u32 %v6694_v15, %v5752_v56  ;;  %v6686_v16 = vld [vmem:[#allocation3 + $0x4f4] sm:$0xf0]  ;;  %v9958_v15 = vld [vmem:[#allocation13_spill] sm:$0xff] }
 0x31c   :  { %v8461_v49 = vadd.f32 %v2320_v25, %v2272_v31  ;;  %2683 = vmatpush.bf16.msrb.mxu1 %v5785_v59  ;;  %v5721_v56 = vor.u32 %v6686_v16, %v5720_v24 }
 0x31d   :  { %v8466_v55 = vpop.f32.mrf.mxu3  ;;  %v3011_v8 = vmax.f32 %v2358_v10, 0.0  ;;  %v8477_v26 = vadd.f32 %v8361_v20, %v2236_v28  ;;  %v5688_v20 = vld [vmem:[#allocation3 + $0x498] sm:$0xf] }
 0x31e   :  { %v6678_v28 = vld [vmem:[#allocation3 + $0x4b4] sm:$0xf0] }
 0x320   :  { %2684 = vmatpush.bf16.msrb.mxu1 %v5753_v4  ;;  %v5689_v4 = vor.u32 %v6678_v28, %v5688_v20  ;;  %v2397_v20 = vadd.f32 %v8407_v48, %v8494_v13  ;;  %v5624_v28 = vld [vmem:[#allocation3 + $0x418] sm:$0xf]  ;;  %v5594_v48 = vld [vmem:[#allocation3 + $0x3f8] sm:$0xf0] }
 0x322   :  { %v2359_v12 = vpop.f32.mrf.mxu2  ;;  %v8471_v25 = vpop.f32.mrf.mxu0 }
 0x323   :  { %v2360_v38 = vadd.f32 %v2359_v12, %v8404_v52  ;;  %v2323_v31 = vpop.f32.mrf.mxu1  ;;  %v9957_v52 = vld [vmem:[#allocation36_spill] sm:$0xff] }
 0x324   :  { %v8474_v17 = vadd.f32 %v2323_v31, %v8416_v36  ;;  %2685 = vmatpush.bf16.msrb.mxu1 %v5721_v56  ;;  %v2238_v36 = vadd.f32 %v8391_v62, %v8257_v11  ;;  %v9960_v31 = vld [vmem:[#allocation25_spill] sm:$0xff]  ;;  %v5656_v62 = vld [vmem:[#allocation3 + $0x458] sm:$0xf] }
 0x325   :  { %v3019_v40 = vmax.f32 %v2360_v38, 0.0  ;;  %v8479_v59 = vpop.f32.mrf.mxu3  ;;  %2655 = vmatmul.bf16.gmra.mxu0 %v7200_v57 }
 0x326   :  { %2518 = vmatmul.bf16.gmra.mxu1 %v9957_v52  ;;  %v8500_v11 = vadd.f32 %v8377_v50, %v2238_v36 }
 0x327   :  { %5929 = vmatmul.msk.bf16.gmra.mxu2 %vm1382_vm0, %v9958_v15  ;;  %v8485_v10 = vpack.c.bf16 %v3019_v40, %v3011_v8  ;;  %v6670_v40 = vld [vmem:[#allocation3 + $0x474] sm:$0xf0]  ;;  %v9962_v15 = vld [vmem:[#allocation28_spill] sm:$0xff] }
 0x328   :  { %2686 = vmatpush.bf16.msrb.mxu1 %v5689_v4 }
 0x329   :  { %9959 = vst [vmem:[#allocation58_spill] sm:$0xff] %v8485_v10 }
 0x32a   :  { %v2362_v12 = vpop.f32.mrf.mxu2  ;;  %2606 = vmatmul.bf16.gmra.mxu3 %v9960_v31  ;;  %v8491_v24 = vpop.f32.mrf.mxu0 }
 0x32b   :  { %v2363_v38 = vadd.f32 %v2362_v12, %v8413_v39  ;;  %v2325_v16 = vpop.f32.mrf.mxu1  ;;  %v5657_v39 = vor.u32 %v6670_v40, %v5656_v62  ;;  %v6662_v12 = vld [vmem:[#allocation3 + $0x434] sm:$0xf0]  ;;  %v8513_v62 = vadd.f32 %v8386_v60, %v2397_v20  ;;  %v6650_v40 = vld [vmem:[#allocation3 + $0x3dc] sm:$0xf] }
 0x32c   :  { %v8497_v8 = vadd.f32 %v2325_v16, %v8434_v53  ;;  %v5625_v44 = vor.u32 %v6662_v12, %v5624_v28  ;;  %v5597_v28 = vor.u32 %v6650_v40, %v5594_v48  ;;  %v9964_v12 = vld [vmem:[#allocation17_spill] sm:$0xff]  ;;  %v6586_v60 = vld [vmem:[#allocation3 + $0x1dc] sm:$0xf] }
 0x32d   :  { %v8502_v56 = vpop.f32.mrf.mxu3  ;;  %2687 = vmatpush.bf16.msrb.mxu1 %v5657_v39  ;;  %v3027_v50 = vmax.f32 %v2363_v38, 0.0  ;;  %v6642_v20 = vld [vmem:[#allocation3 + $0x39c] sm:$0xf] }
 0x32e   :  { %2828 = vmatpush.bf16.msrb.mxu0 %v5597_v28  ;;  %v9966_v40 = vld [vmem:[#allocation15_spill] sm:$0xff] }
 0x32f   :  { %v5306_v28 = vld [vmem:[#allocation3 + $0x1b8] sm:$0xf0] }
 0x331   :  { %2688 = vmatpush.bf16.msrb.mxu1 %v5625_v44 }
 0x332   :  { %v2364_v4 = vpop.f32.mrf.mxu2  ;;  %v8507_v53 = vpop.f32.mrf.mxu0 }
 0x333   :  { %v2365_v10 = vadd.f32 %v2364_v4, %v8431_v33  ;;  %v2328_v16 = vpop.f32.mrf.mxu1  ;;  %v9963_v33 = vld [vmem:[#allocation38_spill] sm:$0xff] }
 0x334   :  { %v8510_v31 = vadd.f32 %v2328_v16, %v8445_v58  ;;  %v2399_v58 = vadd.f32 %v8418_v0, %v8494_v13  ;;  %v5562_v16 = vld [vmem:[#allocation3 + $0x3b8] sm:$0xf0] }
 0x335   :  { %v3035_v36 = vmax.f32 %v2365_v10, 0.0  ;;  %v8515_v39 = vpop.f32.mrf.mxu3  ;;  %2660 = vmatmul.bf16.gmra.mxu0 %v9962_v15  ;;  %v5338_v10 = vld [vmem:[#allocation3 + $0x1f8] sm:$0xf0] }
 0x336   :  { %2523 = vmatmul.bf16.gmra.mxu1 %v9963_v33  ;;  %v5341_v44 = vor.u32 %v6586_v60, %v5338_v10  ;;  %v5565_v33 = vor.u32 %v6642_v20, %v5562_v16  ;;  %v8533_v0 = vadd.f32 %v8402_v46, %v2399_v58  ;;  %v2402_v20 = vadd.f32 %v8436_v34, %v8494_v13  ;;  %v5498_v58 = vld [vmem:[#allocation3 + $0x338] sm:$0xf0] }
 0x337   :  { %5930 = vmatmul.msk.bf16.gmra.mxu2 %vm1382_vm0, %v9964_v12  ;;  %v8521_v38 = vpack.c.bf16 %v3035_v36, %v3027_v50  ;;  %v6578_v36 = vld [vmem:[#allocation3 + $0x19c] sm:$0xf] }
 0x338   :  { %2779 = vmatpush.bf16.msrb.mxu3 %v5341_v44  ;;  %2829 = vmatpush.bf16.msrb.mxu0 %v5565_v33  ;;  %v5309_v10 = vor.u32 %v6578_v36, %v5306_v28  ;;  %v6570_v44 = vld [vmem:[#allocation3 + $0x15c] sm:$0xf]  ;;  %v8546_v34 = vadd.f32 %v8411_v47, %v2402_v20  ;;  %v2404_v47 = vadd.f32 %v8447_v61, %v8494_v13 }
 0x339   :  { %9965 = vst [vmem:[#allocation24_spill] sm:$0xff] %v8521_v38  ;;  %v5210_v20 = vld [vmem:[#allocation3 + $0xf8] sm:$0xf0] }
 0x33a   :  { %v2367_v4 = vpop.f32.mrf.mxu2  ;;  %2611 = vmatmul.bf16.gmra.mxu3 %v9966_v40  ;;  %v8527_v48 = vpop.f32.mrf.mxu0  ;;  %v8566_v61 = vadd.f32 %v8429_v18, %v2404_v47  ;;  %v5370_v47 = vld [vmem:[#allocation3 + $0x238] sm:$0xf0] }
 0x33b   :  { %v2368_v15 = vadd.f32 %v2367_v4, %v8442_v51  ;;  %v2330_v12 = vpop.f32.mrf.mxu1  ;;  %v6634_v51 = vld [vmem:[#allocation3 + $0x35c] sm:$0xf] }
 0x33c   :  { %v8530_v50 = vadd.f32 %v2330_v12, %v8464_v29  ;;  %v5530_v4 = vld [vmem:[#allocation3 + $0x378] sm:$0xf0]  ;;  %2780 = vmatpush.bf16.msrb.mxu3 %v5309_v10 }
 0x33d   :  { %v8535_v60 = vpop.f32.mrf.mxu3  ;;  %v5533_v38 = vor.u32 %v6634_v51, %v5530_v4  ;;  %v5274_v29 = vld [vmem:[#allocation3 + $0x178] sm:$0xf0]  ;;  %v3043_v28 = vmax.f32 %v2368_v15, 0.0  ;;  %v9968_v15 = vld [vmem:[#allocation21_spill] sm:$0xff] }
 0x33e   :  { %v6626_v12 = vld [vmem:[#allocation3 + $0x31c] sm:$0xf]  ;;  %v5277_v46 = vor.u32 %v6570_v44, %v5274_v29 }
 0x33f   :  { %2830 = vmatpush.bf16.msrb.mxu0 %v5533_v38  ;;  %v5501_v52 = vor.u32 %v6626_v12, %v5498_v58  ;;  %v6562_v38 = vld [vmem:[#allocation3 + $0x11c] sm:$0xf] }
 0x340   :  { %2781 = vmatpush.bf16.msrb.mxu3 %v5277_v46  ;;  %v5242_v4 = vld [vmem:[#allocation3 + $0x138] sm:$0xf0] }
 0x341   :  { %v6618_v29 = vld [vmem:[#allocation3 + $0x2dc] sm:$0xf] }
 0x342   :  { %v2369_v16 = vpop.f32.mrf.mxu2  ;;  %v8540_v40 = vpop.f32.mrf.mxu0  ;;  %v5466_v12 = vld [vmem:[#allocation3 + $0x2f8] sm:$0xf0] }
 0x343   :  { %v2370_v33 = vadd.f32 %v2369_v16, %v8461_v49  ;;  %v2333_v36 = vpop.f32.mrf.mxu1  ;;  %2831 = vmatpush.bf16.msrb.mxu0 %v5501_v52  ;;  %v5245_v49 = vor.u32 %v6562_v38, %v5242_v4  ;;  %v9967_v16 = vld [vmem:[#allocation40_spill] sm:$0xff]  ;;  %v6554_v52 = vld [vmem:[#allocation3 + $0xdc] sm:$0xf] }
 0x344   :  { %v8543_v10 = vadd.f32 %v2333_v36, %v8477_v26  ;;  %v5469_v26 = vor.u32 %v6618_v29, %v5466_v12  ;;  %v6610_v58 = vld [vmem:[#allocation3 + $0x29c] sm:$0xf]  ;;  %v5213_v36 = vor.u32 %v6554_v52, %v5210_v20 }
 0x345   :  { %v3051_v51 = vmax.f32 %v2370_v33, 0.0  ;;  %v8548_v44 = vpop.f32.mrf.mxu3  ;;  %2665 = vmatmul.bf16.gmra.mxu0 %v7247_v14  ;;  %2782 = vmatpush.bf16.msrb.mxu3 %v5245_v49  ;;  %v5434_v38 = vld [vmem:[#allocation3 + $0x2b8] sm:$0xf0] }
 0x346   :  { %2528 = vmatmul.bf16.gmra.mxu1 %v9967_v16  ;;  %v9970_v16 = vld [vmem:[#allocation19_spill] sm:$0xff]  ;;  %v5437_v29 = vor.u32 %v6610_v58, %v5434_v38  ;;  %v2407_v58 = vadd.f32 %v8466_v55, %v8494_v13 }
 0x347   :  { %5931 = vmatmul.msk.bf16.gmra.mxu2 %vm1382_vm0, %v9968_v15  ;;  %v8554_v46 = vpack.c.bf16 %v3051_v51, %v3043_v28  ;;  %2832 = vmatpush.bf16.msrb.mxu0 %v5469_v26  ;;  %v6546_v49 = vld [vmem:[#allocation3 + $0x9c] sm:$0xf] }
 0x348   :  { %v5178_v12 = vld [vmem:[#allocation3 + $0xb8] sm:$0xf0]  ;;  %v2456_v55 = vadd.f32 %v8440_v43, %v2407_v58 }
 0x349   :  { %9969 = vst [vmem:[#allocation59_spill] sm:$0xff] %v8554_v46  ;;  %2783 = vmatpush.bf16.msrb.mxu3 %v5213_v36  ;;  %v5181_v52 = vor.u32 %v6546_v49, %v5178_v12  ;;  %v5402_v20 = vld [vmem:[#allocation3 + $0x278] sm:$0xf0] }
 0x34a   :  { %v2372_v33 = vpop.f32.mrf.mxu2  ;;  %2616 = vmatmul.bf16.gmra.mxu3 %v9970_v16  ;;  %v8560_v14 = vpop.f32.mrf.mxu0  ;;  %v6538_v36 = vld [vmem:[#allocation3 + $0x5c] sm:$0xf] }
 0x34b   :  { %v2373_v4 = vadd.f32 %v2372_v33, %v8474_v17  ;;  %v2335_v28 = vpop.f32.mrf.mxu1  ;;  %2833 = vmatpush.bf16.msrb.mxu0 %v5437_v29  ;;  %v6602_v17 = vld [vmem:[#allocation3 + $0x25c] sm:$0xf] }
 0x34c   :  { %v8563_v51 = vadd.f32 %v2335_v28, %v8500_v11  ;;  %v5405_v33 = vor.u32 %v6602_v17, %v5402_v20  ;;  %v5146_v11 = vld [vmem:[#allocation3 + $0x78] sm:$0xf0] }
 0x34d   :  { %v8568_v26 = vpop.f32.mrf.mxu3  ;;  %2784 = vmatpush.bf16.msrb.mxu3 %v5181_v52  ;;  %v6594_v38 = vld [vmem:[#allocation3 + $0x21c] sm:$0xf]  ;;  %v5149_v18 = vor.u32 %v6538_v36, %v5146_v11  ;;  %v3059_v12 = vmax.f32 %v2373_v4, 0.0 }
 0x34e   :  { %v5373_v16 = vor.u32 %v6594_v38, %v5370_v47  ;;  %v6530_v20 = vld [vmem:[#allocation3 + $0x1c] sm:$0xf]  ;;  %v2412_v47 = vadd.f32 %v8502_v56, %v8494_v13 }
 0x34f   :  { %2834 = vmatpush.bf16.msrb.mxu0 %v5405_v33  ;;  %v5114_v33 = vld [vmem:[#allocation3 + $0x38] sm:$0xf0] }
 0x350   :  { %v5117_v36 = vor.u32 %v6530_v20, %v5114_v33 }
 0x351   :  { %2785 = vmatpush.bf16.msrb.mxu3 %v5149_v18 }
 0x352   :  { %v2374_v28 = vpop.f32.mrf.mxu2  ;;  %v8573_v46 = vpop.f32.mrf.mxu0 }
 0x353   :  { %v2375_v29 = vadd.f32 %v2374_v28, %v8497_v8  ;;  %v2494_v49 = vpop.f32.mrf.mxu1  ;;  %2835 = vmatpush.bf16.msrb.mxu0 %v5373_v16 }
 0x354   :  { %v2495_v52 = vadd.f32 %v2494_v49, %v8513_v62  ;;  %v2409_v62 = vadd.f32 %v8479_v59, %v8494_v13 }
 0x355   :  { %v3067_v17 = vmax.f32 %v2375_v29, 0.0  ;;  %v8577_v15 = vpop.f32.mrf.mxu3  ;;  %2670 = vmatmul.bf16.gmra.mxu0 %v7267_v19  ;;  %2786 = vmatpush.bf16.msrb.mxu3 %v5117_v36 }
 0x356   :  { %2689 = vmatmul.bf16.vlgmr.msrb.gmra.mxu1 %v7229_v6  ;;  %v2458_v38 = vadd.f32 %v8459_v54, %v2409_v62  ;;  %v2461_v54 = vadd.f32 %v8471_v25, %v2412_v47  ;;  %v2417_v25 = vadd.f32 %v8535_v60, %v8494_v13  ;;  %v2419_v60 = vadd.f32 %v8548_v44, %v8494_v13 }
 0x357   :  { %5932 = vmatmul.msk.bf16.gmra.mxu2 %vm1382_vm0, %v7174_v45  ;;  %v8583_v8 = vpack.c.bf16 %v3067_v17, %v3059_v12 }
 0x359   :  { %9971 = vst [vmem:[#allocation60_spill] sm:$0xff] %v8583_v8 }
 0x35a   :  { %v2377_v43 = vpop.f32.mrf.mxu2  ;;  %2621 = vmatmul.bf16.gmra.mxu3 %v9880_v21  ;;  %v8589_v4 = vpop.f32.mrf.mxu0 }
 0x35b   :  { %v2378_v16 = vadd.f32 %v2377_v43, %v8510_v31  ;;  %v2496_v58 = vpop.f32.mrf.mxu1 }
 0x35c   :  { %v2497_v11 = vadd.f32 %v2496_v58, %v8533_v0 }
 0x35d   :  { %v8593_v28 = vpop.f32.mrf.mxu3  ;;  %v3075_v49 = vmax.f32 %v2378_v16, 0.0 }
 0x362   :  { %v2379_v18 = vpop.f32.mrf.mxu2  ;;  %v8598_v29 = vpop.f32.mrf.mxu0 }
 0x363   :  { %v2380_v59 = vadd.f32 %v2379_v18, %v8530_v50  ;;  %v2499_v31 = vpop.f32.mrf.mxu1  ;;  %v2414_v50 = vadd.f32 %v8515_v39, %v8494_v13 }
 0x364   :  { %v2500_v17 = vadd.f32 %v2499_v31, %v8546_v34 }
 0x365   :  { %v3083_v12 = vmax.f32 %v2380_v59, 0.0  ;;  %v8601_v20 = vpop.f32.mrf.mxu3  ;;  %2675 = vmatmul.bf16.gmra.mxu0 %v9884_v37  ;;  %v2463_v43 = vadd.f32 %v8491_v24, %v2414_v50 }
 0x366   :  { %2694 = vmatmul.bf16.gmra.mxu1 %v9886_v41 }
 0x367   :  { %5933 = vmatmul.msk.bf16.gmra.mxu2 %vm1382_vm0, %v9885_v27  ;;  %v8608_v56 = vpack.c.bf16 %v3083_v12, %v3075_v49  ;;  %v2466_v49 = vadd.f32 %v8507_v53, %v2417_v25 }
 0x369   :  { %9972 = vst [vmem:[#allocation61_spill] sm:$0xff] %v8608_v56 }
 0x36a   :  { %v2382_v0 = vpop.f32.mrf.mxu2  ;;  %2626 = vmatmul.bf16.gmra.mxu3 %v9888_v32  ;;  %v8614_v34 = vpop.f32.mrf.mxu0 }
 0x36b   :  { %v2383_v33 = vadd.f32 %v2382_v0, %v8543_v10  ;;  %v2501_v36 = vpop.f32.mrf.mxu1 }
 0x36c   :  { %v2502_v62 = vadd.f32 %v2501_v36, %v8566_v61 }
 0x36d   :  { %v8618_v16 = vpop.f32.mrf.mxu3  ;;  %v3091_v47 = vmax.f32 %v2383_v33, 0.0  ;;  %v2422_v33 = vadd.f32 %v8568_v26, %v8494_v13  ;;  %v2424_v26 = vadd.f32 %v8577_v15, %v8494_v13 }
 0x372   :  { %v2384_v58 = vpop.f32.mrf.mxu2  ;;  %v8623_v18 = vpop.f32.mrf.mxu0 }
 0x373   :  { %v2385_v39 = vadd.f32 %v2384_v58, %v8563_v51  ;;  %v2504_v10 = vpop.f32.mrf.mxu1 }
 0x374   :  { %v8625_v31 = vadd.f32 %v2504_v10, %v2456_v55  ;;  %v8653_v10 = vadd.f32 %v8540_v40, %v2422_v33 }
 0x375   :  { %v3099_v59 = vmax.f32 %v2385_v39, 0.0  ;;  %v8628_v61 = vpop.f32.mrf.mxu3  ;;  %2836 = vmatmul.bf16.vlgmr.msrb.gmra.mxu0 %v9891_v63  ;;  %v2468_v63 = vadd.f32 %v8527_v48, %v2419_v60 }
 0x376   :  { %2699 = vmatmul.bf16.gmra.mxu1 %v9892_v23 }
 0x377   :  { %5934 = vmatmul.msk.bf16.vlgmr.msrb.gmra.mxu2 %vm1382_vm0, %v9893_v1  ;;  %v8634_v24 = vpack.c.bf16 %v3099_v59, %v3091_v47 }
 0x379   :  { %9973 = vst [vmem:[#allocation62_spill] sm:$0xff] %v8634_v24 }
 0x37a   :  { %v2543_v51 = vpop.f32.mrf.mxu2  ;;  %2787 = vmatmul.bf16.vlgmr.msrb.gmra.mxu3 %v9895_v42  ;;  %v8639_v55 = vpop.f32.mrf.mxu0 }
 0x37b   :  { %v2544_v12 = vadd.f32 %v2543_v51, %v2495_v52  ;;  %v2506_v53 = vpop.f32.mrf.mxu1  ;;  %v2427_v51 = vadd.f32 %v8593_v28, %v8494_v13  ;;  %v6722_v28 = vld [vmem:[#allocation3 + $0x61c] sm:$0xf] }
 0x37c   :  { %v8641_v50 = vadd.f32 %v2506_v53, %v2458_v38 }
 0x37d   :  { %v8644_v0 = vpop.f32.mrf.mxu3  ;;  %v2980_v52 = vmax.f32 %v2544_v12, 0.0 }
 0x382   :  { %v2545_v36 = vpop.f32.mrf.mxu2  ;;  %v8648_v58 = vpop.f32.mrf.mxu0 }
 0x383   :  { %v2546_v25 = vadd.f32 %v2545_v36, %v2497_v11  ;;  %v2509_v44 = vpop.f32.mrf.mxu1 }
 0x384   :  { %v8650_v42 = vadd.f32 %v2509_v44, %v2461_v54 }
 0x385   :  { %v2988_v39 = vmax.f32 %v2546_v25, 0.0  ;;  %v8655_v38 = vpop.f32.mrf.mxu3  ;;  %2841 = vmatmul.bf16.gmra.mxu0 %v9914_v3  ;;  %v8671_v3 = vadd.f32 %v8560_v14, %v2424_v26  ;;  %v6714_v25 = vld [vmem:[#allocation3 + $0x5dc] sm:$0xf] }
 0x386   :  { %2704 = vmatmul.bf16.gmra.mxu1 %v9916_v22  ;;  %v5850_v14 = vld [vmem:[#allocation3 + $0x5f8] sm:$0xf0] }
 0x387   :  { %v8658_v48 = vpack.c.bf16 %v2988_v39, %v2980_v52  ;;  %5935 = vmatmul.msk.bf16.gmra.mxu2 %vm1382_vm0, %v9935_v5  ;;  %v5853_v52 = vor.u32 %v6714_v25, %v5850_v14  ;;  %v6706_v26 = vld [vmem:[#allocation3 + $0x59c] sm:$0xf] }
 0x388   :  { %v6690_v14 = vld [vmem:[#allocation3 + $0x51c] sm:$0xf] }
 0x389   :  { %9974 = vst [vmem:[#allocation63_spill] sm:$0xff] %v8658_v48  ;;  %2877 = vmatpush.bf16.msra.mxu1 %v5853_v52 }
 0x38a   :  { %v2548_v11 = vpop.f32.mrf.mxu2  ;;  %2792 = vmatmul.bf16.gmra.mxu3 %v9936_v9  ;;  %v8666_v40 = vpop.f32.mrf.mxu0 }
 0x38b   :  { %v2549_v54 = vadd.f32 %v2548_v11, %v2500_v17  ;;  %v2511_v47 = vpop.f32.mrf.mxu1  ;;  %v5818_v11 = vld [vmem:[#allocation3 + $0x5b8] sm:$0xf0] }
 0x38c   :  { %v8668_v59 = vadd.f32 %v2511_v47, %v2463_v43  ;;  %v8682_v43 = vadd.f32 %v8573_v46, %v2427_v51  ;;  %v2429_v46 = vadd.f32 %v8601_v20, %v8494_v13  ;;  %v5786_v20 = vld [vmem:[#allocation3 + $0x578] sm:$0xf0] }
 0x38d   :  { %v8673_v60 = vpop.f32.mrf.mxu3  ;;  %v2996_v33 = vmax.f32 %v2549_v54, 0.0 }
 0x392   :  { %v2550_v12 = vpop.f32.mrf.mxu2  ;;  %v8677_v15 = vpop.f32.mrf.mxu0 }
 0x393   :  { %v2551_v53 = vadd.f32 %v2550_v12, %v2502_v62  ;;  %v2514_v17 = vpop.f32.mrf.mxu1  ;;  %v5882_v62 = vld [vmem:[#allocation3 + $0x638] sm:$0xf0] }
 0x394   :  { %v8679_v36 = vadd.f32 %v2514_v17, %v2466_v49  ;;  %v5885_v49 = vor.u32 %v6722_v28, %v5882_v62  ;;  %v8701_v17 = vadd.f32 %v8589_v4, %v2429_v46 }
 0x395   :  { %v3004_v9 = vmax.f32 %v2551_v53, 0.0  ;;  %v8684_v44 = vpop.f32.mrf.mxu3  ;;  %2846 = vmatmul.bf16.gmra.mxu0 %v9937_v30  ;;  %v5821_v30 = vor.u32 %v6706_v26, %v5818_v11 }
 0x396   :  { %2709 = vmatmul.bf16.gmra.mxu1 %v9920_v7  ;;  %2933 = vmatpush.bf16.msra.mxu2 %v5885_v49 }
 0x397   :  { %5936 = vmatmul.msk.bf16.gmra.mxu2 %vm1382_vm0, %v9955_v35  ;;  %v8690_v39 = vpack.c.bf16 %v3004_v9, %v2996_v33  ;;  %2878 = vmatpush.bf16.msra.mxu1 %v5821_v30  ;;  %v6698_v33 = vld [vmem:[#allocation3 + $0x55c] sm:$0xf] }
 0x398   :  { %v5789_v25 = vor.u32 %v6698_v33, %v5786_v20  ;;  %v9977_v33 = vld [vmem:[#allocation13_spill] sm:$0xff]  ;;  %v5690_v20 = vld [vmem:[#allocation3 + $0x4b8] sm:$0xf0] }
 0x399   :  { %9975 = vst [vmem:[#allocation64_spill] sm:$0xff] %v8690_v39 }
 0x39a   :  { %v2553_v54 = vpop.f32.mrf.mxu2  ;;  %2797 = vmatmul.bf16.gmra.mxu3 %v9905_v2  ;;  %v8696_v51 = vpop.f32.mrf.mxu0  ;;  %v5754_v2 = vld [vmem:[#allocation3 + $0x538] sm:$0xf0] }
 0x39b   :  { %v2554_v47 = vadd.f32 %v2553_v54, %v8625_v31  ;;  %v2516_v12 = vpop.f32.mrf.mxu1  ;;  %2879 = vmatpush.bf16.msra.mxu1 %v5789_v25  ;;  %v2432_v31 = vadd.f32 %v8618_v16, %v8494_v13  ;;  %v5757_v28 = vor.u32 %v6690_v14, %v5754_v2  ;;  %v6682_v54 = vld [vmem:[#allocation3 + $0x4dc] sm:$0xf]  ;;  %v9979_v2 = vld [vmem:[#allocation25_spill] sm:$0xff] }
 0x39c   :  { %v8698_v53 = vadd.f32 %v2516_v12, %v2468_v63  ;;  %v5722_v16 = vld [vmem:[#allocation3 + $0x4f8] sm:$0xf0] }
 0x39d   :  { %v8703_v9 = vpop.f32.mrf.mxu3  ;;  %v3012_v4 = vmax.f32 %v2554_v47, 0.0  ;;  %v8714_v11 = vadd.f32 %v8598_v29, %v2432_v31  ;;  %v5725_v12 = vor.u32 %v6682_v54, %v5722_v16  ;;  %v6674_v29 = vld [vmem:[#allocation3 + $0x49c] sm:$0xf] }
 0x39e   :  { %v5693_v31 = vor.u32 %v6674_v29, %v5690_v20  ;;  %v6658_v16 = vld [vmem:[#allocation3 + $0x41c] sm:$0xf] }
 0x39f   :  { %2880 = vmatpush.bf16.msra.mxu1 %v5757_v28  ;;  %v8733_v28 = vld [vmem:[%s9730_s2] sm:$0xff] }
 0x3a2   :  { %v2555_v52 = vpop.f32.mrf.mxu2  ;;  %v8708_v63 = vpop.f32.mrf.mxu0 }
 0x3a3   :  { %v2556_v62 = vadd.f32 %v2555_v52, %v8641_v50  ;;  %v2519_v49 = vpop.f32.mrf.mxu1  ;;  %v9976_v50 = vld [vmem:[#allocation36_spill] sm:$0xff]  ;;  %2881 = vmatpush.bf16.msra.mxu1 %v5725_v12  ;;  %v5626_v12 = vld [vmem:[#allocation3 + $0x438] sm:$0xf0] }
 0x3a4   :  { %v8711_v26 = vadd.f32 %v2519_v49, %v8653_v10  ;;  %v2434_v10 = vadd.f32 %v8628_v61, %v8494_v13  ;;  %v5658_v49 = vld [vmem:[#allocation3 + $0x478] sm:$0xf0]  ;;  %v5629_v20 = vor.u32 %v6658_v16, %v5626_v12  ;;  %v9982_v12 = vld [vmem:[#allocation17_spill] sm:$0xff] }
 0x3a5   :  { %v3020_v46 = vmax.f32 %v2556_v62, 0.0  ;;  %v8716_v30 = vpop.f32.mrf.mxu3  ;;  %2851 = vmatmul.bf16.gmra.mxu0 %v7200_v57  ;;  %v8736_v62 = vperm.slane %v8733_v28, 6 }
 0x3a6   :  { %2714 = vmatmul.bf16.gmra.mxu1 %v9976_v50  ;;  %v8742_v61 = vadd.f32 %v8614_v34, %v2434_v10 }
 0x3a7   :  { %5937 = vmatmul.msk.bf16.gmra.mxu2 %vm1382_vm0, %v9977_v33  ;;  %v8722_v47 = vpack.c.bf16 %v3020_v46, %v3012_v4  ;;  %2882 = vmatpush.bf16.msra.mxu1 %v5693_v31  ;;  %v2593_v54 = vadd.f32 %v8644_v0, %v8736_v62  ;;  %v6758_v0 = vld [vmem:[#allocation6 + $0xf4] sm:$0xf0] }
 0x3a9   :  { %9978 = vst [vmem:[#allocation36_spill] sm:$0xff] %v8722_v47  ;;  %v9989_v47 = vld [vmem:[#allocation19_spill] sm:$0xff] }
 0x3aa   :  { %v2558_v25 = vpop.f32.mrf.mxu2  ;;  %2802 = vmatmul.bf16.gmra.mxu3 %v9979_v2  ;;  %v8728_v57 = vpop.f32.mrf.mxu0 }
 0x3ab   :  { %v2559_v14 = vadd.f32 %v2558_v25, %v8650_v42  ;;  %v2521_v52 = vpop.f32.mrf.mxu1  ;;  %v6666_v42 = vld [vmem:[#allocation3 + $0x45c] sm:$0xf] }
 0x3ac   :  { %v8739_v13 = vadd.f32 %v2521_v52, %v8671_v3  ;;  %v5661_v46 = vor.u32 %v6666_v42, %v5658_v49  ;;  %v8755_v52 = vadd.f32 %v8623_v18, %v2593_v54  ;;  %v6072_v42 = vld [vmem:[#allocation6 + $0xf0] sm:$0xf]  ;;  %v6742_v54 = vld [vmem:[#allocation6 + $0x74] sm:$0xf0] }
 0x3ad   :  { %v8744_v4 = vpop.f32.mrf.mxu3  ;;  %v3028_v34 = vmax.f32 %v2559_v14, 0.0  ;;  %v6073_v16 = vor.u32 %v6758_v0, %v6072_v42  ;;  %v6008_v18 = vld [vmem:[#allocation6 + $0x70] sm:$0xf]  ;;  %v9984_v42 = vld [vmem:[#allocation15_spill] sm:$0xff] }
 0x3ae   :  { %2883 = vmatpush.bf16.msra.mxu1 %v5661_v46  ;;  %v9980_v46 = vld [vmem:[#allocation28_spill] sm:$0xff] }
 0x3af   :  { %3990 = vmatpush.bf16.msra.mxu0 %v6073_v16  ;;  %v6740_v16 = vld [vmem:[#allocation6 + $0x64] sm:$0xf0] }
 0x3b2   :  { %v2560_v29 = vpop.f32.mrf.mxu2  ;;  %v8749_v3 = vpop.f32.mrf.mxu0  ;;  %2884 = vmatpush.bf16.msra.mxu1 %v5629_v20 }
 0x3b3   :  { %v2561_v25 = vadd.f32 %v2560_v29, %v8668_v59  ;;  %v2524_v31 = vpop.f32.mrf.mxu1  ;;  %v9981_v59 = vld [vmem:[#allocation38_spill] sm:$0xff]  ;;  %v6064_v29 = vld [vmem:[#allocation6 + $0xe0] sm:$0xf] }
 0x3b4   :  { %v8752_v2 = vadd.f32 %v2524_v31, %v8682_v43  ;;  %v2595_v43 = vadd.f32 %v8655_v38, %v8736_v62  ;;  %v6756_v31 = vld [vmem:[#allocation6 + $0xe4] sm:$0xf0] }
 0x3b5   :  { %v3036_v10 = vmax.f32 %v2561_v25, 0.0  ;;  %v8757_v49 = vpop.f32.mrf.mxu3  ;;  %2856 = vmatmul.bf16.gmra.mxu0 %v9980_v46  ;;  %v6009_v25 = vor.u32 %v6742_v54, %v6008_v18  ;;  %v6065_v24 = vor.u32 %v6756_v31, %v6064_v29  ;;  %v2598_v29 = vadd.f32 %v8673_v60, %v8736_v62 }
 0x3b6   :  { %2719 = vmatmul.bf16.gmra.mxu1 %v9981_v59  ;;  %v8775_v38 = vadd.f32 %v8639_v55, %v2595_v43  ;;  %v6752_v43 = vld [vmem:[#allocation6 + $0xc4] sm:$0xf0] }
 0x3b7   :  { %5938 = vmatmul.msk.bf16.gmra.mxu2 %vm1382_vm0, %v9982_v12  ;;  %v8763_v14 = vpack.c.bf16 %v3036_v10, %v3028_v34  ;;  %3941 = vmatpush.bf16.msra.mxu3 %v6009_v25  ;;  %v6000_v10 = vld [vmem:[#allocation6 + $0x60] sm:$0xf]  ;;  %v5992_v25 = vld [vmem:[#allocation6 + $0x50] sm:$0xf]  ;;  %v8788_v60 = vadd.f32 %v8648_v58, %v2598_v29  ;;  %v2600_v58 = vadd.f32 %v8684_v44, %v8736_v62  ;;  %v6734_v29 = vld [vmem:[#allocation6 + $0x34] sm:$0xf0] }
 0x3b8   :  { %3991 = vmatpush.bf16.msra.mxu0 %v6065_v24  ;;  %v6001_v54 = vor.u32 %v6740_v16, %v6000_v10 }
 0x3b9   :  { %9983 = vst [vmem:[#allocation13_spill] sm:$0xff] %v8763_v14  ;;  %v8808_v44 = vadd.f32 %v8666_v40, %v2600_v58  ;;  %v6744_v58 = vld [vmem:[#allocation6 + $0x84] sm:$0xf0] }
 0x3ba   :  { %v2563_v20 = vpop.f32.mrf.mxu2  ;;  %2807 = vmatmul.bf16.gmra.mxu3 %v9984_v42  ;;  %v8769_v0 = vpop.f32.mrf.mxu0 }
 0x3bb   :  { %v2564_v46 = vadd.f32 %v2563_v20, %v8679_v36  ;;  %v2526_v56 = vpop.f32.mrf.mxu1  ;;  %v6056_v36 = vld [vmem:[#allocation6 + $0xd0] sm:$0xf]  ;;  %v6754_v20 = vld [vmem:[#allocation6 + $0xd4] sm:$0xf0]  ;;  %3942 = vmatpush.bf16.msra.mxu3 %v6001_v54 }
 0x3bc   :  { %v8772_v34 = vadd.f32 %v2526_v56, %v8701_v17  ;;  %v6057_v42 = vor.u32 %v6754_v20, %v6056_v36  ;;  %v6738_v56 = vld [vmem:[#allocation6 + $0x54] sm:$0xf0]  ;;  %v6048_v17 = vld [vmem:[#allocation6 + $0xc0] sm:$0xf] }
 0x3bd   :  { %v8777_v18 = vpop.f32.mrf.mxu3  ;;  %v5993_v55 = vor.u32 %v6738_v56, %v5992_v25  ;;  %v6049_v14 = vor.u32 %v6752_v43, %v6048_v17  ;;  %v3044_v16 = vmax.f32 %v2564_v46, 0.0  ;;  %v5984_v20 = vld [vmem:[#allocation6 + $0x40] sm:$0xf]  ;;  %v9985_v56 = vld [vmem:[#allocation29_spill] sm:$0xff]  ;;  %v6750_v17 = vld [vmem:[#allocation6 + $0xb4] sm:$0xf0] }
 0x3be   :  { %3992 = vmatpush.bf16.msra.mxu0 %v6057_v42  ;;  %v6736_v42 = vld [vmem:[#allocation6 + $0x44] sm:$0xf0] }
 0x3bf   :  { %3943 = vmatpush.bf16.msra.mxu3 %v5993_v55  ;;  %v9986_v43 = vld [vmem:[#allocation40_spill] sm:$0xff]  ;;  %v9987_v46 = vld [vmem:[#allocation21_spill] sm:$0xff] }
 0x3c2   :  { %v2565_v31 = vpop.f32.mrf.mxu2  ;;  %v8782_v8 = vpop.f32.mrf.mxu0  ;;  %3993 = vmatpush.bf16.msra.mxu0 %v6049_v14  ;;  %v5976_v14 = vld [vmem:[#allocation6 + $0x30] sm:$0xf] }
 0x3c3   :  { %v2566_v24 = vadd.f32 %v2565_v31, %v8698_v53  ;;  %v2529_v10 = vpop.f32.mrf.mxu1  ;;  %v5985_v53 = vor.u32 %v6736_v42, %v5984_v20  ;;  %v6040_v31 = vld [vmem:[#allocation6 + $0xb0] sm:$0xf]  ;;  %v5977_v20 = vor.u32 %v6734_v29, %v5976_v14  ;;  %v6748_v42 = vld [vmem:[#allocation6 + $0xa4] sm:$0xf0]  ;;  %v6746_v29 = vld [vmem:[#allocation6 + $0x94] sm:$0xf0] }
 0x3c4   :  { %v8785_v54 = vadd.f32 %v2529_v10, %v8714_v11  ;;  %v6041_v11 = vor.u32 %v6750_v17, %v6040_v31  ;;  %v6732_v17 = vld [vmem:[#allocation6 + $0x24] sm:$0xf0] }
 0x3c5   :  { %v3052_v36 = vmax.f32 %v2566_v24, 0.0  ;;  %v8790_v25 = vpop.f32.mrf.mxu3  ;;  %2861 = vmatmul.bf16.gmra.mxu0 %v9985_v56  ;;  %3944 = vmatpush.bf16.msra.mxu3 %v5985_v53  ;;  %v6032_v24 = vld [vmem:[#allocation6 + $0xa0] sm:$0xf] }
 0x3c6   :  { %2724 = vmatmul.bf16.gmra.mxu1 %v9986_v43  ;;  %3994 = vmatpush.bf16.msra.mxu0 %v6041_v11  ;;  %v6033_v31 = vor.u32 %v6748_v42, %v6032_v24  ;;  %v5968_v53 = vld [vmem:[#allocation6 + $0x20] sm:$0xf]  ;;  %v2603_v24 = vadd.f32 %v8703_v9, %v8736_v62 }
 0x3c7   :  { %5939 = vmatmul.msk.bf16.gmra.mxu2 %vm1382_vm0, %v9987_v46  ;;  %v8796_v55 = vpack.c.bf16 %v3052_v36, %v3044_v16  ;;  %v5969_v14 = vor.u32 %v6732_v17, %v5968_v53 }
 0x3c8   :  { %v2652_v9 = vadd.f32 %v8677_v15, %v2603_v24 }
 0x3c9   :  { %9988 = vst [vmem:[#allocation25_spill] sm:$0xff] %v8796_v55  ;;  %3945 = vmatpush.bf16.msra.mxu3 %v5977_v20  ;;  %v6016_v20 = vld [vmem:[#allocation6 + $0x80] sm:$0xf] }
 0x3ca   :  { %v2568_v10 = vpop.f32.mrf.mxu2  ;;  %2812 = vmatmul.bf16.gmra.mxu3 %v9989_v47  ;;  %v8802_v39 = vpop.f32.mrf.mxu0  ;;  %3995 = vmatpush.bf16.msra.mxu0 %v6033_v31  ;;  %v6017_v55 = vor.u32 %v6744_v58, %v6016_v20 }
 0x3cb   :  { %v2569_v56 = vadd.f32 %v2568_v10, %v8711_v26  ;;  %v2531_v16 = vpop.f32.mrf.mxu1  ;;  %v6024_v26 = vld [vmem:[#allocation6 + $0x90] sm:$0xf] }
 0x3cc   :  { %v8805_v36 = vadd.f32 %v2531_v16, %v8742_v61  ;;  %v6025_v47 = vor.u32 %v6746_v29, %v6024_v26  ;;  %v5960_v10 = vld [vmem:[#allocation6 + $0x10] sm:$0xf]  ;;  %v6730_v61 = vld [vmem:[#allocation6 + $0x14] sm:$0xf0]  ;;  %v5952_v29 = vld [vmem:[#allocation6] sm:$0xf] }
 0x3cd   :  { %v8810_v11 = vpop.f32.mrf.mxu3  ;;  %3946 = vmatpush.bf16.msra.mxu3 %v5969_v14  ;;  %v5961_v40 = vor.u32 %v6730_v61, %v5960_v10  ;;  %v3060_v17 = vmax.f32 %v2569_v56, 0.0 }
 0x3ce   :  { %3996 = vmatpush.bf16.msra.mxu0 %v6025_v47  ;;  %v6728_v47 = vld [vmem:[#allocation6 + $0x4] sm:$0xf0] }
 0x3cf   :  { %v5953_v10 = vor.u32 %v6728_v47, %v5952_v29 }
 0x3d1   :  { %3947 = vmatpush.bf16.msra.mxu3 %v5961_v40 }
 0x3d2   :  { %v2570_v42 = vpop.f32.mrf.mxu2  ;;  %v8815_v16 = vpop.f32.mrf.mxu0  ;;  %3997 = vmatpush.bf16.msra.mxu0 %v6017_v55 }
 0x3d3   :  { %v2571_v31 = vadd.f32 %v2570_v42, %v8739_v13  ;;  %v2690_v53 = vpop.f32.mrf.mxu1  ;;  %v2608_v42 = vadd.f32 %v8744_v4, %v8736_v62 }
 0x3d4   :  { %v2691_v14 = vadd.f32 %v2690_v53, %v8755_v52  ;;  %v2605_v52 = vadd.f32 %v8716_v30, %v8736_v62 }
 0x3d5   :  { %v3068_v26 = vmax.f32 %v2571_v31, 0.0  ;;  %v8819_v48 = vpop.f32.mrf.mxu3  ;;  %2866 = vmatmul.bf16.gmra.mxu0 %v7267_v19  ;;  %3948 = vmatpush.bf16.msra.mxu3 %v5953_v10 }
 0x3d6   :  { %2885 = vmatmul.bf16.vlgmr.msra.gmra.mxu1 %v7229_v6  ;;  %v2654_v61 = vadd.f32 %v8696_v51, %v2605_v52  ;;  %v2657_v51 = vadd.f32 %v8708_v63, %v2608_v42  ;;  %v2613_v63 = vadd.f32 %v8777_v18, %v8736_v62 }
 0x3d7   :  { %5940 = vmatmul.msk.bf16.gmra.mxu2 %vm1382_vm0, %v7174_v45  ;;  %v8825_v13 = vpack.c.bf16 %v3068_v26, %v3060_v17 }
 0x3d9   :  { %9990 = vst [vmem:[#allocation28_spill] sm:$0xff] %v8825_v13 }
 0x3da   :  { %v2573_v15 = vpop.f32.mrf.mxu2  ;;  %2817 = vmatmul.bf16.gmra.mxu3 %v9880_v21  ;;  %v8831_v56 = vpop.f32.mrf.mxu0 }
 0x3db   :  { %v2574_v55 = vadd.f32 %v2573_v15, %v8752_v2  ;;  %v2692_v19 = vpop.f32.mrf.mxu1 }
 0x3dc   :  { %v2693_v24 = vadd.f32 %v2692_v19, %v8775_v38 }
 0x3dd   :  { %v8835_v20 = vpop.f32.mrf.mxu3  ;;  %v3076_v58 = vmax.f32 %v2574_v55, 0.0  ;;  %v2662_v55 = vadd.f32 %v8749_v3, %v2613_v63 }
 0x3e2   :  { %v2575_v6 = vpop.f32.mrf.mxu2  ;;  %v8840_v40 = vpop.f32.mrf.mxu0 }
 0x3e3   :  { %v2576_v30 = vadd.f32 %v2575_v6, %v8772_v34  ;;  %v2695_v2 = vpop.f32.mrf.mxu1  ;;  %v2610_v34 = vadd.f32 %v8757_v49, %v8736_v62 }
 0x3e4   :  { %v2696_v31 = vadd.f32 %v2695_v2, %v8788_v60 }
 0x3e5   :  { %v3084_v21 = vmax.f32 %v2576_v30, 0.0  ;;  %v8843_v53 = vpop.f32.mrf.mxu3  ;;  %2871 = vmatmul.bf16.gmra.mxu0 %v9884_v37  ;;  %v2659_v29 = vadd.f32 %v8728_v57, %v2610_v34  ;;  %v9991_v57 = vld [vmem:[#allocation44_spill] sm:$0xff] }
 0x3e6   :  { %2890 = vmatmul.bf16.gmra.mxu1 %v9886_v41 }
 0x3e7   :  { %5941 = vmatmul.msk.bf16.gmra.mxu2 %vm1382_vm0, %v9885_v27  ;;  %v8850_v4 = vpack.c.bf16 %v3084_v21, %v3076_v58 }
 0x3ea   :  { %v2578_v38 = vpop.f32.mrf.mxu2  ;;  %2822 = vmatmul.bf16.gmra.mxu3 %v9888_v32  ;;  %v8856_v60 = vpop.f32.mrf.mxu0 }
 0x3eb   :  { %v2579_v17 = vadd.f32 %v2578_v38, %v8785_v54  ;;  %v2697_v37 = vpop.f32.mrf.mxu1 }
 0x3ec   :  { %v2698_v26 = vadd.f32 %v2697_v37, %v8808_v44 }
 0x3ed   :  { %v8860_v41 = vpop.f32.mrf.mxu3  ;;  %v3092_v52 = vmax.f32 %v2579_v17, 0.0 }
 0x3f2   :  { %v2580_v47 = vpop.f32.mrf.mxu2  ;;  %v8865_v10 = vpop.f32.mrf.mxu0 }
 0x3f3   :  { %v2581_v49 = vadd.f32 %v2580_v47, %v8805_v36  ;;  %v2700_v54 = vpop.f32.mrf.mxu1  ;;  %v2615_v36 = vadd.f32 %v8790_v25, %v8736_v62  ;;  %v9994_v47 = vld [vmem:[#allocation49_spill] sm:$0xff] }
 0x3f4   :  { %v8867_v15 = vadd.f32 %v2700_v54, %v2652_v9  ;;  %v9992_v9 = vld [vmem:[#allocation47_spill] sm:$0xff] }
 0x3f5   :  { %v3100_v32 = vmax.f32 %v2581_v49, 0.0  ;;  %v8870_v44 = vpop.f32.mrf.mxu3  ;;  %3998 = vmatmul.bf16.vlgmr.msra.gmra.mxu0 %v9991_v57  ;;  %v2664_v2 = vadd.f32 %v8769_v0, %v2615_v36  ;;  %v9993_v0 = vld [vmem:[#allocation41_spill] sm:$0xff] }
 0x3f6   :  { %2895 = vmatmul.bf16.gmra.mxu1 %v9892_v23 }
 0x3f7   :  { %5942 = vmatmul.msk.bf16.vlgmr.msra.gmra.mxu2 %vm1382_vm0, %v9893_v1  ;;  %v8876_v18 = vpack.c.bf16 %v3100_v32, %v3092_v52  ;;  %v2618_v1 = vadd.f32 %v8810_v11, %v8736_v62  ;;  %v2620_v11 = vadd.f32 %v8819_v48, %v8736_v62 }
 0x3f9   :  { %v8895_v37 = vadd.f32 %v8782_v8, %v2618_v1  ;;  %v8913_v52 = vadd.f32 %v8802_v39, %v2620_v11  ;;  %v6136_v1 = vld [vmem:[#allocation6 + $0x170] sm:$0xf]  ;;  %v6774_v39 = vld [vmem:[#allocation6 + $0x174] sm:$0xf0]  ;;  %v6772_v11 = vld [vmem:[#allocation6 + $0x164] sm:$0xf0] }
 0x3fa   :  { %v2739_v19 = vpop.f32.mrf.mxu2  ;;  %3949 = vmatmul.bf16.vlgmr.msra.gmra.mxu3 %v9992_v9  ;;  %v8881_v42 = vpop.f32.mrf.mxu0 }
 0x3fb   :  { %v2740_v6 = vadd.f32 %v2739_v19, %v2691_v14  ;;  %v2702_v3 = vpop.f32.mrf.mxu1 }
 0x3fc   :  { %v8883_v30 = vadd.f32 %v2702_v3, %v2654_v61 }
 0x3fd   :  { %v8886_v23 = vpop.f32.mrf.mxu3  ;;  %v2981_v14 = vmax.f32 %v2740_v6, 0.0 }
 0x402   :  { %v2741_v58 = vpop.f32.mrf.mxu2  ;;  %v8890_v34 = vpop.f32.mrf.mxu0 }
 0x403   :  { %v2742_v21 = vadd.f32 %v2741_v58, %v2693_v24  ;;  %v2705_v25 = vpop.f32.mrf.mxu1 }
 0x404   :  { %v8892_v17 = vadd.f32 %v2705_v25, %v2657_v51  ;;  %v6137_v25 = vor.u32 %v6774_v39, %v6136_v1  ;;  %v6112_v1 = vld [vmem:[#allocation6 + $0x140] sm:$0xf]  ;;  %v6768_v39 = vld [vmem:[#allocation6 + $0x144] sm:$0xf0] }
 0x405   :  { %v2989_v38 = vmax.f32 %v2742_v21, 0.0  ;;  %v8897_v61 = vpop.f32.mrf.mxu3  ;;  %4003 = vmatmul.bf16.gmra.mxu0 %v9993_v0  ;;  %v9995_v21 = vld [vmem:[#allocation32_spill] sm:$0xff] }
 0x406   :  { %2900 = vmatmul.bf16.gmra.mxu1 %v9916_v22  ;;  %v2623_v22 = vadd.f32 %v8835_v20, %v8736_v62  ;;  %v6200_v20 = vld [vmem:[#allocation6 + $0x1f0] sm:$0xf] }
 0x407   :  { %v8900_v63 = vpack.c.bf16 %v2989_v38, %v2981_v14  ;;  %5943 = vmatmul.msk.bf16.gmra.mxu2 %vm1382_vm0, %v9935_v5  ;;  %4039 = vmatpush.bf16.msrb.mxu1 %v6137_v25  ;;  %v6128_v38 = vld [vmem:[#allocation6 + $0x160] sm:$0xf] }
 0x40a   :  { %v2744_v24 = vpop.f32.mrf.mxu2  ;;  %3954 = vmatmul.bf16.gmra.mxu3 %v9994_v47  ;;  %v8908_v8 = vpop.f32.mrf.mxu0 }
 0x40b   :  { %v2745_v51 = vadd.f32 %v2744_v24, %v2696_v31  ;;  %v2707_v49 = vpop.f32.mrf.mxu1 }
 0x40c   :  { %v8910_v54 = vadd.f32 %v2707_v49, %v2659_v29  ;;  %v8924_v29 = vadd.f32 %v8815_v16, %v2623_v22  ;;  %v2625_v16 = vadd.f32 %v8843_v53, %v8736_v62  ;;  %v6770_v53 = vld [vmem:[#allocation6 + $0x154] sm:$0xf0] }
 0x40d   :  { %v8915_v32 = vpop.f32.mrf.mxu3  ;;  %v2997_v19 = vmax.f32 %v2745_v51, 0.0  ;;  %v6129_v51 = vor.u32 %v6772_v11, %v6128_v38 }
 0x40f   :  { %4040 = vmatpush.bf16.msrb.mxu1 %v6129_v51 }
 0x412   :  { %v2746_v5 = vpop.f32.mrf.mxu2  ;;  %v8919_v48 = vpop.f32.mrf.mxu0 }
 0x413   :  { %v2747_v36 = vadd.f32 %v2746_v5, %v2698_v26  ;;  %v2710_v31 = vpop.f32.mrf.mxu1  ;;  %v6790_v26 = vld [vmem:[#allocation6 + $0x1f4] sm:$0xf0] }
 0x414   :  { %v8921_v3 = vadd.f32 %v2710_v31, %v2662_v55  ;;  %v6201_v55 = vor.u32 %v6790_v26, %v6200_v20  ;;  %v6120_v31 = vld [vmem:[#allocation6 + $0x150] sm:$0xf]  ;;  %v6113_v20 = vor.u32 %v6768_v39, %v6112_v1 }
 0x415   :  { %v3005_v6 = vmax.f32 %v2747_v36, 0.0  ;;  %v8926_v58 = vpop.f32.mrf.mxu3  ;;  %4008 = vmatmul.bf16.gmra.mxu0 %v9995_v21  ;;  %v8943_v36 = vadd.f32 %v8831_v56, %v2625_v16 }
 0x416   :  { %2905 = vmatmul.bf16.gmra.mxu1 %v9920_v7  ;;  %4088 = vmatpush.bf16.msrb.mxu2 %v6201_v55  ;;  %v9996_v7 = vld [vmem:[#allocation45_spill] sm:$0xff] }
 0x417   :  { %5944 = vmatmul.msk.bf16.gmra.mxu2 %vm1382_vm0, %v9955_v35  ;;  %v8932_v14 = vpack.c.bf16 %v3005_v6, %v2997_v19  ;;  %v6121_v6 = vor.u32 %v6770_v53, %v6120_v31 }
 0x419   :  { %4041 = vmatpush.bf16.msrb.mxu1 %v6121_v6  ;;  %v6096_v6 = vld [vmem:[#allocation6 + $0x120] sm:$0xf] }
 0x41a   :  { %v2749_v24 = vpop.f32.mrf.mxu2  ;;  %3959 = vmatmul.bf16.gmra.mxu3 %v9996_v7  ;;  %v8938_v22 = vpop.f32.mrf.mxu0 }
 0x41b   :  { %v2750_v49 = vadd.f32 %v2749_v24, %v8867_v15  ;;  %v2712_v35 = vpop.f32.mrf.mxu1  ;;  %v2628_v15 = vadd.f32 %v8860_v41, %v8736_v62  ;;  %v6104_v24 = vld [vmem:[#allocation6 + $0x130] sm:$0xf]  ;;  %v6766_v41 = vld [vmem:[#allocation6 + $0x134] sm:$0xf0] }
 0x41c   :  { %v8940_v5 = vadd.f32 %v2712_v35, %v2664_v2  ;;  %v9997_v35 = vld [vmem:[#allocation30_spill] sm:$0xff]  ;;  %v6105_v31 = vor.u32 %v6766_v41, %v6104_v24  ;;  %v6080_v41 = vld [vmem:[#allocation6 + $0x100] sm:$0xf] }
 0x41d   :  { %v8945_v19 = vpop.f32.mrf.mxu3  ;;  %4042 = vmatpush.bf16.msrb.mxu1 %v6113_v20  ;;  %v3013_v56 = vmax.f32 %v2750_v49, 0.0  ;;  %v8956_v11 = vadd.f32 %v8840_v40, %v2628_v15  ;;  %v6788_v49 = vld [vmem:[#allocation6 + $0x1e4] sm:$0xf0]  ;;  %v2630_v40 = vadd.f32 %v8870_v44, %v8736_v62  ;;  %v6088_v44 = vld [vmem:[#allocation6 + $0x110] sm:$0xf] }
 0x41e   :  { %v6764_v15 = vld [vmem:[#allocation6 + $0x124] sm:$0xf0] }
 0x41f   :  { %v6097_v39 = vor.u32 %v6764_v15, %v6096_v6  ;;  %v8979_v62 = vadd.f32 %v8856_v60, %v2630_v40 }
 0x421   :  { %4043 = vmatpush.bf16.msrb.mxu1 %v6105_v31  ;;  %v6760_v31 = vld [vmem:[#allocation6 + $0x104] sm:$0xf0] }
 0x422   :  { %v2751_v25 = vpop.f32.mrf.mxu2  ;;  %v8950_v2 = vpop.f32.mrf.mxu0 }
 0x423   :  { %v2752_v26 = vadd.f32 %v2751_v25, %v8883_v30  ;;  %v2715_v55 = vpop.f32.mrf.mxu1  ;;  %v6192_v30 = vld [vmem:[#allocation6 + $0x1e0] sm:$0xf] }
 0x424   :  { %v8953_v38 = vadd.f32 %v2715_v55, %v8895_v37  ;;  %v6193_v37 = vor.u32 %v6788_v49, %v6192_v30 }
 0x425   :  { %v3021_v16 = vmax.f32 %v2752_v26, 0.0  ;;  %v8958_v51 = vpop.f32.mrf.mxu3  ;;  %4013 = vmatmul.bf16.gmra.mxu0 %v9997_v35  ;;  %4044 = vmatpush.bf16.msrb.mxu1 %v6097_v39  ;;  %v8973_v26 = vperm.slane %v8733_v28, 7  ;;  %v6081_v28 = vor.u32 %v6760_v31, %v6080_v41  ;;  %v6320_v41 = vld [vmem:[#allocation6 + $0x2e0] sm:$0xf] }
 0x426   :  { %2910 = vmatmul.bf16.gmra.mxu1 %v9976_v50  ;;  %4089 = vmatpush.bf16.msrb.mxu2 %v6193_v37  ;;  %v9998_v50 = vld [vmem:[#allocation46_spill] sm:$0xff] }
 0x427   :  { %5945 = vmatmul.msk.bf16.gmra.mxu2 %vm1382_vm0, %v9977_v33  ;;  %v8964_v53 = vpack.c.bf16 %v3021_v16, %v3013_v56  ;;  %v6762_v56 = vld [vmem:[#allocation6 + $0x114] sm:$0xf0]  ;;  %v2789_v24 = vadd.f32 %v8886_v23, %v8973_v26 }
 0x428   :  { %v6822_v23 = vld [vmem:[#allocation6 + $0x2f4] sm:$0xf0] }
 0x429   :  { %v8992_v15 = vadd.f32 %v8865_v10, %v2789_v24  ;;  %v2791_v10 = vadd.f32 %v8897_v61, %v8973_v26  ;;  %v6806_v24 = vld [vmem:[#allocation6 + $0x274] sm:$0xf0] }
 0x42a   :  { %v2754_v1 = vpop.f32.mrf.mxu2  ;;  %3964 = vmatmul.bf16.gmra.mxu3 %v9998_v50  ;;  %v8970_v20 = vpop.f32.mrf.mxu0 }
 0x42b   :  { %v2755_v25 = vadd.f32 %v2754_v1, %v8892_v17  ;;  %v2717_v33 = vpop.f32.mrf.mxu1  ;;  %v6089_v17 = vor.u32 %v6762_v56, %v6088_v44  ;;  %v6328_v1 = vld [vmem:[#allocation6 + $0x2f0] sm:$0xf]  ;;  %v9012_v61 = vadd.f32 %v8881_v42, %v2791_v10  ;;  %v6802_v10 = vld [vmem:[#allocation6 + $0x254] sm:$0xf0] }
 0x42c   :  { %v8976_v55 = vadd.f32 %v2717_v33, %v8913_v52  ;;  %v9999_v33 = vld [vmem:[#allocation26_spill] sm:$0xff]  ;;  %v6329_v44 = vor.u32 %v6822_v23, %v6328_v1  ;;  %v6256_v1 = vld [vmem:[#allocation6 + $0x260] sm:$0xf]  ;;  %v6804_v23 = vld [vmem:[#allocation6 + $0x264] sm:$0xf0] }
 0x42d   :  { %v8981_v16 = vpop.f32.mrf.mxu3  ;;  %4045 = vmatpush.bf16.msrb.mxu1 %v6089_v17  ;;  %v3029_v60 = vmax.f32 %v2755_v25, 0.0  ;;  %v6786_v25 = vld [vmem:[#allocation6 + $0x1d4] sm:$0xf0]  ;;  %v6264_v17 = vld [vmem:[#allocation6 + $0x270] sm:$0xf] }
 0x42e   :  { %4186 = vmatpush.bf16.msrb.mxu0 %v6329_v44 }
 0x431   :  { %4046 = vmatpush.bf16.msrb.mxu1 %v6081_v28  ;;  %v6820_v28 = vld [vmem:[#allocation6 + $0x2e4] sm:$0xf0] }
 0x432   :  { %v2756_v30 = vpop.f32.mrf.mxu2  ;;  %v8986_v52 = vpop.f32.mrf.mxu0 }
 0x433   :  { %v2757_v49 = vadd.f32 %v2756_v30, %v8910_v54  ;;  %v2720_v37 = vpop.f32.mrf.mxu1  ;;  %v6184_v54 = vld [vmem:[#allocation6 + $0x1d0] sm:$0xf]  ;;  %v6265_v30 = vor.u32 %v6806_v24, %v6264_v17  ;;  %v2794_v17 = vadd.f32 %v8915_v32, %v8973_v26  ;;  %v6176_v24 = vld [vmem:[#allocation6 + $0x1c0] sm:$0xf] }
 0x434   :  { %v8989_v6 = vadd.f32 %v2720_v37, %v8924_v29  ;;  %v6185_v29 = vor.u32 %v6786_v25, %v6184_v54  ;;  %v6321_v37 = vor.u32 %v6820_v28, %v6320_v41  ;;  %v6257_v54 = vor.u32 %v6804_v23, %v6256_v1  ;;  %v6818_v25 = vld [vmem:[#allocation6 + $0x2d4] sm:$0xf0]  ;;  %v6248_v41 = vld [vmem:[#allocation6 + $0x250] sm:$0xf]  ;;  %v6816_v28 = vld [vmem:[#allocation6 + $0x2c4] sm:$0xf0] }
 0x435   :  { %v3037_v40 = vmax.f32 %v2757_v49, 0.0  ;;  %v8994_v39 = vpop.f32.mrf.mxu3  ;;  %4018 = vmatmul.bf16.gmra.mxu0 %v9999_v33  ;;  %v10000_v49 = vld [vmem:[#allocation48_spill] sm:$0xff]  ;;  %4137 = vmatpush.bf16.msrb.mxu3 %v6265_v30  ;;  %v6249_v1 = vor.u32 %v6802_v10, %v6248_v41 }
 0x436   :  { %2915 = vmatmul.bf16.gmra.mxu1 %v9981_v59  ;;  %4090 = vmatpush.bf16.msrb.mxu2 %v6185_v29  ;;  %v6304_v30 = vld [vmem:[#allocation6 + $0x2c0] sm:$0xf]  ;;  %v6800_v10 = vld [vmem:[#allocation6 + $0x244] sm:$0xf0] }
 0x437   :  { %5946 = vmatmul.msk.bf16.gmra.mxu2 %vm1382_vm0, %v9982_v12  ;;  %v9000_v56 = vpack.c.bf16 %v3037_v40, %v3029_v60  ;;  %4187 = vmatpush.bf16.msrb.mxu0 %v6321_v37  ;;  %v6305_v23 = vor.u32 %v6816_v28, %v6304_v30  ;;  %v2796_v30 = vadd.f32 %v8926_v58, %v8973_v26  ;;  %v6160_v28 = vld [vmem:[#allocation6 + $0x1a0] sm:$0xf] }
 0x439   :  { %4138 = vmatpush.bf16.msrb.mxu3 %v6257_v54 }
 0x43a   :  { %v2759_v31 = vpop.f32.mrf.mxu2  ;;  %3969 = vmatmul.bf16.gmra.mxu3 %v10000_v49  ;;  %v9006_v12 = vpop.f32.mrf.mxu0 }
 0x43b   :  { %v2760_v59 = vadd.f32 %v2759_v31, %v8921_v3  ;;  %v2722_v60 = vpop.f32.mrf.mxu1  ;;  %v6312_v3 = vld [vmem:[#allocation6 + $0x2d0] sm:$0xf] }
 0x43c   :  { %v9009_v40 = vadd.f32 %v2722_v60, %v8943_v36  ;;  %v6313_v29 = vor.u32 %v6818_v25, %v6312_v3  ;;  %v6784_v36 = vld [vmem:[#allocation6 + $0x1c4] sm:$0xf0] }
 0x43d   :  { %v9014_v44 = vpop.f32.mrf.mxu3  ;;  %v6177_v42 = vor.u32 %v6784_v36, %v6176_v24  ;;  %v3045_v54 = vmax.f32 %v2760_v59, 0.0  ;;  %4139 = vmatpush.bf16.msrb.mxu3 %v6249_v1  ;;  %v6168_v24 = vld [vmem:[#allocation6 + $0x1b0] sm:$0xf]  ;;  %v6782_v36 = vld [vmem:[#allocation6 + $0x1b4] sm:$0xf0] }
 0x43e   :  { %4188 = vmatpush.bf16.msrb.mxu0 %v6313_v29  ;;  %v9025_v29 = vadd.f32 %v8890_v34, %v2794_v17  ;;  %v6169_v41 = vor.u32 %v6782_v36, %v6168_v24  ;;  %v6814_v34 = vld [vmem:[#allocation6 + $0x2b4] sm:$0xf0]  ;;  %v6232_v1 = vld [vmem:[#allocation6 + $0x230] sm:$0xf]  ;;  %v6288_v24 = vld [vmem:[#allocation6 + $0x2a0] sm:$0xf] }
 0x43f   :  { %4091 = vmatpush.bf16.msrb.mxu2 %v6177_v42  ;;  %v6296_v42 = vld [vmem:[#allocation6 + $0x2b0] sm:$0xf]  ;;  %v6812_v36 = vld [vmem:[#allocation6 + $0x2a4] sm:$0xf0] }
 0x440   :  { %v6297_v17 = vor.u32 %v6814_v34, %v6296_v42  ;;  %v9045_v42 = vadd.f32 %v8908_v8, %v2796_v30  ;;  %v6778_v34 = vld [vmem:[#allocation6 + $0x194] sm:$0xf0]  ;;  %v6144_v8 = vld [vmem:[#allocation6 + $0x180] sm:$0xf]  ;;  %v6776_v30 = vld [vmem:[#allocation6 + $0x184] sm:$0xf0] }
 0x442   :  { %v2761_v31 = vpop.f32.mrf.mxu2  ;;  %v9019_v60 = vpop.f32.mrf.mxu0  ;;  %4189 = vmatpush.bf16.msrb.mxu0 %v6305_v23 }
 0x443   :  { %v2762_v37 = vadd.f32 %v2761_v31, %v8940_v5  ;;  %v2725_v3 = vpop.f32.mrf.mxu1  ;;  %v10001_v5 = vld [vmem:[#allocation42_spill] sm:$0xff]  ;;  %v6240_v31 = vld [vmem:[#allocation6 + $0x240] sm:$0xf]  ;;  %4092 = vmatpush.bf16.msrb.mxu2 %v6169_v41  ;;  %v6289_v41 = vor.u32 %v6812_v36, %v6288_v24 }
 0x444   :  { %v9022_v32 = vadd.f32 %v2725_v3, %v8956_v11  ;;  %v6241_v11 = vor.u32 %v6800_v10, %v6240_v31  ;;  %v10002_v31 = vld [vmem:[#allocation50_spill] sm:$0xff] }
 0x445   :  { %v3053_v25 = vmax.f32 %v2762_v37, 0.0  ;;  %v9027_v49 = vpop.f32.mrf.mxu3  ;;  %4023 = vmatmul.bf16.gmra.mxu0 %v10001_v5  ;;  %v6780_v37 = vld [vmem:[#allocation6 + $0x1a4] sm:$0xf0]  ;;  %v6216_v24 = vld [vmem:[#allocation6 + $0x210] sm:$0xf]  ;;  %v10003_v5 = vld [vmem:[#allocation43_spill] sm:$0xff] }
 0x446   :  { %2920 = vmatmul.bf16.gmra.mxu1 %v9986_v43  ;;  %4140 = vmatpush.bf16.msrb.mxu3 %v6241_v11  ;;  %v6161_v3 = vor.u32 %v6780_v37, %v6160_v28  ;;  %v6798_v43 = vld [vmem:[#allocation6 + $0x234] sm:$0xf0]  ;;  %v6152_v11 = vld [vmem:[#allocation6 + $0x190] sm:$0xf]  ;;  %v6224_v28 = vld [vmem:[#allocation6 + $0x220] sm:$0xf] }
 0x447   :  { %5947 = vmatmul.msk.bf16.gmra.mxu2 %vm1382_vm0, %v9987_v46  ;;  %v9033_v59 = vpack.c.bf16 %v3053_v25, %v3045_v54  ;;  %4190 = vmatpush.bf16.msrb.mxu0 %v6297_v17  ;;  %v6233_v25 = vor.u32 %v6798_v43, %v6232_v1  ;;  %v6796_v37 = vld [vmem:[#allocation6 + $0x224] sm:$0xf0]  ;;  %v6810_v43 = vld [vmem:[#allocation6 + $0x294] sm:$0xf0] }
 0x448   :  { %4093 = vmatpush.bf16.msrb.mxu2 %v6161_v3  ;;  %v6225_v1 = vor.u32 %v6796_v37, %v6224_v28 }
 0x44a   :  { %v2764_v23 = vpop.f32.mrf.mxu2  ;;  %3974 = vmatmul.bf16.gmra.mxu3 %v10002_v31  ;;  %v9039_v54 = vpop.f32.mrf.mxu0 }
 0x44b   :  { %v2765_v46 = vadd.f32 %v2764_v23, %v8953_v38  ;;  %v2727_v10 = vpop.f32.mrf.mxu1  ;;  %4141 = vmatpush.bf16.msrb.mxu3 %v6233_v25  ;;  %4191 = vmatpush.bf16.msrb.mxu0 %v6289_v41  ;;  %v6153_v38 = vor.u32 %v6778_v34, %v6152_v11  ;;  %v6280_v23 = vld [vmem:[#allocation6 + $0x290] sm:$0xf]  ;;  %v6145_v25 = vor.u32 %v6776_v30, %v6144_v8  ;;  %v6272_v41 = vld [vmem:[#allocation6 + $0x280] sm:$0xf]  ;;  %v6808_v11 = vld [vmem:[#allocation6 + $0x284] sm:$0xf0] }
 0x44c   :  { %v9042_v58 = vadd.f32 %v2727_v10, %v8979_v62  ;;  %v6281_v3 = vor.u32 %v6810_v43, %v6280_v23  ;;  %v2799_v62 = vadd.f32 %v8945_v19, %v8973_v26  ;;  %v6794_v10 = vld [vmem:[#allocation6 + $0x214] sm:$0xf0]  ;;  %v6273_v37 = vor.u32 %v6808_v11, %v6272_v41  ;;  %v6792_v8 = vld [vmem:[#allocation6 + $0x204] sm:$0xf0] }
 0x44d   :  { %v9047_v17 = vpop.f32.mrf.mxu3  ;;  %4094 = vmatpush.bf16.msrb.mxu2 %v6153_v38  ;;  %v6217_v28 = vor.u32 %v6794_v10, %v6216_v24  ;;  %v3061_v23 = vmax.f32 %v2765_v46, 0.0  ;;  %v10004_v24 = vld [vmem:[#allocation31_spill] sm:$0xff] }
 0x44e   :  { %v2848_v43 = vadd.f32 %v8919_v48, %v2799_v62  ;;  %v10005_v62 = vld [vmem:[#allocation23_spill] sm:$0xff] }
 0x44f   :  { %4142 = vmatpush.bf16.msrb.mxu3 %v6225_v1  ;;  %4192 = vmatpush.bf16.msrb.mxu0 %v6281_v3  ;;  %v6208_v3 = vld [vmem:[#allocation6 + $0x200] sm:$0xf] }
 0x451   :  { %4095 = vmatpush.bf16.msrb.mxu2 %v6145_v25 }
 0x452   :  { %v2766_v36 = vpop.f32.mrf.mxu2  ;;  %v9052_v31 = vpop.f32.mrf.mxu0 }
 0x453   :  { %v2767_v34 = vadd.f32 %v2766_v36, %v8976_v55  ;;  %v2886_v38 = vpop.f32.mrf.mxu1  ;;  %4143 = vmatpush.bf16.msrb.mxu3 %v6217_v28  ;;  %v6209_v55 = vor.u32 %v6792_v8, %v6208_v3  ;;  %4193 = vmatpush.bf16.msrb.mxu0 %v6273_v37  ;;  %v2804_v28 = vadd.f32 %v8981_v16, %v8973_v26 }
 0x454   :  { %v2887_v1 = vadd.f32 %v2886_v38, %v8992_v15  ;;  %v2801_v15 = vadd.f32 %v8958_v51, %v8973_v26 }
 0x455   :  { %v3069_v19 = vmax.f32 %v2767_v34, 0.0  ;;  %v9056_v30 = vpop.f32.mrf.mxu3  ;;  %4028 = vmatmul.bf16.gmra.mxu0 %v10003_v5  ;;  %v2853_v16 = vadd.f32 %v8950_v2, %v2804_v28  ;;  %v2809_v2 = vadd.f32 %v9014_v44, %v8973_v26 }
 0x456   :  { %4047 = vmatmul.bf16.vlgmr.msrb.gmra.mxu1 %v10004_v24 }
 0x457   :  { %5948 = vmatmul.msk.bf16.gmra.mxu2 %vm1382_vm0, %v7174_v45  ;;  %v9062_v36 = vpack.c.bf16 %v3069_v19, %v3061_v23  ;;  %4144 = vmatpush.bf16.msrb.mxu3 %v6209_v55  ;;  %v2850_v45 = vadd.f32 %v8938_v22, %v2801_v15  ;;  %v10007_v22 = vld [vmem:[#allocation35_spill] sm:$0xff] }
 0x45a   :  { %v2769_v48 = vpop.f32.mrf.mxu2  ;;  %3979 = vmatmul.bf16.gmra.mxu3 %v10005_v62  ;;  %v9068_v25 = vpop.f32.mrf.mxu0 }
 0x45b   :  { %v2770_v46 = vadd.f32 %v2769_v48, %v8989_v6  ;;  %v2888_v10 = vpop.f32.mrf.mxu1 }
 0x45c   :  { %v2889_v41 = vadd.f32 %v2888_v10, %v9012_v61  ;;  %v10006_v61 = vld [vmem:[#allocation16_spill] sm:$0xff] }
 0x45d   :  { %v9072_v11 = vpop.f32.mrf.mxu3  ;;  %v3077_v37 = vmax.f32 %v2770_v46, 0.0 }
 0x462   :  { %v2771_v34 = vpop.f32.mrf.mxu2  ;;  %v9077_v38 = vpop.f32.mrf.mxu0 }
 0x463   :  { %v2772_v51 = vadd.f32 %v2771_v34, %v9009_v40  ;;  %v2891_v6 = vpop.f32.mrf.mxu1  ;;  %v2806_v40 = vadd.f32 %v8994_v39, %v8973_v26 }
 0x464   :  { %v2892_v19 = vadd.f32 %v2891_v6, %v9025_v29  ;;  %v10008_v29 = vld [vmem:[#allocation39_spill] sm:$0xff] }
 0x465   :  { %v3085_v23 = vmax.f32 %v2772_v51, 0.0  ;;  %v9080_v3 = vpop.f32.mrf.mxu3  ;;  %4033 = vmatmul.bf16.gmra.mxu0 %v10006_v61 }
 0x466   :  { %4052 = vmatmul.bf16.gmra.mxu1 %v10007_v22 }
 0x467   :  { %5949 = vmatmul.msk.bf16.gmra.mxu2 %vm1382_vm0, %v9885_v27  ;;  %v9087_v8 = vpack.c.bf16 %v3085_v23, %v3077_v37  ;;  %v2855_v27 = vadd.f32 %v8970_v20, %v2806_v40  ;;  %v10010_v20 = vld [vmem:[#allocation14_spill] sm:$0xff]  ;;  %v10011_v40 = vld [vmem:[#allocation51_spill] sm:$0xff] }
 0x46a   :  { %v2774_v55 = vpop.f32.mrf.mxu2  ;;  %3984 = vmatmul.bf16.gmra.mxu3 %v10008_v29  ;;  %v9093_v48 = vpop.f32.mrf.mxu0 }
 0x46b   :  { %v2775_v15 = vadd.f32 %v2774_v55, %v9022_v32  ;;  %v2893_v46 = vpop.f32.mrf.mxu1  ;;  %v2858_v55 = vadd.f32 %v8986_v52, %v2809_v2  ;;  %v10012_v52 = vld [vmem:[#allocation57_spill] sm:$0xff] }
 0x46c   :  { %v2894_v10 = vadd.f32 %v2893_v46, %v9045_v42  ;;  %v10009_v42 = vld [vmem:[#allocation63_spill] sm:$0xff] }
 0x46d   :  { %v9097_v34 = vpop.f32.mrf.mxu3  ;;  %v3093_v32 = vmax.f32 %v2775_v15, 0.0 }
 0x472   :  { %v2776_v28 = vpop.f32.mrf.mxu2  ;;  %v3999_v51 = vpop.f32.mrf.mxu0 }
 0x473   :  { %v2777_v39 = vadd.f32 %v2776_v28, %v9042_v58  ;;  %v2896_v6 = vpop.f32.mrf.mxu1  ;;  %v3295_v58 = vld [vmem:[%s9732_s4] sm:$0x3] }
 0x474   :  { %v9102_v23 = vadd.f32 %v2896_v6, %v2848_v43  ;;  %v2811_v43 = vadd.f32 %v9027_v49, %v8973_v26  ;;  %v9118_v28 = vperm.slane %v3295_v58, 0 }
 0x475   :  { %v3101_v37 = vmax.f32 %v2777_v39, 0.0  ;;  %v9105_v29 = vpop.f32.mrf.mxu3  ;;  %4194 = vmatmul.bf16.vlgmr.msrb.gmra.mxu0 %v10009_v42 }
 0x476   :  { %4057 = vmatmul.bf16.gmra.mxu1 %v10010_v20  ;;  %v2814_v20 = vadd.f32 %v9047_v17, %v8973_v26 }
 0x477   :  { %4096 = vmatmul.bf16.vlgmr.msrb.gmra.mxu2 %v10011_v40  ;;  %v9110_v44 = vpack.c.bf16 %v3101_v37, %v3093_v32  ;;  %v9123_v32 = vadd.f32 %v9006_v12, %v2811_v43  ;;  %v10013_v43 = vld [vmem:[#allocation64_spill] sm:$0xff] }
 0x47a   :  { %v2935_v15 = vpop.f32.mrf.mxu2  ;;  %4145 = vmatmul.bf16.vlgmr.msrb.gmra.mxu3 %v10012_v52  ;;  %v4001_v2 = vpop.f32.mrf.mxu0 }
 0x47b   :  { %v2936_v46 = vadd.f32 %v2935_v15, %v2887_v1  ;;  %v2898_v39 = vpop.f32.mrf.mxu1 }
 0x47c   :  { %v9120_v6 = vadd.f32 %v2898_v39, %v2850_v45  ;;  %v9133_v45 = vadd.f32 %v9019_v60, %v2814_v20  ;;  %v10016_v60 = vld [vmem:[#allocation12_spill] sm:$0xff] }
 0x47d   :  { %v3950_v37 = vpop.f32.mrf.mxu3  ;;  %v2982_v58 = vmax.f32 %v2936_v46, 0.0 }
 0x47e   :  { %v3951_v40 = vadd.f32 %v3950_v37, %v9118_v28 }
 0x480   :  { %v9128_v49 = vadd.f32 %v3999_v51, %v3951_v40  ;;  %v10014_v51 = vld [vmem:[#allocation22_spill] sm:$0xff]  ;;  %v10015_v40 = vld [vmem:[#allocation37_spill] sm:$0xff] }
 0x482   :  { %v2937_v1 = vpop.f32.mrf.mxu2  ;;  %v4004_v52 = vpop.f32.mrf.mxu0 }
 0x483   :  { %v2938_v15 = vadd.f32 %v2937_v1, %v2889_v41  ;;  %v2901_v42 = vpop.f32.mrf.mxu1  ;;  %v2816_v41 = vadd.f32 %v9056_v30, %v8973_v26 }
 0x484   :  { %v9130_v61 = vadd.f32 %v2901_v42, %v2853_v16 }
 0x485   :  { %v2990_v22 = vmax.f32 %v2938_v15, 0.0  ;;  %v3952_v12 = vpop.f32.mrf.mxu3  ;;  %4199 = vmatmul.bf16.gmra.mxu0 %v10013_v43 }
 0x486   :  { %v3953_v17 = vadd.f32 %v3952_v12, %v9118_v28  ;;  %4062 = vmatmul.bf16.gmra.mxu1 %v10014_v51  ;;  %v2819_v12 = vadd.f32 %v9072_v11, %v8973_v26 }
 0x487   :  { %v9136_v39 = vpack.c.bf16 %v2990_v22, %v2982_v58  ;;  %4101 = vmatmul.bf16.gmra.mxu2 %v10015_v40  ;;  %v9149_v22 = vadd.f32 %v9039_v54, %v2816_v41  ;;  %v6392_v54 = vld [vmem:[#allocation6 + $0x370] sm:$0xf]  ;;  %v6838_v41 = vld [vmem:[#allocation6 + $0x374] sm:$0xf0] }
 0x488   :  { %v9143_v46 = vadd.f32 %v4001_v2, %v3953_v17  ;;  %v6393_v43 = vor.u32 %v6838_v41, %v6392_v54 }
 0x48a   :  { %v2940_v16 = vpop.f32.mrf.mxu2  ;;  %4150 = vmatmul.bf16.gmra.mxu3 %v10016_v60  ;;  %v4006_v20 = vpop.f32.mrf.mxu0  ;;  %4235 = vmatpush.bf16.msra.mxu1 %v6393_v43 }
 0x48b   :  { %v2941_v42 = vadd.f32 %v2940_v16, %v2892_v19  ;;  %v2903_v37 = vpop.f32.mrf.mxu1 }
 0x48c   :  { %v9146_v1 = vadd.f32 %v2903_v37, %v2855_v27  ;;  %v9159_v27 = vadd.f32 %v9052_v31, %v2819_v12  ;;  %v2821_v31 = vadd.f32 %v9080_v3, %v8973_v26  ;;  %v6384_v12 = vld [vmem:[#allocation6 + $0x360] sm:$0xf]  ;;  %v6376_v3 = vld [vmem:[#allocation6 + $0x350] sm:$0xf] }
 0x48d   :  { %v3955_v15 = vpop.f32.mrf.mxu3  ;;  %v2998_v60 = vmax.f32 %v2941_v42, 0.0  ;;  %v6854_v42 = vld [vmem:[#allocation6 + $0x3f4] sm:$0xf0] }
 0x48e   :  { %v3956_v58 = vadd.f32 %v3955_v15, %v9118_v28  ;;  %v10017_v15 = vld [vmem:[#allocation36_spill] sm:$0xff] }
 0x490   :  { %v9154_v30 = vadd.f32 %v4004_v52, %v3956_v58  ;;  %v10018_v52 = vld [vmem:[#allocation20_spill] sm:$0xff]  ;;  %v6456_v58 = vld [vmem:[#allocation6 + $0x3f0] sm:$0xf] }
 0x492   :  { %v2942_v2 = vpop.f32.mrf.mxu2  ;;  %v4009_v19 = vpop.f32.mrf.mxu0 }
 0x493   :  { %v2943_v17 = vadd.f32 %v2942_v2, %v2894_v10  ;;  %v2906_v16 = vpop.f32.mrf.mxu1  ;;  %v10019_v10 = vld [vmem:[#allocation18_spill] sm:$0xff] }
 0x494   :  { %v9156_v51 = vadd.f32 %v2906_v16, %v2858_v55  ;;  %v6457_v55 = vor.u32 %v6854_v42, %v6456_v58  ;;  %v6368_v42 = vld [vmem:[#allocation6 + $0x340] sm:$0xf] }
 0x495   :  { %v3006_v40 = vmax.f32 %v2943_v17, 0.0  ;;  %v3957_v37 = vpop.f32.mrf.mxu3  ;;  %4204 = vmatmul.bf16.gmra.mxu0 %v10017_v15  ;;  %v6836_v17 = vld [vmem:[#allocation6 + $0x364] sm:$0xf0] }
 0x496   :  { %v3958_v11 = vadd.f32 %v3957_v37, %v9118_v28  ;;  %4067 = vmatmul.bf16.gmra.mxu1 %v10018_v52  ;;  %4284 = vmatpush.bf16.msra.mxu2 %v6457_v55  ;;  %v6385_v41 = vor.u32 %v6836_v17, %v6384_v12  ;;  %v10020_v52 = vld [vmem:[#allocation58_spill] sm:$0xff]  ;;  %v6832_v55 = vld [vmem:[#allocation6 + $0x344] sm:$0xf0] }
 0x497   :  { %4106 = vmatmul.bf16.gmra.mxu2 %v10019_v10  ;;  %v9165_v2 = vpack.c.bf16 %v3006_v40, %v2998_v60  ;;  %v9177_v40 = vadd.f32 %v9068_v25, %v2821_v31  ;;  %v6834_v60 = vld [vmem:[#allocation6 + $0x354] sm:$0xf0] }
 0x498   :  { %v9169_v16 = vadd.f32 %v4006_v20, %v3958_v11  ;;  %4236 = vmatpush.bf16.msra.mxu1 %v6385_v41  ;;  %v6377_v11 = vor.u32 %v6834_v60, %v6376_v3 }
 0x49a   :  { %v2945_v54 = vpop.f32.mrf.mxu2  ;;  %4155 = vmatmul.bf16.gmra.mxu3 %v10020_v52  ;;  %v4011_v10 = vpop.f32.mrf.mxu0 }
 0x49b   :  { %v2946_v37 = vadd.f32 %v2945_v54, %v9102_v23  ;;  %v2908_v15 = vpop.f32.mrf.mxu1  ;;  %v2824_v23 = vadd.f32 %v9097_v34, %v8973_v26  ;;  %v6360_v34 = vld [vmem:[#allocation6 + $0x330] sm:$0xf] }
 0x49c   :  { %v9174_v43 = vadd.f32 %v2908_v15, %v9123_v32  ;;  %4237 = vmatpush.bf16.msra.mxu1 %v6377_v11  ;;  %v6369_v32 = vor.u32 %v6832_v55, %v6368_v42  ;;  %v10023_v55 = vld [vmem:[#allocation52_spill] sm:$0xff] }
 0x49d   :  { %v3960_v20 = vpop.f32.mrf.mxu3  ;;  %v3014_v54 = vmax.f32 %v2946_v37, 0.0  ;;  %v9189_v60 = vadd.f32 %v9077_v38, %v2824_v23  ;;  %v6448_v37 = vld [vmem:[#allocation6 + $0x3e0] sm:$0xf]  ;;  %v2826_v38 = vadd.f32 %v9105_v29, %v8973_v26  ;;  %v6344_v26 = vld [vmem:[#allocation6 + $0x310] sm:$0xf] }
 0x49e   :  { %v3961_v58 = vadd.f32 %v3960_v20, %v9118_v28  ;;  %v6830_v20 = vld [vmem:[#allocation6 + $0x334] sm:$0xf0]  ;;  %v6352_v23 = vld [vmem:[#allocation6 + $0x320] sm:$0xf] }
 0x49f   :  { %v6826_v29 = vld [vmem:[#allocation6 + $0x314] sm:$0xf0] }
 0x4a0   :  { %v9182_v12 = vadd.f32 %v4009_v19, %v3961_v58  ;;  %4238 = vmatpush.bf16.msra.mxu1 %v6369_v32  ;;  %v10021_v19 = vld [vmem:[#allocation13_spill] sm:$0xff]  ;;  %v6361_v58 = vor.u32 %v6830_v20, %v6360_v34 }
 0x4a2   :  { %v2947_v17 = vpop.f32.mrf.mxu2  ;;  %v4014_v25 = vpop.f32.mrf.mxu0 }
 0x4a3   :  { %v2948_v15 = vadd.f32 %v2947_v17, %v9120_v6  ;;  %v2911_v31 = vpop.f32.mrf.mxu1  ;;  %v10022_v6 = vld [vmem:[#allocation33_spill] sm:$0xff] }
 0x4a4   :  { %v9186_v3 = vadd.f32 %v2911_v31, %v9133_v45  ;;  %v6852_v17 = vld [vmem:[#allocation6 + $0x3e4] sm:$0xf0]  ;;  %4239 = vmatpush.bf16.msra.mxu1 %v6361_v58  ;;  %v6345_v58 = vor.u32 %v6826_v29, %v6344_v26  ;;  %v6074_v26 = vld [vmem:[#allocation6 + $0xf8] sm:$0xf0] }
 0x4a5   :  { %v3022_v41 = vmax.f32 %v2948_v15, 0.0  ;;  %v3962_v11 = vpop.f32.mrf.mxu3  ;;  %4209 = vmatmul.bf16.gmra.mxu0 %v10021_v19  ;;  %v6449_v45 = vor.u32 %v6852_v17, %v6448_v37  ;;  %v6828_v15 = vld [vmem:[#allocation6 + $0x324] sm:$0xf0]  ;;  %v6336_v37 = vld [vmem:[#allocation6 + $0x300] sm:$0xf] }
 0x4a6   :  { %v3963_v42 = vadd.f32 %v3962_v11, %v9118_v28  ;;  %4072 = vmatmul.bf16.gmra.mxu1 %v10022_v6  ;;  %v6353_v20 = vor.u32 %v6828_v15, %v6352_v23  ;;  %v10024_v6 = vld [vmem:[#allocation24_spill] sm:$0xff] }
 0x4a7   :  { %4111 = vmatmul.bf16.gmra.mxu2 %v10023_v55  ;;  %v9195_v32 = vpack.c.bf16 %v3022_v41, %v3014_v54  ;;  %v9207_v41 = vadd.f32 %v9093_v48, %v2826_v38 }
 0x4a8   :  { %v9199_v31 = vadd.f32 %v4011_v10, %v3963_v42  ;;  %4285 = vmatpush.bf16.msra.mxu2 %v6449_v45  ;;  %4240 = vmatpush.bf16.msra.mxu1 %v6353_v20  ;;  %v6757_v20 = vld [vmem:[#allocation6 + $0xf4] sm:$0xf] }
 0x4aa   :  { %v2950_v34 = vpop.f32.mrf.mxu2  ;;  %4160 = vmatmul.bf16.gmra.mxu3 %v10024_v6  ;;  %v4016_v55 = vpop.f32.mrf.mxu0 }
 0x4ab   :  { %v2951_v11 = vadd.f32 %v2950_v34, %v9130_v61  ;;  %v2913_v19 = vpop.f32.mrf.mxu1  ;;  %v6824_v61 = vld [vmem:[#allocation6 + $0x304] sm:$0xf0] }
 0x4ac   :  { %v9204_v54 = vadd.f32 %v2913_v19, %v9149_v22  ;;  %4241 = vmatpush.bf16.msra.mxu1 %v6345_v58  ;;  %v6337_v23 = vor.u32 %v6824_v61, %v6336_v37  ;;  %v6077_v58 = vor.u32 %v6757_v20, %v6074_v26  ;;  %v10027_v37 = vld [vmem:[#allocation53_spill] sm:$0xff]  ;;  %v6850_v61 = vld [vmem:[#allocation6 + $0x3d4] sm:$0xf0] }
 0x4ad   :  { %v3965_v10 = vpop.f32.mrf.mxu3  ;;  %v3030_v48 = vmax.f32 %v2951_v11, 0.0  ;;  %v6066_v26 = vld [vmem:[#allocation6 + $0xe8] sm:$0xf0] }
 0x4ae   :  { %v3966_v42 = vadd.f32 %v3965_v10, %v9118_v28  ;;  %v10025_v10 = vld [vmem:[#allocation25_spill] sm:$0xff]  ;;  %4382 = vmatpush.bf16.msra.mxu0 %v6077_v58 }
 0x4af   :  { %v6002_v58 = vld [vmem:[#allocation6 + $0x68] sm:$0xf0] }
 0x4b0   :  { %v9210_v17 = vadd.f32 %v4014_v25, %v3966_v42  ;;  %4242 = vmatpush.bf16.msra.mxu1 %v6337_v23  ;;  %v10026_v42 = vld [vmem:[#allocation34_spill] sm:$0xff]  ;;  %v6010_v23 = vld [vmem:[#allocation6 + $0x78] sm:$0xf0] }
 0x4b2   :  { %v2952_v45 = vpop.f32.mrf.mxu2  ;;  %v4019_v22 = vpop.f32.mrf.mxu0 }
 0x4b3   :  { %v2953_v15 = vadd.f32 %v2952_v45, %v9146_v1  ;;  %v2916_v19 = vpop.f32.mrf.mxu1  ;;  %v6440_v1 = vld [vmem:[#allocation6 + $0x3d0] sm:$0xf] }
 0x4b4   :  { %v9214_v34 = vadd.f32 %v2916_v19, %v9159_v27  ;;  %v6441_v11 = vor.u32 %v6850_v61, %v6440_v1  ;;  %v6741_v27 = vld [vmem:[#allocation6 + $0x74] sm:$0xf]  ;;  %v6058_v61 = vld [vmem:[#allocation6 + $0xd8] sm:$0xf0] }
 0x4b5   :  { %v3038_v38 = vmax.f32 %v2953_v15, 0.0  ;;  %v3967_v29 = vpop.f32.mrf.mxu3  ;;  %4214 = vmatmul.bf16.gmra.mxu0 %v10025_v10  ;;  %v6755_v15 = vld [vmem:[#allocation6 + $0xe4] sm:$0xf]  ;;  %v6013_v20 = vor.u32 %v6741_v27, %v6010_v23  ;;  %v6753_v1 = vld [vmem:[#allocation6 + $0xd4] sm:$0xf] }
 0x4b6   :  { %v3968_v25 = vadd.f32 %v3967_v29, %v9118_v28  ;;  %4077 = vmatmul.bf16.gmra.mxu1 %v10026_v42  ;;  %4286 = vmatpush.bf16.msra.mxu2 %v6441_v11  ;;  %v10028_v42 = vld [vmem:[#allocation59_spill] sm:$0xff]  ;;  %v6069_v10 = vor.u32 %v6755_v15, %v6066_v26  ;;  %v6061_v27 = vor.u32 %v6753_v1, %v6058_v61  ;;  %v6737_v23 = vld [vmem:[#allocation6 + $0x54] sm:$0xf]  ;;  %v6050_v26 = vld [vmem:[#allocation6 + $0xc8] sm:$0xf0] }
 0x4b7   :  { %4116 = vmatmul.bf16.gmra.mxu2 %v10027_v37  ;;  %v9220_v45 = vpack.c.bf16 %v3038_v38, %v3030_v48  ;;  %4333 = vmatpush.bf16.msra.mxu3 %v6013_v20  ;;  %v6739_v38 = vld [vmem:[#allocation6 + $0x64] sm:$0xf] }
 0x4b8   :  { %v9222_v19 = vadd.f32 %v4016_v55, %v3968_v25  ;;  %4383 = vmatpush.bf16.msra.mxu0 %v6069_v10  ;;  %v6005_v25 = vor.u32 %v6739_v38, %v6002_v58  ;;  %v6751_v10 = vld [vmem:[#allocation6 + $0xc4] sm:$0xf] }
 0x4b9   :  { %v6053_v62 = vor.u32 %v6751_v10, %v6050_v26  ;;  %v6416_v10 = vld [vmem:[#allocation6 + $0x3a0] sm:$0xf]  ;;  %v6844_v26 = vld [vmem:[#allocation6 + $0x3a4] sm:$0xf0] }
 0x4ba   :  { %v2955_v6 = vpop.f32.mrf.mxu2  ;;  %4165 = vmatmul.bf16.gmra.mxu3 %v10028_v42  ;;  %v4021_v37 = vpop.f32.mrf.mxu0 }
 0x4bb   :  { %v2956_v29 = vadd.f32 %v2955_v6, %v9156_v51  ;;  %v2918_v52 = vpop.f32.mrf.mxu1  ;;  %4334 = vmatpush.bf16.msra.mxu3 %v6005_v25  ;;  %v6432_v51 = vld [vmem:[#allocation6 + $0x3c0] sm:$0xf]  ;;  %v6848_v6 = vld [vmem:[#allocation6 + $0x3c4] sm:$0xf0] }
 0x4bc   :  { %v9227_v48 = vadd.f32 %v2918_v52, %v9177_v40  ;;  %4384 = vmatpush.bf16.msra.mxu0 %v6061_v27  ;;  %v6433_v52 = vor.u32 %v6848_v6, %v6432_v51  ;;  %v5994_v40 = vld [vmem:[#allocation6 + $0x58] sm:$0xf0]  ;;  %v5986_v6 = vld [vmem:[#allocation6 + $0x48] sm:$0xf0] }
 0x4bd   :  { %v3970_v55 = vpop.f32.mrf.mxu3  ;;  %v5997_v58 = vor.u32 %v6737_v23, %v5994_v40  ;;  %v3046_v25 = vmax.f32 %v2956_v29, 0.0  ;;  %v10029_v40 = vld [vmem:[#allocation27_spill] sm:$0xff]  ;;  %v10030_v29 = vld [vmem:[#allocation54_spill] sm:$0xff] }
 0x4be   :  { %v3971_v11 = vadd.f32 %v3970_v55, %v9118_v28  ;;  %4287 = vmatpush.bf16.msra.mxu2 %v6433_v52 }
 0x4bf   :  { %4335 = vmatpush.bf16.msra.mxu3 %v5997_v58  ;;  %v6733_v58 = vld [vmem:[#allocation6 + $0x34] sm:$0xf] }
 0x4c0   :  { %v9230_v15 = vadd.f32 %v4019_v22, %v3971_v11  ;;  %4385 = vmatpush.bf16.msra.mxu0 %v6053_v62  ;;  %v6424_v22 = vld [vmem:[#allocation6 + $0x3b0] sm:$0xf]  ;;  %v6846_v11 = vld [vmem:[#allocation6 + $0x3b4] sm:$0xf0] }
 0x4c1   :  { %v6425_v51 = vor.u32 %v6846_v11, %v6424_v22  ;;  %v6417_v11 = vor.u32 %v6844_v26, %v6416_v10  ;;  %v5970_v10 = vld [vmem:[#allocation6 + $0x28] sm:$0xf0]  ;;  %v6745_v26 = vld [vmem:[#allocation6 + $0x94] sm:$0xf] }
 0x4c2   :  { %v2957_v20 = vpop.f32.mrf.mxu2  ;;  %v9233_v38 = vpop.f32.mrf.mxu0 }
 0x4c3   :  { %v2958_v42 = vadd.f32 %v2957_v20, %v9174_v43  ;;  %v2921_v55 = vpop.f32.mrf.mxu1  ;;  %v6735_v43 = vld [vmem:[#allocation6 + $0x44] sm:$0xf]  ;;  %v6749_v20 = vld [vmem:[#allocation6 + $0xb4] sm:$0xf]  ;;  %4288 = vmatpush.bf16.msra.mxu2 %v6425_v51 }
 0x4c4   :  { %v9236_v61 = vadd.f32 %v2921_v55, %v9189_v60  ;;  %v6042_v60 = vld [vmem:[#allocation6 + $0xb8] sm:$0xf0] }
 0x4c5   :  { %v3054_v1 = vmax.f32 %v2958_v42, 0.0  ;;  %v3972_v27 = vpop.f32.mrf.mxu3  ;;  %4219 = vmatmul.bf16.gmra.mxu0 %v8825_v13  ;;  %v5989_v42 = vor.u32 %v6735_v43, %v5986_v6  ;;  %v6045_v62 = vor.u32 %v6749_v20, %v6042_v60  ;;  %v6747_v13 = vld [vmem:[#allocation6 + $0xa4] sm:$0xf] }
 0x4c6   :  { %v3973_v23 = vadd.f32 %v3972_v27, %v9118_v28  ;;  %4082 = vmatmul.bf16.gmra.mxu1 %v10029_v40  ;;  %v5978_v27 = vld [vmem:[#allocation6 + $0x38] sm:$0xf0]  ;;  %v6034_v40 = vld [vmem:[#allocation6 + $0xa8] sm:$0xf0]  ;;  %v10031_v43 = vld [vmem:[#allocation60_spill] sm:$0xff] }
 0x4c7   :  { %4121 = vmatmul.bf16.gmra.mxu2 %v10030_v29  ;;  %v9242_v52 = vpack.c.bf16 %v3054_v1, %v3046_v25  ;;  %4336 = vmatpush.bf16.msra.mxu3 %v5989_v42  ;;  %v5981_v1 = vor.u32 %v6733_v58, %v5978_v27  ;;  %v6037_v51 = vor.u32 %v6747_v13, %v6034_v40  ;;  %v6400_v40 = vld [vmem:[#allocation6 + $0x380] sm:$0xf]  ;;  %v6840_v58 = vld [vmem:[#allocation6 + $0x384] sm:$0xf0] }
 0x4c8   :  { %v9244_v55 = vadd.f32 %v4021_v37, %v3973_v23  ;;  %4386 = vmatpush.bf16.msra.mxu0 %v6045_v62  ;;  %4289 = vmatpush.bf16.msra.mxu2 %v6417_v11  ;;  %v6408_v37 = vld [vmem:[#allocation6 + $0x390] sm:$0xf]  ;;  %v6842_v23 = vld [vmem:[#allocation6 + $0x394] sm:$0xf0]  ;;  %v6731_v62 = vld [vmem:[#allocation6 + $0x24] sm:$0xf] }
 0x4c9   :  { %v6409_v60 = vor.u32 %v6842_v23, %v6408_v37  ;;  %v6018_v37 = vld [vmem:[#allocation6 + $0x88] sm:$0xf0] }
 0x4ca   :  { %v2960_v22 = vpop.f32.mrf.mxu2  ;;  %4170 = vmatmul.bf16.gmra.mxu3 %v10031_v43  ;;  %v4026_v25 = vpop.f32.mrf.mxu0  ;;  %v6026_v43 = vld [vmem:[#allocation6 + $0x98] sm:$0xf0] }
 0x4cb   :  { %v2961_v29 = vadd.f32 %v2960_v22, %v9186_v3  ;;  %v2923_v6 = vpop.f32.mrf.mxu1  ;;  %4337 = vmatpush.bf16.msra.mxu3 %v5981_v1  ;;  %v5973_v22 = vor.u32 %v6731_v62, %v5970_v10  ;;  %v6029_v13 = vor.u32 %v6745_v26, %v6026_v43  ;;  %v6401_v1 = vor.u32 %v6840_v58, %v6400_v40  ;;  %v10032_v58 = vld [vmem:[#allocation55_spill] sm:$0xff] }
 0x4cc   :  { %v9249_v20 = vadd.f32 %v2923_v6, %v9207_v41  ;;  %4387 = vmatpush.bf16.msra.mxu0 %v6037_v51  ;;  %4290 = vmatpush.bf16.msra.mxu2 %v6409_v60  ;;  %v6729_v41 = vld [vmem:[#allocation6 + $0x14] sm:$0xf]  ;;  %v5962_v51 = vld [vmem:[#allocation6 + $0x18] sm:$0xf0]  ;;  %v6743_v6 = vld [vmem:[#allocation6 + $0x84] sm:$0xf] }
 0x4cd   :  { %v3975_v42 = vpop.f32.mrf.mxu3  ;;  %v5965_v62 = vor.u32 %v6729_v41, %v5962_v51  ;;  %v6021_v43 = vor.u32 %v6743_v6, %v6018_v37  ;;  %v3062_v60 = vmax.f32 %v2961_v29, 0.0 }
 0x4ce   :  { %v3976_v3 = vadd.f32 %v3975_v42, %v9118_v28 }
 0x4cf   :  { %4338 = vmatpush.bf16.msra.mxu3 %v5973_v22 }
 0x4d0   :  { %v9253_v11 = vadd.f32 %v9233_v38, %v3976_v3  ;;  %4388 = vmatpush.bf16.msra.mxu0 %v6029_v13  ;;  %4291 = vmatpush.bf16.msra.mxu2 %v6401_v1  ;;  %v6727_v38 = vld [vmem:[#allocation6 + $0x4] sm:$0xf]  ;;  %v5954_v3 = vld [vmem:[#allocation6 + $0x8] sm:$0xf0] }
 0x4d1   :  { %v5957_v13 = vor.u32 %v6727_v38, %v5954_v3 }
 0x4d2   :  { %v2962_v27 = vpop.f32.mrf.mxu2  ;;  %v4029_v42 = vpop.f32.mrf.mxu0 }
 0x4d3   :  { %v2963_v23 = vadd.f32 %v2962_v27, %v9204_v54  ;;  %v4048_v10 = vpop.f32.mrf.mxu1  ;;  %4339 = vmatpush.bf16.msra.mxu3 %v5965_v62  ;;  %v10033_v27 = vld [vmem:[#allocation61_spill] sm:$0xff] }
 0x4d4   :  { %v4049_v22 = vadd.f32 %v4048_v10, %v9128_v49  ;;  %4389 = vmatpush.bf16.msra.mxu0 %v6021_v43 }
 0x4d5   :  { %v3070_v26 = vmax.f32 %v2963_v23, 0.0  ;;  %v3977_v24 = vpop.f32.mrf.mxu3  ;;  %4224 = vmatmul.bf16.gmra.mxu0 %v8850_v4 }
 0x4d6   :  { %v3978_v40 = vadd.f32 %v3977_v24, %v9118_v28  ;;  %4243 = vmatmul.bf16.vlgmr.msra.gmra.mxu1 %v8900_v63 }
 0x4d7   :  { %4126 = vmatmul.bf16.gmra.mxu2 %v10032_v58  ;;  %v9261_v54 = vpack.c.bf16 %v3070_v26, %v3062_v60  ;;  %4340 = vmatpush.bf16.msra.mxu3 %v5957_v13 }
 0x4d8   :  { %v9263_v29 = vadd.f32 %v4026_v25, %v3978_v40 }
 0x4da   :  { %v2965_v49 = vpop.f32.mrf.mxu2  ;;  %4175 = vmatmul.bf16.gmra.mxu3 %v10033_v27  ;;  %v4031_v1 = vpop.f32.mrf.mxu0 }
 0x4db   :  { %v2966_v41 = vadd.f32 %v2965_v49, %v9214_v34  ;;  %v4050_v51 = vpop.f32.mrf.mxu1  ;;  %v10035_v49 = vld [vmem:[#allocation62_spill] sm:$0xff] }
 0x4dc   :  { %v4051_v6 = vadd.f32 %v4050_v51, %v9143_v46  ;;  %v10034_v46 = vld [vmem:[#allocation56_spill] sm:$0xff] }
 0x4dd   :  { %v3980_v24 = vpop.f32.mrf.mxu3  ;;  %v3078_v60 = vmax.f32 %v2966_v41, 0.0 }
 0x4de   :  { %v3981_v37 = vadd.f32 %v3980_v24, %v9118_v28 }
 0x4e0   :  { %v9269_v23 = vadd.f32 %v4029_v42, %v3981_v37 }
 0x4e2   :  { %v2967_v62 = vpop.f32.mrf.mxu2  ;;  %v4034_v43 = vpop.f32.mrf.mxu0 }
 0x4e3   :  { %v2968_v10 = vadd.f32 %v2967_v62, %v9227_v48  ;;  %v4053_v25 = vpop.f32.mrf.mxu1 }
 0x4e4   :  { %v4054_v34 = vadd.f32 %v4053_v25, %v9154_v30 }
 0x4e5   :  { %v3086_v26 = vmax.f32 %v2968_v10, 0.0  ;;  %v3982_v38 = vpop.f32.mrf.mxu3  ;;  %4229 = vmatmul.bf16.gmra.mxu0 %v8876_v18 }
 0x4e6   :  { %v3983_v3 = vadd.f32 %v3982_v38, %v9118_v28  ;;  %4248 = vmatmul.bf16.gmra.mxu1 %v8932_v14 }
 0x4e7   :  { %4131 = vmatmul.bf16.gmra.mxu2 %v10034_v46  ;;  %v9277_v42 = vpack.c.bf16 %v3086_v26, %v3078_v60 }
 0x4e8   :  { %v9279_v13 = vadd.f32 %v4031_v1, %v3983_v3 }
 0x4ea   :  { %v2970_v48 = vpop.f32.mrf.mxu2  ;;  %4180 = vmatmul.bf16.gmra.mxu3 %v10035_v49  ;;  %v4036_v41 = vpop.f32.mrf.mxu0 }
 0x4eb   :  { %v2971_v40 = vadd.f32 %v2970_v48, %v9236_v61  ;;  %v4055_v30 = vpop.f32.mrf.mxu1 }
 0x4ec   :  { %v4056_v51 = vadd.f32 %v4055_v30, %v9169_v16 }
 0x4ed   :  { %v3985_v24 = vpop.f32.mrf.mxu3  ;;  %v3094_v26 = vmax.f32 %v2971_v40, 0.0 }
 0x4ee   :  { %v3986_v37 = vadd.f32 %v3985_v24, %v9118_v28 }
 0x4f0   :  { %v9285_v62 = vadd.f32 %v4034_v43, %v3986_v37 }
 0x4f2   :  { %v2972_v10 = vpop.f32.mrf.mxu2  ;;  %v4195_v60 = vpop.f32.mrf.mxu0 }
 0x4f3   :  { %v2973_v25 = vadd.f32 %v2972_v10, %v9249_v20  ;;  %v4058_v1 = vpop.f32.mrf.mxu1 }
 0x4f4   :  { %v4059_v61 = vadd.f32 %v4058_v1, %v9182_v12 }
 0x4f5   :  { %v3102_v38 = vmax.f32 %v2973_v25, 0.0  ;;  %v3987_v3 = vpop.f32.mrf.mxu3  ;;  %4390 = vmatmul.bf16.vlgmr.msra.gmra.mxu0 %v9991_v57 }
 0x4f6   :  { %v3988_v48 = vadd.f32 %v3987_v3, %v9118_v28  ;;  %4253 = vmatmul.bf16.gmra.mxu1 %v8964_v53 }
 0x4f7   :  { %4292 = vmatmul.bf16.vlgmr.msra.gmra.mxu2 %v9136_v39  ;;  %v9293_v16 = vpack.c.bf16 %v3102_v38, %v3094_v26 }
 0x4f8   :  { %v9295_v43 = vadd.f32 %v4036_v41, %v3988_v48 }
 0x4fa   :  { %v4097_v20 = vpop.f32.mrf.mxu2  ;;  %4341 = vmatmul.bf16.vlgmr.msra.gmra.mxu3 %v9992_v9  ;;  %v4197_v40 = vpop.f32.mrf.mxu0 }
 0x4fb   :  { %v4098_v30 = vadd.f32 %v4097_v20, %v4049_v22  ;;  %v4060_v24 = vpop.f32.mrf.mxu1 }
 0x4fc   :  { %v9299_v12 = vadd.f32 %v4060_v24, %v9199_v31 }
 0x4fd   :  { %v4146_v57 = vpop.f32.mrf.mxu3 }
 0x4fe   :  { %v4147_v37 = vadd.f32 %v4146_v57, %v4098_v30 }
 0x500   :  { %v9301_v28 = vadd.f32 %v4195_v60, %v4147_v37 }
 0x502   :  { %v4099_v10 = vpop.f32.mrf.mxu2  ;;  %v4200_v1 = vpop.f32.mrf.mxu0 }
 0x503   :  { %v4100_v25 = vadd.f32 %v4099_v10, %v4051_v6  ;;  %v4063_v26 = vpop.f32.mrf.mxu1  ;;  %v6773_v10 = vld [vmem:[#allocation6 + $0x174] sm:$0xf] }
 0x504   :  { %v9304_v41 = vadd.f32 %v4063_v26, %v9210_v17 }
 0x505   :  { %v4148_v38 = vpop.f32.mrf.mxu3  ;;  %4395 = vmatmul.bf16.gmra.mxu0 %v9993_v0 }
 0x506   :  { %v4149_v9 = vadd.f32 %v4148_v38, %v4100_v25  ;;  %4258 = vmatmul.bf16.gmra.mxu1 %v9000_v56  ;;  %v6771_v38 = vld [vmem:[#allocation6 + $0x164] sm:$0xf] }
 0x507   :  { %4297 = vmatmul.bf16.gmra.mxu2 %v9165_v2 }
 0x508   :  { %v9309_v31 = vadd.f32 %v4197_v40, %v4149_v9  ;;  %v6130_v9 = vld [vmem:[#allocation6 + $0x168] sm:$0xf0] }
 0x50a   :  { %v4102_v22 = vpop.f32.mrf.mxu2  ;;  %4346 = vmatmul.bf16.gmra.mxu3 %v9994_v47  ;;  %v4202_v6 = vpop.f32.mrf.mxu0 }
 0x50b   :  { %v4103_v60 = vadd.f32 %v4102_v22, %v4054_v34  ;;  %v4065_v3 = vpop.f32.mrf.mxu1  ;;  %v6138_v34 = vld [vmem:[#allocation6 + $0x178] sm:$0xf0] }
 0x50c   :  { %v9313_v48 = vadd.f32 %v4065_v3, %v9222_v19  ;;  %v6141_v47 = vor.u32 %v6773_v10, %v6138_v34  ;;  %v6789_v19 = vld [vmem:[#allocation6 + $0x1f4] sm:$0xf] }
 0x50d   :  { %v4151_v17 = vpop.f32.mrf.mxu3 }
 0x50e   :  { %v4152_v20 = vadd.f32 %v4151_v17, %v4103_v60  ;;  %4431 = vmatpush.bf16.msrb.mxu1 %v6141_v47  ;;  %v6133_v60 = vor.u32 %v6771_v38, %v6130_v9  ;;  %v6106_v38 = vld [vmem:[#allocation6 + $0x138] sm:$0xf0] }
 0x510   :  { %v9315_v30 = vadd.f32 %v4200_v1, %v4152_v20  ;;  %v6202_v1 = vld [vmem:[#allocation6 + $0x1f8] sm:$0xf0] }
 0x512   :  { %v4104_v0 = vpop.f32.mrf.mxu2  ;;  %v4205_v57 = vpop.f32.mrf.mxu0  ;;  %4432 = vmatpush.bf16.msrb.mxu1 %v6133_v60 }
 0x513   :  { %v4105_v24 = vadd.f32 %v4104_v0, %v4056_v51  ;;  %v4068_v37 = vpop.f32.mrf.mxu1  ;;  %v6205_v51 = vor.u32 %v6789_v19, %v6202_v1  ;;  %v6769_v0 = vld [vmem:[#allocation6 + $0x154] sm:$0xf] }
 0x514   :  { %v9318_v40 = vadd.f32 %v4068_v37, %v9230_v15 }
 0x515   :  { %v4153_v25 = vpop.f32.mrf.mxu3  ;;  %4400 = vmatmul.bf16.gmra.mxu0 %v9995_v21  ;;  %4480 = vmatpush.bf16.msrb.mxu2 %v6205_v51  ;;  %v6765_v51 = vld [vmem:[#allocation6 + $0x134] sm:$0xf] }
 0x516   :  { %v4154_v26 = vadd.f32 %v4153_v25, %v4105_v24  ;;  %4263 = vmatmul.bf16.gmra.mxu1 %v9033_v59  ;;  %v6122_v24 = vld [vmem:[#allocation6 + $0x158] sm:$0xf0]  ;;  %v6114_v25 = vld [vmem:[#allocation6 + $0x148] sm:$0xf0] }
 0x517   :  { %4302 = vmatmul.bf16.gmra.mxu2 %v9195_v32  ;;  %v6125_v10 = vor.u32 %v6769_v0, %v6122_v24  ;;  %v6098_v0 = vld [vmem:[#allocation6 + $0x128] sm:$0xf0] }
 0x518   :  { %v9323_v22 = vadd.f32 %v4202_v6, %v4154_v26  ;;  %v6767_v6 = vld [vmem:[#allocation6 + $0x144] sm:$0xf] }
 0x519   :  { %4433 = vmatpush.bf16.msrb.mxu1 %v6125_v10 }
 0x51a   :  { %v4107_v15 = vpop.f32.mrf.mxu2  ;;  %4351 = vmatmul.bf16.gmra.mxu3 %v9996_v7  ;;  %v4207_v21 = vpop.f32.mrf.mxu0 }
 0x51b   :  { %v4108_v3 = vadd.f32 %v4107_v15, %v4059_v61  ;;  %v4070_v17 = vpop.f32.mrf.mxu1  ;;  %v6117_v61 = vor.u32 %v6767_v6, %v6114_v25  ;;  %v6109_v15 = vor.u32 %v6765_v51, %v6106_v38  ;;  %v6761_v25 = vld [vmem:[#allocation6 + $0x114] sm:$0xf]  ;;  %v6082_v51 = vld [vmem:[#allocation6 + $0x108] sm:$0xf0] }
 0x51c   :  { %v9327_v20 = vadd.f32 %v4070_v17, %v9244_v55  ;;  %v6763_v17 = vld [vmem:[#allocation6 + $0x124] sm:$0xf] }
 0x51d   :  { %v4156_v37 = vpop.f32.mrf.mxu3  ;;  %4434 = vmatpush.bf16.msrb.mxu1 %v6117_v61 }
 0x51e   :  { %v4157_v34 = vadd.f32 %v4156_v37, %v4108_v3  ;;  %v6194_v3 = vld [vmem:[#allocation6 + $0x1e8] sm:$0xf0]  ;;  %v6101_v37 = vor.u32 %v6763_v17, %v6098_v0 }
 0x520   :  { %v9329_v47 = vadd.f32 %v4205_v57, %v4157_v34  ;;  %v6787_v57 = vld [vmem:[#allocation6 + $0x1e4] sm:$0xf] }
 0x521   :  { %4435 = vmatpush.bf16.msrb.mxu1 %v6109_v15 }
 0x522   :  { %v4109_v26 = vpop.f32.mrf.mxu2  ;;  %v4210_v19 = vpop.f32.mrf.mxu0 }
 0x523   :  { %v4110_v7 = vadd.f32 %v4109_v26, %v9299_v12  ;;  %v4073_v1 = vpop.f32.mrf.mxu1  ;;  %v6197_v12 = vor.u32 %v6787_v57, %v6194_v3  ;;  %v6090_v26 = vld [vmem:[#allocation6 + $0x118] sm:$0xf0]  ;;  %v6821_v57 = vld [vmem:[#allocation6 + $0x2f4] sm:$0xf] }
 0x524   :  { %v9333_v55 = vadd.f32 %v4073_v1, %v9253_v11  ;;  %v6330_v3 = vld [vmem:[#allocation6 + $0x2f8] sm:$0xf0] }
 0x525   :  { %v4158_v9 = vpop.f32.mrf.mxu3  ;;  %4405 = vmatmul.bf16.gmra.mxu0 %v9997_v35  ;;  %4481 = vmatpush.bf16.msrb.mxu2 %v6197_v12  ;;  %v6333_v17 = vor.u32 %v6821_v57, %v6330_v3  ;;  %v6314_v3 = vld [vmem:[#allocation6 + $0x2d8] sm:$0xf0] }
 0x526   :  { %v4159_v60 = vadd.f32 %v4158_v9, %v4110_v7  ;;  %4268 = vmatmul.bf16.gmra.mxu1 %v9062_v36  ;;  %v6093_v7 = vor.u32 %v6761_v25, %v6090_v26 }
 0x527   :  { %4307 = vmatmul.bf16.gmra.mxu2 %v9220_v45  ;;  %4436 = vmatpush.bf16.msrb.mxu1 %v6101_v37  ;;  %v6805_v37 = vld [vmem:[#allocation6 + $0x274] sm:$0xf] }
 0x528   :  { %v9338_v24 = vadd.f32 %v4207_v21, %v4159_v60  ;;  %v6759_v21 = vld [vmem:[#allocation6 + $0x104] sm:$0xf]  ;;  %4578 = vmatpush.bf16.msrb.mxu0 %v6333_v17 }
 0x52a   :  { %v4112_v11 = vpop.f32.mrf.mxu2  ;;  %4356 = vmatmul.bf16.gmra.mxu3 %v9998_v50  ;;  %v4212_v35 = vpop.f32.mrf.mxu0 }
 0x52b   :  { %v4113_v10 = vadd.f32 %v4112_v11, %v9304_v41  ;;  %v4075_v34 = vpop.f32.mrf.mxu1  ;;  %4437 = vmatpush.bf16.msrb.mxu1 %v6093_v7  ;;  %v6085_v41 = vor.u32 %v6759_v21, %v6082_v51  ;;  %v6186_v11 = vld [vmem:[#allocation6 + $0x1d8] sm:$0xf0]  ;;  %v10036_v7 = vld [vmem:[#allocation48_spill] sm:$0xff] }
 0x52c   :  { %v9343_v6 = vadd.f32 %v4075_v34, %v9263_v29  ;;  %v6819_v34 = vld [vmem:[#allocation6 + $0x2e4] sm:$0xf] }
 0x52d   :  { %v4161_v61 = vpop.f32.mrf.mxu3 }
 0x52e   :  { %v4162_v1 = vadd.f32 %v4161_v61, %v4113_v10  ;;  %v6266_v10 = vld [vmem:[#allocation6 + $0x278] sm:$0xf0]  ;;  %v6322_v61 = vld [vmem:[#allocation6 + $0x2e8] sm:$0xf0] }
 0x52f   :  { %4438 = vmatpush.bf16.msrb.mxu1 %v6085_v41  ;;  %v6269_v26 = vor.u32 %v6805_v37, %v6266_v10  ;;  %v6325_v21 = vor.u32 %v6819_v34, %v6322_v61  ;;  %v6803_v41 = vld [vmem:[#allocation6 + $0x264] sm:$0xf]  ;;  %v6306_v34 = vld [vmem:[#allocation6 + $0x2c8] sm:$0xf0] }
 0x530   :  { %v9345_v38 = vadd.f32 %v4210_v19, %v4162_v1  ;;  %v6785_v19 = vld [vmem:[#allocation6 + $0x1d4] sm:$0xf]  ;;  %v6815_v10 = vld [vmem:[#allocation6 + $0x2c4] sm:$0xf] }
 0x531   :  { %4529 = vmatpush.bf16.msrb.mxu3 %v6269_v26  ;;  %4579 = vmatpush.bf16.msrb.mxu0 %v6325_v21 }
 0x532   :  { %v4114_v9 = vpop.f32.mrf.mxu2  ;;  %v4215_v15 = vpop.f32.mrf.mxu0 }
 0x533   :  { %v4115_v50 = vadd.f32 %v4114_v9, %v9313_v48  ;;  %v4078_v60 = vpop.f32.mrf.mxu1  ;;  %v6189_v48 = vor.u32 %v6785_v19, %v6186_v11  ;;  %v6801_v19 = vld [vmem:[#allocation6 + $0x254] sm:$0xf] }
 0x534   :  { %v9349_v29 = vadd.f32 %v4078_v60, %v9269_v23 }
 0x535   :  { %v4163_v12 = vpop.f32.mrf.mxu3  ;;  %4410 = vmatmul.bf16.gmra.mxu0 %v9999_v33  ;;  %4482 = vmatpush.bf16.msrb.mxu2 %v6189_v48 }
 0x536   :  { %v4164_v0 = vadd.f32 %v4163_v12, %v4115_v50  ;;  %4273 = vmatmul.bf16.gmra.mxu1 %v9087_v8  ;;  %v6258_v50 = vld [vmem:[#allocation6 + $0x268] sm:$0xf0] }
 0x537   :  { %4312 = vmatmul.bf16.gmra.mxu2 %v9242_v52  ;;  %v6261_v57 = vor.u32 %v6803_v41, %v6258_v50  ;;  %v6799_v41 = vld [vmem:[#allocation6 + $0x244] sm:$0xf] }
 0x538   :  { %v9354_v23 = vadd.f32 %v4212_v35, %v4164_v0  ;;  %v6817_v35 = vld [vmem:[#allocation6 + $0x2d4] sm:$0xf]  ;;  %v6178_v0 = vld [vmem:[#allocation6 + $0x1c8] sm:$0xf0] }
 0x539   :  { %v6317_v17 = vor.u32 %v6817_v35, %v6314_v3  ;;  %4530 = vmatpush.bf16.msrb.mxu3 %v6261_v57  ;;  %v10037_v35 = vld [vmem:[#allocation42_spill] sm:$0xff]  ;;  %v6242_v57 = vld [vmem:[#allocation6 + $0x248] sm:$0xf0] }
 0x53a   :  { %v4117_v25 = vpop.f32.mrf.mxu2  ;;  %4361 = vmatmul.bf16.gmra.mxu3 %v10036_v7  ;;  %v4217_v1 = vpop.f32.mrf.mxu0  ;;  %v6309_v7 = vor.u32 %v6815_v10, %v6306_v34  ;;  %v6813_v3 = vld [vmem:[#allocation6 + $0x2b4] sm:$0xf]  ;;  %v6234_v10 = vld [vmem:[#allocation6 + $0x238] sm:$0xf0]  ;;  %v6811_v34 = vld [vmem:[#allocation6 + $0x2a4] sm:$0xf] }
 0x53b   :  { %v4118_v33 = vadd.f32 %v4117_v25, %v9318_v40  ;;  %v4080_v51 = vpop.f32.mrf.mxu1  ;;  %4580 = vmatpush.bf16.msrb.mxu0 %v6317_v17  ;;  %v6783_v40 = vld [vmem:[#allocation6 + $0x1c4] sm:$0xf]  ;;  %v6245_v17 = vor.u32 %v6799_v41, %v6242_v57 }
 0x53c   :  { %v9359_v9 = vadd.f32 %v4080_v51, %v9279_v13  ;;  %v6181_v37 = vor.u32 %v6783_v40, %v6178_v0  ;;  %v6250_v13 = vld [vmem:[#allocation6 + $0x258] sm:$0xf0]  ;;  %v6781_v51 = vld [vmem:[#allocation6 + $0x1b4] sm:$0xf]  ;;  %v6779_v40 = vld [vmem:[#allocation6 + $0x1a4] sm:$0xf] }
 0x53d   :  { %v4166_v60 = vpop.f32.mrf.mxu3  ;;  %v6253_v61 = vor.u32 %v6801_v19, %v6250_v13  ;;  %v6162_v0 = vld [vmem:[#allocation6 + $0x1a8] sm:$0xf0]  ;;  %v6797_v19 = vld [vmem:[#allocation6 + $0x234] sm:$0xf] }
 0x53e   :  { %v4167_v12 = vadd.f32 %v4166_v60, %v4118_v33  ;;  %4483 = vmatpush.bf16.msrb.mxu2 %v6181_v37  ;;  %v6165_v13 = vor.u32 %v6779_v40, %v6162_v0  ;;  %v6775_v0 = vld [vmem:[#allocation6 + $0x184] sm:$0xf] }
 0x53f   :  { %4531 = vmatpush.bf16.msrb.mxu3 %v6253_v61  ;;  %4581 = vmatpush.bf16.msrb.mxu0 %v6309_v7  ;;  %v6290_v61 = vld [vmem:[#allocation6 + $0x2a8] sm:$0xf0]  ;;  %v10038_v7 = vld [vmem:[#allocation50_spill] sm:$0xff] }
 0x540   :  { %v9361_v11 = vadd.f32 %v4215_v15, %v4167_v12  ;;  %v6170_v15 = vld [vmem:[#allocation6 + $0x1b8] sm:$0xf0] }
 0x541   :  { %v6173_v60 = vor.u32 %v6781_v51, %v6170_v15  ;;  %v6237_v51 = vor.u32 %v6797_v19, %v6234_v10  ;;  %v6293_v15 = vor.u32 %v6811_v34, %v6290_v61  ;;  %v6146_v19 = vld [vmem:[#allocation6 + $0x188] sm:$0xf0]  ;;  %v6218_v34 = vld [vmem:[#allocation6 + $0x218] sm:$0xf0]  ;;  %v6807_v61 = vld [vmem:[#allocation6 + $0x284] sm:$0xf] }
 0x542   :  { %v4119_v48 = vpop.f32.mrf.mxu2  ;;  %v4220_v26 = vpop.f32.mrf.mxu0  ;;  %v6149_v10 = vor.u32 %v6775_v0, %v6146_v19 }
 0x543   :  { %v4120_v25 = vadd.f32 %v4119_v48, %v9327_v20  ;;  %v4083_v21 = vpop.f32.mrf.mxu1  ;;  %v6298_v20 = vld [vmem:[#allocation6 + $0x2b8] sm:$0xf0]  ;;  %4484 = vmatpush.bf16.msrb.mxu2 %v6173_v60  ;;  %4532 = vmatpush.bf16.msrb.mxu3 %v6245_v17  ;;  %v6795_v60 = vld [vmem:[#allocation6 + $0x224] sm:$0xf] }
 0x544   :  { %v9365_v33 = vadd.f32 %v4083_v21, %v9285_v62  ;;  %v6301_v62 = vor.u32 %v6813_v3, %v6298_v20  ;;  %v6226_v20 = vld [vmem:[#allocation6 + $0x228] sm:$0xf0] }
 0x545   :  { %v4168_v50 = vpop.f32.mrf.mxu3  ;;  %4415 = vmatmul.bf16.gmra.mxu0 %v10037_v35  ;;  %v6154_v35 = vld [vmem:[#allocation6 + $0x198] sm:$0xf0] }
 0x546   :  { %v4169_v12 = vadd.f32 %v4168_v50, %v4120_v25  ;;  %4278 = vmatmul.bf16.gmra.mxu1 %v9110_v44  ;;  %4582 = vmatpush.bf16.msrb.mxu0 %v6301_v62  ;;  %v6229_v62 = vor.u32 %v6795_v60, %v6226_v20  ;;  %v6791_v60 = vld [vmem:[#allocation6 + $0x204] sm:$0xf] }
 0x547   :  { %4317 = vmatmul.bf16.gmra.mxu2 %v9261_v54  ;;  %4533 = vmatpush.bf16.msrb.mxu3 %v6237_v51 }
 0x548   :  { %v9370_v48 = vadd.f32 %v4217_v1, %v4169_v12  ;;  %4485 = vmatpush.bf16.msrb.mxu2 %v6165_v13  ;;  %v6777_v1 = vld [vmem:[#allocation6 + $0x194] sm:$0xf] }
 0x549   :  { %v6157_v3 = vor.u32 %v6777_v1, %v6154_v35  ;;  %v6809_v12 = vld [vmem:[#allocation6 + $0x294] sm:$0xf] }
 0x54a   :  { %v4122_v37 = vpop.f32.mrf.mxu2  ;;  %4366 = vmatmul.bf16.gmra.mxu3 %v10038_v7  ;;  %v4222_v21 = vpop.f32.mrf.mxu0  ;;  %4583 = vmatpush.bf16.msrb.mxu0 %v6293_v15  ;;  %v6274_v7 = vld [vmem:[#allocation6 + $0x288] sm:$0xf0] }
 0x54b   :  { %v4123_v25 = vadd.f32 %v4122_v37, %v9333_v55  ;;  %v4085_v41 = vpop.f32.mrf.mxu1  ;;  %v6282_v55 = vld [vmem:[#allocation6 + $0x298] sm:$0xf0]  ;;  %4534 = vmatpush.bf16.msrb.mxu3 %v6229_v62 }
 0x54c   :  { %v9375_v50 = vadd.f32 %v4085_v41, %v9295_v43  ;;  %v6285_v40 = vor.u32 %v6809_v12, %v6282_v55  ;;  %4486 = vmatpush.bf16.msrb.mxu2 %v6157_v3  ;;  %v6793_v43 = vld [vmem:[#allocation6 + $0x214] sm:$0xf]  ;;  %v10039_v12 = vld [vmem:[#allocation31_spill] sm:$0xff] }
 0x54d   :  { %v4171_v57 = vpop.f32.mrf.mxu3  ;;  %v6221_v41 = vor.u32 %v6793_v43, %v6218_v34 }
 0x54e   :  { %v4172_v17 = vadd.f32 %v4171_v57, %v4123_v25  ;;  %4584 = vmatpush.bf16.msrb.mxu0 %v6285_v40  ;;  %v6277_v25 = vor.u32 %v6807_v61, %v6274_v7  ;;  %v6210_v57 = vld [vmem:[#allocation6 + $0x208] sm:$0xf0] }
 0x54f   :  { %4535 = vmatpush.bf16.msrb.mxu3 %v6221_v41  ;;  %v6213_v3 = vor.u32 %v6791_v60, %v6210_v57  ;;  %v10042_v41 = vld [vmem:[#allocation35_spill] sm:$0xff] }
 0x550   :  { %v9377_v37 = vadd.f32 %v4220_v26, %v4172_v17  ;;  %4487 = vmatpush.bf16.msrb.mxu2 %v6149_v10 }
 0x552   :  { %v4124_v13 = vpop.f32.mrf.mxu2  ;;  %v4225_v15 = vpop.f32.mrf.mxu0  ;;  %4585 = vmatpush.bf16.msrb.mxu0 %v6277_v25 }
 0x553   :  { %v4125_v51 = vadd.f32 %v4124_v13, %v9343_v6  ;;  %v4244_v1 = vpop.f32.mrf.mxu1  ;;  %4536 = vmatpush.bf16.msrb.mxu3 %v6213_v3 }
 0x554   :  { %v4245_v35 = vadd.f32 %v4244_v1, %v9301_v28  ;;  %v10040_v28 = vld [vmem:[#allocation23_spill] sm:$0xff] }
 0x555   :  { %v4173_v26 = vpop.f32.mrf.mxu3  ;;  %4420 = vmatmul.bf16.gmra.mxu0 %v10003_v5  ;;  %v10043_v1 = vld [vmem:[#allocation39_spill] sm:$0xff] }
 0x556   :  { %v4174_v20 = vadd.f32 %v4173_v26, %v4125_v51  ;;  %4439 = vmatmul.bf16.vlgmr.msrb.gmra.mxu1 %v10039_v12  ;;  %v10041_v51 = vld [vmem:[#allocation16_spill] sm:$0xff] }
 0x557   :  { %4322 = vmatmul.bf16.gmra.mxu2 %v9277_v42 }
 0x558   :  { %v9384_v6 = vadd.f32 %v4222_v21, %v4174_v20 }
 0x55a   :  { %v4127_v55 = vpop.f32.mrf.mxu2  ;;  %4371 = vmatmul.bf16.gmra.mxu3 %v10040_v28  ;;  %v4227_v62 = vpop.f32.mrf.mxu0 }
 0x55b   :  { %v4128_v17 = vadd.f32 %v4127_v55, %v9349_v29  ;;  %v4246_v40 = vpop.f32.mrf.mxu1 }
 0x55c   :  { %v4247_v0 = vadd.f32 %v4246_v40, %v9309_v31 }
 0x55d   :  { %v4176_v19 = vpop.f32.mrf.mxu3 }
 0x55e   :  { %v4177_v5 = vadd.f32 %v4176_v19, %v4128_v17  ;;  %v10045_v19 = vld [vmem:[#allocation14_spill] sm:$0xff] }
 0x560   :  { %v9389_v43 = vadd.f32 %v4225_v15, %v4177_v5  ;;  %v10046_v5 = vld [vmem:[#allocation51_spill] sm:$0xff] }
 0x562   :  { %v4129_v13 = vpop.f32.mrf.mxu2  ;;  %v4230_v34 = vpop.f32.mrf.mxu0 }
 0x563   :  { %v4130_v10 = vadd.f32 %v4129_v13, %v9359_v9  ;;  %v4249_v61 = vpop.f32.mrf.mxu1 }
 0x564   :  { %v4250_v21 = vadd.f32 %v4249_v61, %v9315_v30 }
 0x565   :  { %v4178_v7 = vpop.f32.mrf.mxu3  ;;  %4425 = vmatmul.bf16.gmra.mxu0 %v10041_v51 }
 0x566   :  { %v4179_v29 = vadd.f32 %v4178_v7, %v4130_v10  ;;  %4444 = vmatmul.bf16.gmra.mxu1 %v10042_v41 }
 0x567   :  { %4327 = vmatmul.bf16.gmra.mxu2 %v9293_v16 }
 0x568   :  { %v9396_v31 = vadd.f32 %v4227_v62, %v4179_v29 }
 0x56a   :  { %v4132_v25 = vpop.f32.mrf.mxu2  ;;  %4376 = vmatmul.bf16.gmra.mxu3 %v10043_v1  ;;  %v4232_v9 = vpop.f32.mrf.mxu0 }
 0x56b   :  { %v4133_v15 = vadd.f32 %v4132_v25, %v9365_v33  ;;  %v4251_v60 = vpop.f32.mrf.mxu1  ;;  %v10044_v33 = vld [vmem:[#allocation63_spill] sm:$0xff] }
 0x56c   :  { %v4252_v57 = vadd.f32 %v4251_v60, %v9323_v22 }
 0x56d   :  { %v4181_v30 = vpop.f32.mrf.mxu3 }
 0x56e   :  { %v4182_v26 = vadd.f32 %v4181_v30, %v4133_v15 }
 0x570   :  { %v9401_v3 = vadd.f32 %v4230_v34, %v4182_v26  ;;  %v10047_v34 = vld [vmem:[#allocation57_spill] sm:$0xff] }
 0x572   :  { %v4134_v20 = vpop.f32.mrf.mxu2  ;;  %v4391_v55 = vpop.f32.mrf.mxu0 }
 0x573   :  { %v4135_v12 = vadd.f32 %v4134_v20, %v9375_v50  ;;  %v4254_v17 = vpop.f32.mrf.mxu1 }
 0x574   :  { %v9405_v28 = vadd.f32 %v4254_v17, %v9329_v47  ;;  %v6897_v47 = vld [vmem:[%s9732_s4] sm:$0x3] }
 0x575   :  { %v4183_v62 = vpop.f32.mrf.mxu3  ;;  %4586 = vmatmul.bf16.vlgmr.msrb.gmra.mxu0 %v10044_v33  ;;  %v9416_v61 = vperm.slane %v6897_v47, 1 }
 0x576   :  { %v4184_v40 = vadd.f32 %v4183_v62, %v4135_v12  ;;  %4449 = vmatmul.bf16.gmra.mxu1 %v10045_v19  ;;  %v10048_v12 = vld [vmem:[#allocation64_spill] sm:$0xff]  ;;  %v10049_v62 = vld [vmem:[#allocation22_spill] sm:$0xff] }
 0x577   :  { %4488 = vmatmul.bf16.vlgmr.msrb.gmra.mxu2 %v10046_v5  ;;  %v10051_v19 = vld [vmem:[#allocation12_spill] sm:$0xff] }
 0x578   :  { %v9410_v22 = vadd.f32 %v4232_v9, %v4184_v40 }
 0x57a   :  { %v4293_v13 = vpop.f32.mrf.mxu2  ;;  %4537 = vmatmul.bf16.vlgmr.msrb.gmra.mxu3 %v10047_v34  ;;  %v4393_v50 = vpop.f32.mrf.mxu0 }
 0x57b   :  { %v4294_v10 = vadd.f32 %v4293_v13, %v4245_v35  ;;  %v4256_v7 = vpop.f32.mrf.mxu1 }
 0x57c   :  { %v9419_v51 = vadd.f32 %v4256_v7, %v9338_v24 }
 0x57d   :  { %v4342_v29 = vpop.f32.mrf.mxu3  ;;  %v4725_v60 = vmax.f32 %v4294_v10, 0.0 }
 0x57e   :  { %v4343_v41 = vadd.f32 %v4342_v29, %v9416_v61 }
 0x580   :  { %v9422_v25 = vadd.f32 %v4391_v55, %v4343_v41  ;;  %v10050_v55 = vld [vmem:[#allocation37_spill] sm:$0xff] }
 0x582   :  { %v4295_v15 = vpop.f32.mrf.mxu2  ;;  %v4396_v1 = vpop.f32.mrf.mxu0 }
 0x583   :  { %v4296_v35 = vadd.f32 %v4295_v15, %v4247_v0  ;;  %v4259_v9 = vpop.f32.mrf.mxu1 }
 0x584   :  { %v9425_v26 = vadd.f32 %v4259_v9, %v9345_v38  ;;  %v6837_v9 = vld [vmem:[#allocation6 + $0x374] sm:$0xf] }
 0x585   :  { %v4727_v30 = vmax.f32 %v4296_v35, 0.0  ;;  %v4344_v20 = vpop.f32.mrf.mxu3  ;;  %4591 = vmatmul.bf16.gmra.mxu0 %v10048_v12 }
 0x586   :  { %v4345_v24 = vadd.f32 %v4344_v20, %v9416_v61  ;;  %4454 = vmatmul.bf16.gmra.mxu1 %v10049_v62  ;;  %v10052_v20 = vld [vmem:[#allocation36_spill] sm:$0xff]  ;;  %v6458_v62 = vld [vmem:[#allocation6 + $0x3f8] sm:$0xf0] }
 0x587   :  { %v9428_v17 = vpack.c.bf16 %v4727_v30, %v4725_v60  ;;  %4493 = vmatmul.bf16.gmra.mxu2 %v10050_v55  ;;  %v6394_v60 = vld [vmem:[#allocation6 + $0x378] sm:$0xf0] }
 0x588   :  { %v9433_v33 = vadd.f32 %v4393_v50, %v4345_v24  ;;  %v10053_v24 = vld [vmem:[#allocation20_spill] sm:$0xff] }
 0x58a   :  { %v4298_v0 = vpop.f32.mrf.mxu2  ;;  %4542 = vmatmul.bf16.gmra.mxu3 %v10051_v19  ;;  %v4398_v5 = vpop.f32.mrf.mxu0 }
 0x58b   :  { %v4299_v40 = vadd.f32 %v4298_v0, %v4250_v21  ;;  %v4261_v38 = vpop.f32.mrf.mxu1 }
 0x58c   :  { %v9437_v13 = vadd.f32 %v4261_v38, %v9354_v23  ;;  %v6397_v23 = vor.u32 %v6837_v9, %v6394_v60 }
 0x58d   :  { %v4347_v10 = vpop.f32.mrf.mxu3  ;;  %v4729_v50 = vmax.f32 %v4299_v40, 0.0  ;;  %v6386_v40 = vld [vmem:[#allocation6 + $0x368] sm:$0xf0] }
 0x58e   :  { %v4348_v34 = vadd.f32 %v4347_v10, %v9416_v61  ;;  %4627 = vmatpush.bf16.msra.mxu1 %v6397_v23  ;;  %v6370_v23 = vld [vmem:[#allocation6 + $0x348] sm:$0xf0] }
 0x590   :  { %v9440_v47 = vadd.f32 %v4396_v1, %v4348_v34  ;;  %v10054_v1 = vld [vmem:[#allocation18_spill] sm:$0xff] }
 0x592   :  { %v4300_v7 = vpop.f32.mrf.mxu2  ;;  %v4401_v41 = vpop.f32.mrf.mxu0 }
 0x593   :  { %v4301_v29 = vadd.f32 %v4300_v7, %v4252_v57  ;;  %v4264_v15 = vpop.f32.mrf.mxu1  ;;  %v6853_v57 = vld [vmem:[#allocation6 + $0x3f4] sm:$0xf] }
 0x594   :  { %v9443_v21 = vadd.f32 %v4264_v15, %v9361_v11  ;;  %v6461_v0 = vor.u32 %v6853_v57, %v6458_v62  ;;  %v6835_v11 = vld [vmem:[#allocation6 + $0x364] sm:$0xf]  ;;  %v10055_v7 = vld [vmem:[#allocation58_spill] sm:$0xff] }
 0x595   :  { %v4731_v35 = vmax.f32 %v4301_v29, 0.0  ;;  %v4349_v30 = vpop.f32.mrf.mxu3  ;;  %4596 = vmatmul.bf16.gmra.mxu0 %v10052_v20  ;;  %v6389_v10 = vor.u32 %v6835_v11, %v6386_v40  ;;  %v6831_v20 = vld [vmem:[#allocation6 + $0x344] sm:$0xf]  ;;  %v6829_v40 = vld [vmem:[#allocation6 + $0x334] sm:$0xf] }
 0x596   :  { %v4350_v12 = vadd.f32 %v4349_v30, %v9416_v61  ;;  %4459 = vmatmul.bf16.gmra.mxu1 %v10053_v24  ;;  %4676 = vmatpush.bf16.msra.mxu2 %v6461_v0  ;;  %v6373_v24 = vor.u32 %v6831_v20, %v6370_v23 }
 0x597   :  { %4498 = vmatmul.bf16.gmra.mxu2 %v10054_v1  ;;  %v9449_v55 = vpack.c.bf16 %v4731_v35, %v4729_v50  ;;  %4628 = vmatpush.bf16.msra.mxu1 %v6389_v10  ;;  %v6833_v50 = vld [vmem:[#allocation6 + $0x354] sm:$0xf]  ;;  %v6378_v35 = vld [vmem:[#allocation6 + $0x358] sm:$0xf0] }
 0x598   :  { %v9451_v19 = vadd.f32 %v4398_v5, %v4350_v12  ;;  %v6381_v30 = vor.u32 %v6833_v50, %v6378_v35  ;;  %v10057_v50 = vld [vmem:[#allocation33_spill] sm:$0xff]  ;;  %v10058_v35 = vld [vmem:[#allocation52_spill] sm:$0xff] }
 0x59a   :  { %v4303_v38 = vpop.f32.mrf.mxu2  ;;  %4547 = vmatmul.bf16.gmra.mxu3 %v10055_v7  ;;  %v4403_v29 = vpop.f32.mrf.mxu0  ;;  %v10056_v7 = vld [vmem:[#allocation13_spill] sm:$0xff] }
 0x59b   :  { %v4304_v34 = vadd.f32 %v4303_v38, %v9405_v28  ;;  %v4266_v15 = vpop.f32.mrf.mxu1  ;;  %4629 = vmatpush.bf16.msra.mxu1 %v6381_v30  ;;  %v6362_v38 = vld [vmem:[#allocation6 + $0x338] sm:$0xf0] }
 0x59c   :  { %v9456_v9 = vadd.f32 %v4266_v15, %v9370_v48  ;;  %v6365_v15 = vor.u32 %v6829_v40, %v6362_v38 }
 0x59d   :  { %v4352_v60 = vpop.f32.mrf.mxu3  ;;  %v4733_v48 = vmax.f32 %v4304_v34, 0.0 }
 0x59e   :  { %v4353_v5 = vadd.f32 %v4352_v60, %v9416_v61  ;;  %v6450_v60 = vld [vmem:[#allocation6 + $0x3e8] sm:$0xf0] }
 0x59f   :  { %4630 = vmatpush.bf16.msra.mxu1 %v6373_v24 }
 0x5a0   :  { %v9459_v12 = vadd.f32 %v4401_v41, %v4353_v5  ;;  %v6354_v5 = vld [vmem:[#allocation6 + $0x328] sm:$0xf0] }
 0x5a2   :  { %v4305_v28 = vpop.f32.mrf.mxu2  ;;  %v4406_v57 = vpop.f32.mrf.mxu0 }
 0x5a3   :  { %v4306_v1 = vadd.f32 %v4305_v28, %v9419_v51  ;;  %v4269_v62 = vpop.f32.mrf.mxu1  ;;  %v6851_v51 = vld [vmem:[#allocation6 + $0x3e4] sm:$0xf]  ;;  %4631 = vmatpush.bf16.msra.mxu1 %v6365_v15 }
 0x5a4   :  { %v9463_v11 = vadd.f32 %v4269_v62, %v9377_v37  ;;  %v6453_v34 = vor.u32 %v6851_v51, %v6450_v60  ;;  %v6827_v37 = vld [vmem:[#allocation6 + $0x324] sm:$0xf] }
 0x5a5   :  { %v4735_v0 = vmax.f32 %v4306_v1, 0.0  ;;  %v4354_v10 = vpop.f32.mrf.mxu3  ;;  %4601 = vmatmul.bf16.gmra.mxu0 %v10056_v7  ;;  %v6357_v28 = vor.u32 %v6827_v37, %v6354_v5  ;;  %v10059_v1 = vld [vmem:[#allocation24_spill] sm:$0xff] }
 0x5a6   :  { %v4355_v41 = vadd.f32 %v4354_v10, %v9416_v61  ;;  %4464 = vmatmul.bf16.gmra.mxu1 %v10057_v50  ;;  %4677 = vmatpush.bf16.msra.mxu2 %v6453_v34  ;;  %v6823_v15 = vld [vmem:[#allocation6 + $0x304] sm:$0xf] }
 0x5a7   :  { %4503 = vmatmul.bf16.gmra.mxu2 %v10058_v35  ;;  %v9469_v30 = vpack.c.bf16 %v4735_v0, %v4733_v48  ;;  %4632 = vmatpush.bf16.msra.mxu1 %v6357_v28  ;;  %v6825_v48 = vld [vmem:[#allocation6 + $0x314] sm:$0xf]  ;;  %v6346_v0 = vld [vmem:[#allocation6 + $0x318] sm:$0xf0]  ;;  %v10060_v28 = vld [vmem:[#allocation25_spill] sm:$0xff] }
 0x5a8   :  { %v9471_v20 = vadd.f32 %v4403_v29, %v4355_v41  ;;  %v6349_v7 = vor.u32 %v6825_v48, %v6346_v0  ;;  %v6338_v41 = vld [vmem:[#allocation6 + $0x308] sm:$0xf0]  ;;  %v6849_v48 = vld [vmem:[#allocation6 + $0x3d4] sm:$0xf]  ;;  %v6442_v0 = vld [vmem:[#allocation6 + $0x3d8] sm:$0xf0] }
 0x5a9   :  { %v6341_v35 = vor.u32 %v6823_v15, %v6338_v41  ;;  %v10063_v15 = vld [vmem:[#allocation59_spill] sm:$0xff] }
 0x5aa   :  { %v4308_v23 = vpop.f32.mrf.mxu2  ;;  %4552 = vmatmul.bf16.gmra.mxu3 %v10059_v1  ;;  %v4408_v62 = vpop.f32.mrf.mxu0 }
 0x5ab   :  { %v4309_v24 = vadd.f32 %v4308_v23, %v9425_v26  ;;  %v4271_v40 = vpop.f32.mrf.mxu1  ;;  %4633 = vmatpush.bf16.msra.mxu1 %v6349_v7 }
 0x5ac   :  { %v9476_v38 = vadd.f32 %v4271_v40, %v9384_v6  ;;  %v10061_v40 = vld [vmem:[#allocation34_spill] sm:$0xff] }
 0x5ad   :  { %v4357_v10 = vpop.f32.mrf.mxu3  ;;  %v4737_v6 = vmax.f32 %v4309_v24, 0.0 }
 0x5ae   :  { %v4358_v29 = vadd.f32 %v4357_v10, %v9416_v61  ;;  %v6445_v10 = vor.u32 %v6849_v48, %v6442_v0 }
 0x5af   :  { %4634 = vmatpush.bf16.msra.mxu1 %v6341_v35 }
 0x5b0   :  { %v9479_v50 = vadd.f32 %v4406_v57, %v4358_v29  ;;  %v10062_v57 = vld [vmem:[#allocation53_spill] sm:$0xff]  ;;  %4678 = vmatpush.bf16.msra.mxu2 %v6445_v10  ;;  %v6845_v10 = vld [vmem:[#allocation6 + $0x3b4] sm:$0xf] }
 0x5b2   :  { %v4310_v26 = vpop.f32.mrf.mxu2  ;;  %v4411_v34 = vpop.f32.mrf.mxu0 }
 0x5b3   :  { %v4311_v51 = vadd.f32 %v4310_v26, %v9437_v13  ;;  %v4274_v60 = vpop.f32.mrf.mxu1 }
 0x5b4   :  { %v9483_v5 = vadd.f32 %v4274_v60, %v9389_v43  ;;  %v6862_v43 = vld [vmem:[%s9733_s5 + $0x38] sm:$0xff] }
 0x5b5   :  { %v4739_v37 = vmax.f32 %v4311_v51, 0.0  ;;  %v4359_v23 = vpop.f32.mrf.mxu3  ;;  %4606 = vmatmul.bf16.gmra.mxu0 %v10060_v28  ;;  %4905 = vmatpush.bf16.msra.mxu3 %v6862_v43  ;;  %v10064_v43 = vld [vmem:[#allocation28_spill] sm:$0xff] }
 0x5b6   :  { %v4360_v1 = vadd.f32 %v4359_v23, %v9416_v61  ;;  %4469 = vmatmul.bf16.gmra.mxu1 %v10061_v40 }
 0x5b7   :  { %4508 = vmatmul.bf16.gmra.mxu2 %v10062_v57  ;;  %v9489_v13 = vpack.c.bf16 %v4739_v37, %v4737_v6  ;;  %v6847_v6 = vld [vmem:[#allocation6 + $0x3c4] sm:$0xf]  ;;  %v6434_v37 = vld [vmem:[#allocation6 + $0x3c8] sm:$0xf0] }
 0x5b8   :  { %v9491_v7 = vadd.f32 %v4408_v62, %v4360_v1  ;;  %v6861_v62 = vld [vmem:[%s9733_s5 + $0x30] sm:$0xff]  ;;  %v6437_v28 = vor.u32 %v6847_v6, %v6434_v37 }
 0x5b9   :  { %4906 = vmatpush.bf16.msra.mxu3 %v6861_v62 }
 0x5ba   :  { %v4313_v24 = vpop.f32.mrf.mxu2  ;;  %4557 = vmatmul.bf16.gmra.mxu3 %v10063_v15  ;;  %v9501_v35 = vpop.f32.mrf.mxu0  ;;  %4679 = vmatpush.bf16.msra.mxu2 %v6437_v28 }
 0x5bb   :  { %v4314_v29 = vadd.f32 %v4313_v24, %v9443_v21  ;;  %v4276_v41 = vpop.f32.mrf.mxu1  ;;  %v6426_v24 = vld [vmem:[#allocation6 + $0x3b8] sm:$0xf0] }
 0x5bc   :  { %v9499_v26 = vadd.f32 %v4276_v41, %v9396_v31  ;;  %v6860_v31 = vld [vmem:[%s9733_s5 + $0x28] sm:$0xff]  ;;  %v6429_v15 = vor.u32 %v6845_v10, %v6426_v24  ;;  %v6859_v41 = vld [vmem:[%s9733_s5 + $0x20] sm:$0xff] }
 0x5bd   :  { %v4362_v51 = vpop.f32.mrf.mxu3  ;;  %4907 = vmatpush.bf16.msra.mxu3 %v6860_v31  ;;  %v4741_v57 = vmax.f32 %v4314_v29, 0.0  ;;  %v10067_v31 = vld [vmem:[#allocation60_spill] sm:$0xff] }
 0x5be   :  { %v4363_v60 = vadd.f32 %v4362_v51, %v9416_v61  ;;  %v10066_v51 = vld [vmem:[#allocation54_spill] sm:$0xff]  ;;  %4680 = vmatpush.bf16.msra.mxu2 %v6429_v15 }
 0x5c0   :  { %v9507_v21 = vadd.f32 %v4411_v34, %v4363_v60  ;;  %v6418_v60 = vld [vmem:[#allocation6 + $0x3a8] sm:$0xf0] }
 0x5c1   :  { %4908 = vmatpush.bf16.msra.mxu3 %v6859_v41  ;;  %v6402_v41 = vld [vmem:[#allocation6 + $0x388] sm:$0xf0] }
 0x5c2   :  { %v4315_v23 = vpop.f32.mrf.mxu2  ;;  %v4416_v62 = vpop.f32.mrf.mxu0 }
 0x5c3   :  { %v4316_v1 = vadd.f32 %v4315_v23, %v9456_v9  ;;  %v4279_v40 = vpop.f32.mrf.mxu1  ;;  %v10065_v9 = vld [vmem:[#allocation27_spill] sm:$0xff] }
 0x5c4   :  { %v9514_v0 = vadd.f32 %v4279_v40, %v9401_v3  ;;  %v6843_v3 = vld [vmem:[#allocation6 + $0x3a4] sm:$0xf]  ;;  %v6858_v23 = vld [vmem:[%s9733_s5 + $0x18] sm:$0xff] }
 0x5c5   :  { %v4743_v48 = vmax.f32 %v4316_v1, 0.0  ;;  %v9516_v34 = vpop.f32.mrf.mxu3  ;;  %4611 = vmatmul.bf16.gmra.mxu0 %v10064_v43  ;;  %v6421_v37 = vor.u32 %v6843_v3, %v6418_v60  ;;  %4909 = vmatpush.bf16.msra.mxu3 %v6858_v23  ;;  %v6857_v43 = vld [vmem:[%s9733_s5 + $0x10] sm:$0xff]  ;;  %v6856_v60 = vld [vmem:[%s9733_s5 + $0x8] sm:$0xff] }
 0x5c6   :  { %4474 = vmatmul.bf16.gmra.mxu1 %v10065_v9 }
 0x5c7   :  { %4513 = vmatmul.bf16.gmra.mxu2 %v10066_v51  ;;  %v9524_v29 = vpack.c.bf16 %v4743_v48, %v4741_v57  ;;  %v6841_v57 = vld [vmem:[#allocation6 + $0x394] sm:$0xf]  ;;  %v6410_v48 = vld [vmem:[#allocation6 + $0x398] sm:$0xf0] }
 0x5c8   :  { %4681 = vmatpush.bf16.msra.mxu2 %v6421_v37  ;;  %v6413_v24 = vor.u32 %v6841_v57, %v6410_v48 }
 0x5c9   :  { %4910 = vmatpush.bf16.msra.mxu3 %v6857_v43 }
 0x5ca   :  { %v4318_v6 = vpop.f32.mrf.mxu2  ;;  %4562 = vmatmul.bf16.gmra.mxu3 %v10067_v31  ;;  %v9538_v51 = vpop.f32.mrf.mxu0 }
 0x5cb   :  { %v4319_v28 = vadd.f32 %v4318_v6, %v9463_v11  ;;  %v4281_v1 = vpop.f32.mrf.mxu1  ;;  %v6839_v11 = vld [vmem:[#allocation6 + $0x384] sm:$0xf] }
 0x5cc   :  { %v4282_v40 = vadd.f32 %v4281_v1, %v9410_v22  ;;  %4682 = vmatpush.bf16.msra.mxu2 %v6413_v24  ;;  %v6405_v22 = vor.u32 %v6839_v11, %v6402_v41 }
 0x5cd   :  { %v4367_v10 = vpop.f32.mrf.mxu3  ;;  %4911 = vmatpush.bf16.msra.mxu3 %v6856_v60  ;;  %v4745_v23 = vmax.f32 %v4319_v28, 0.0 }
 0x5ce   :  { %v4368_v15 = vadd.f32 %v4367_v10, %v9416_v61 }
 0x5d0   :  { %v9536_v9 = vadd.f32 %v4416_v62, %v4368_v15  ;;  %4683 = vmatpush.bf16.msra.mxu2 %v6405_v22  ;;  %v6855_v62 = vld [vmem:[%s9733_s5] sm:$0xff] }
 0x5d1   :  { %4912 = vmatpush.bf16.msra.mxu3 %v6855_v62 }
 0x5d2   :  { %v4320_v3 = vpop.f32.mrf.mxu2 }
 0x5d3   :  { %v4321_v6 = vadd.f32 %v4320_v3, %v9476_v38  ;;  %v4440_v37 = vpop.f32.mrf.mxu1 }
 0x5d4   :  { %v4441_v1 = vadd.f32 %v4440_v37, %v9422_v25  ;;  %v4421_v25 = vpop.f32.mrf.mxu0 }
 0x5d5   :  { %v4747_v31 = vmax.f32 %v4321_v6, 0.0  ;;  %v9545_v57 = vpop.f32.mrf.mxu3  ;;  %4616 = vmatmul.bf16.gmra.mxu0 %v8850_v4 }
 0x5d6   :  { %4635 = vmatmul.bf16.vlgmr.msra.gmra.mxu1 %v8900_v63 }
 0x5d7   :  { %4518 = vmatmul.bf16.gmra.mxu2 %v10032_v58  ;;  %v9553_v38 = vpack.c.bf16 %v4747_v31, %v4745_v23 }
 0x5da   :  { %v4323_v48 = vpop.f32.mrf.mxu2  ;;  %4567 = vmatmul.bf16.gmra.mxu3 %v10033_v27 }
 0x5db   :  { %v4324_v28 = vadd.f32 %v4323_v48, %v9483_v5  ;;  %v4442_v10 = vpop.f32.mrf.mxu1 }
 0x5dc   :  { %v4443_v4 = vadd.f32 %v4442_v10, %v9433_v33  ;;  %v9563_v5 = vpop.f32.mrf.mxu0 }
 0x5dd   :  { %v4372_v24 = vpop.f32.mrf.mxu3  ;;  %v4749_v41 = vmax.f32 %v4324_v28, 0.0 }
 0x5de   :  { %v4373_v43 = vadd.f32 %v4372_v24, %v9416_v61 }
 0x5e0   :  { %v9559_v15 = vadd.f32 %v4421_v25, %v4373_v43 }
 0x5e2   :  { %v4325_v58 = vpop.f32.mrf.mxu2 }
 0x5e3   :  { %v4326_v63 = vadd.f32 %v4325_v58, %v9499_v26  ;;  %v4445_v11 = vpop.f32.mrf.mxu1 }
 0x5e4   :  { %v4446_v22 = vadd.f32 %v4445_v11, %v9440_v47  ;;  %v4426_v31 = vpop.f32.mrf.mxu0 }
 0x5e5   :  { %v4751_v3 = vmax.f32 %v4326_v63, 0.0  ;;  %v9565_v27 = vpop.f32.mrf.mxu3  ;;  %4621 = vmatmul.bf16.gmra.mxu0 %v8876_v18 }
 0x5e6   :  { %4640 = vmatmul.bf16.gmra.mxu1 %v8932_v14 }
 0x5e7   :  { %4523 = vmatmul.bf16.gmra.mxu2 %v10034_v46  ;;  %v9570_v33 = vpack.c.bf16 %v4751_v3, %v4749_v41 }
 0x5ea   :  { %v4328_v60 = vpop.f32.mrf.mxu2  ;;  %4572 = vmatmul.bf16.gmra.mxu3 %v10035_v49 }
 0x5eb   :  { %v4329_v26 = vadd.f32 %v4328_v60, %v9514_v0  ;;  %v4447_v6 = vpop.f32.mrf.mxu1 }
 0x5ec   :  { %v4448_v47 = vadd.f32 %v4447_v6, %v9451_v19 }
 0x5ed   :  { %v4377_v37 = vpop.f32.mrf.mxu3  ;;  %v4753_v14 = vmax.f32 %v4329_v26, 0.0 }
 0x5ee   :  { %v4378_v23 = vadd.f32 %v4377_v37, %v9416_v61 }
 0x5f0   :  { %v9576_v62 = vadd.f32 %v4426_v31, %v4378_v23 }
 0x5f2   :  { %v4330_v18 = vpop.f32.mrf.mxu2 }
 0x5f3   :  { %v4331_v46 = vadd.f32 %v4330_v18, %v4282_v40  ;;  %v4450_v48 = vpop.f32.mrf.mxu1 }
 0x5f4   :  { %v4451_v25 = vadd.f32 %v4450_v48, %v9459_v12 }
 0x5f5   :  { %v4755_v28 = vmax.f32 %v4331_v46, 0.0  ;;  %v9579_v10 = vpop.f32.mrf.mxu3 }
 0x5f6   :  { %4645 = vmatmul.bf16.gmra.mxu1 %v8964_v53 }
 0x5f7   :  { %4684 = vmatmul.bf16.vlgmr.msra.gmra.mxu2 %v9136_v39  ;;  %v9583_v49 = vpack.c.bf16 %v4755_v28, %v4753_v14  ;;  %v4370_v14 = vadd.f32 %v9545_v57, %v9416_v61 }
 0x5f9   :  { %v4419_v28 = vadd.f32 %v9538_v51, %v4370_v14 }
 0x5fa   :  { %v4489_v19 = vpop.f32.mrf.mxu2  ;;  %4913 = vmatmul.bf16.vlgmr.msra.gmra.mxu3 %v9428_v17 }
 0x5fb   :  { %v4490_v0 = vadd.f32 %v4489_v19, %v4441_v1  ;;  %v4452_v24 = vpop.f32.mrf.mxu1 }
 0x5fc   :  { %v4453_v40 = vadd.f32 %v4452_v24, %v9471_v20 }
 0x5fd   :  { %v4538_v43 = vpop.f32.mrf.mxu3 }
 0x5fe   :  { %v9587_v58 = vadd.f32 %v4538_v43, %v4490_v0 }
 0x602   :  { %v4491_v63 = vpop.f32.mrf.mxu2 }
 0x603   :  { %v4492_v12 = vadd.f32 %v4491_v63, %v4443_v4  ;;  %v4455_v11 = vpop.f32.mrf.mxu1 }
 0x604   :  { %v4456_v41 = vadd.f32 %v4455_v11, %v9479_v50 }
 0x605   :  { %v4540_v53 = vpop.f32.mrf.mxu3 }
 0x606   :  { %v9590_v3 = vadd.f32 %v4540_v53, %v4492_v12  ;;  %4650 = vmatmul.bf16.gmra.mxu1 %v9000_v56  ;;  %v4365_v12 = vadd.f32 %v9516_v34, %v9416_v61 }
 0x607   :  { %4689 = vmatmul.bf16.gmra.mxu2 %v9165_v2 }
 0x60a   :  { %v4494_v39 = vpop.f32.mrf.mxu2  ;;  %4918 = vmatmul.bf16.gmra.mxu3 %v9449_v55 }
 0x60b   :  { %v4495_v17 = vadd.f32 %v4494_v39, %v4446_v22  ;;  %v4457_v20 = vpop.f32.mrf.mxu1 }
 0x60c   :  { %v4458_v1 = vadd.f32 %v4457_v20, %v9491_v7 }
 0x60d   :  { %v4543_v60 = vpop.f32.mrf.mxu3 }
 0x60e   :  { %v9596_v26 = vadd.f32 %v4543_v60, %v4495_v17 }
 0x612   :  { %v4496_v4 = vpop.f32.mrf.mxu2 }
 0x613   :  { %v4497_v6 = vadd.f32 %v4496_v4, %v4448_v47  ;;  %v4460_v50 = vpop.f32.mrf.mxu1  ;;  %v6868_v4 = vld [vmem:[%s9733_s5 + $0x68] sm:$0xff] }
 0x614   :  { %v4461_v37 = vadd.f32 %v4460_v50, %v9507_v21 }
 0x615   :  { %v4545_v23 = vpop.f32.mrf.mxu3 }
 0x616   :  { %v9599_v31 = vadd.f32 %v4545_v23, %v4497_v6  ;;  %4655 = vmatmul.bf16.gmra.mxu1 %v9033_v59 }
 0x617   :  { %4694 = vmatmul.bf16.gmra.mxu2 %v9195_v32 }
 0x61a   :  { %v4499_v56 = vpop.f32.mrf.mxu2  ;;  %4923 = vmatmul.bf16.gmra.mxu3 %v9469_v30 }
 0x61b   :  { %v4500_v2 = vadd.f32 %v4499_v56, %v4451_v25  ;;  %v4462_v55 = vpop.f32.mrf.mxu1  ;;  %v6865_v56 = vld [vmem:[%s9733_s5 + $0x50] sm:$0xff] }
 0x61d   :  { %v4548_v7 = vpop.f32.mrf.mxu3 }
 0x61e   :  { %v9604_v22 = vadd.f32 %v4548_v7, %v4500_v2 }
 0x622   :  { %v4501_v18 = vpop.f32.mrf.mxu2 }
 0x623   :  { %v4502_v47 = vadd.f32 %v4501_v18, %v4453_v40  ;;  %v4465_v46 = vpop.f32.mrf.mxu1 }
 0x624   :  { %v4466_v21 = vadd.f32 %v4465_v46, %v9536_v9  ;;  %v6870_v9 = vld [vmem:[%s9733_s5 + $0x78] sm:$0xff] }
 0x625   :  { %v4550_v48 = vpop.f32.mrf.mxu3  ;;  %4954 = vmatpush.bf16.msra.mxu0 %v6870_v9 }
 0x626   :  { %v9609_v59 = vadd.f32 %v4550_v48, %v4502_v47  ;;  %4660 = vmatmul.bf16.gmra.mxu1 %v9062_v36  ;;  %v6863_v47 = vld [vmem:[%s9733_s5 + $0x40] sm:$0xff] }
 0x627   :  { %4699 = vmatmul.bf16.gmra.mxu2 %v9220_v45 }
 0x62a   :  { %v4504_v32 = vpop.f32.mrf.mxu2  ;;  %4928 = vmatmul.bf16.gmra.mxu3 %v9489_v13  ;;  %v4375_v13 = vadd.f32 %v9565_v27, %v9416_v61  ;;  %v6869_v27 = vld [vmem:[%s9733_s5 + $0x70] sm:$0xff] }
 0x62b   :  { %v4505_v30 = vadd.f32 %v4504_v32, %v4456_v41  ;;  %v4467_v25 = vpop.f32.mrf.mxu1  ;;  %4955 = vmatpush.bf16.msra.mxu0 %v6869_v27 }
 0x62c   :  { %v4468_v19 = vadd.f32 %v4467_v25, %v4419_v28 }
 0x62d   :  { %v4553_v57 = vpop.f32.mrf.mxu3 }
 0x62e   :  { %v9618_v0 = vadd.f32 %v4553_v57, %v4505_v30 }
 0x62f   :  { %4956 = vmatpush.bf16.msra.mxu0 %v6868_v4 }
 0x632   :  { %v4506_v24 = vpop.f32.mrf.mxu2 }
 0x633   :  { %v4507_v36 = vadd.f32 %v4506_v24, %v4458_v1  ;;  %v4470_v40 = vpop.f32.mrf.mxu1 }
 0x634   :  { %v4471_v45 = vadd.f32 %v4470_v40, %v9559_v15  ;;  %v4424_v15 = vadd.f32 %v9563_v5, %v4375_v13  ;;  %v4428_v5 = vpop.f32.mrf.mxu0 }
 0x635   :  { %v4555_v43 = vpop.f32.mrf.mxu3 }
 0x636   :  { %v9623_v51 = vadd.f32 %v4555_v43, %v4507_v36  ;;  %4665 = vmatmul.bf16.gmra.mxu1 %v9087_v8  ;;  %v4414_v8 = vadd.f32 %v9501_v35, %v4365_v12 }
 0x637   :  { %4704 = vmatmul.bf16.gmra.mxu2 %v9242_v52 }
 0x638   :  { %v4463_v52 = vadd.f32 %v4462_v55, %v4414_v8 }
 0x63a   :  { %v4509_v63 = vpop.f32.mrf.mxu2  ;;  %4933 = vmatmul.bf16.gmra.mxu3 %v9524_v29  ;;  %v4380_v29 = vadd.f32 %v9579_v10, %v9416_v61  ;;  %v6866_v10 = vld [vmem:[%s9733_s5 + $0x58] sm:$0xff] }
 0x63b   :  { %v9629_v11 = vadd.f32 %v4509_v63, %v4461_v37  ;;  %v4472_v41 = vpop.f32.mrf.mxu1 }
 0x63c   :  { %v4473_v53 = vadd.f32 %v4472_v41, %v4424_v15  ;;  %v4429_v35 = vadd.f32 %v4428_v5, %v4380_v29 }
 0x642   :  { %v4511_v39 = vpop.f32.mrf.mxu2 }
 0x643   :  { %v9637_v17 = vadd.f32 %v4511_v39, %v4463_v52  ;;  %v4475_v34 = vpop.f32.mrf.mxu1 }
 0x644   :  { %v4476_v20 = vadd.f32 %v4475_v34, %v9576_v62  ;;  %v4558_v34 = vpop.f32.mrf.mxu3 }
 0x646   :  { %4670 = vmatmul.bf16.gmra.mxu1 %v9110_v44  ;;  %v6867_v44 = vld [vmem:[%s9733_s5 + $0x60] sm:$0xff] }
 0x647   :  { %4709 = vmatmul.bf16.gmra.mxu2 %v9261_v54  ;;  %4957 = vmatpush.bf16.msra.mxu0 %v6867_v44  ;;  %v4587_v54 = vpop.f32.mrf.mxu0 }
 0x648   :  { %v4588_v25 = vadd.f32 %v4587_v54, %v9587_v58 }
 0x64a   :  { %v4514_v1 = vpop.f32.mrf.mxu2  ;;  %4938 = vmatmul.bf16.gmra.mxu3 %v9553_v38 }
 0x64b   :  { %v9644_v60 = vadd.f32 %v4514_v1, %v4466_v21  ;;  %v4477_v6 = vpop.f32.mrf.mxu1  ;;  %4958 = vmatpush.bf16.msra.mxu0 %v6866_v10 }
 0x64c   :  { %v4478_v62 = vadd.f32 %v4477_v6, %v4429_v35 }
 0x64f   :  { %4959 = vmatpush.bf16.msra.mxu0 %v6865_v56  ;;  %v4589_v2 = vpop.f32.mrf.mxu0 }
 0x650   :  { %v4590_v24 = vadd.f32 %v4589_v2, %v9590_v3 }
 0x652   :  { %v4516_v50 = vpop.f32.mrf.mxu2 }
 0x653   :  { %v9650_v61 = vadd.f32 %v4516_v50, %v4468_v19  ;;  %v4636_v38 = vpop.f32.mrf.mxu1 }
 0x654   :  { %v4637_v57 = vadd.f32 %v4636_v38, %v4588_v25 }
 0x657   :  { %4714 = vmatmul.bf16.gmra.mxu2 %v9277_v42  ;;  %v6864_v42 = vld [vmem:[%s9733_s5 + $0x48] sm:$0xff]  ;;  %v4592_v46 = vpop.f32.mrf.mxu0 }
 0x658   :  { %4960 = vmatpush.bf16.msra.mxu0 %v6864_v42  ;;  %v4593_v41 = vadd.f32 %v4592_v46, %v9596_v26 }
 0x65a   :  { %v4519_v37 = vpop.f32.mrf.mxu2  ;;  %4943 = vmatmul.bf16.gmra.mxu3 %v9570_v33 }
 0x65b   :  { %v9659_v23 = vadd.f32 %v4519_v37, %v4471_v45  ;;  %v4638_v55 = vpop.f32.mrf.mxu1 }
 0x65c   :  { %4961 = vmatpush.bf16.msra.mxu0 %v6863_v47  ;;  %v4639_v36 = vadd.f32 %v4638_v55, %v4590_v24 }
 0x65f   :  { %v4594_v30 = vpop.f32.mrf.mxu0 }
 0x660   :  { %v4595_v58 = vadd.f32 %v4594_v30, %v9599_v31 }
 0x662   :  { %v4521_v7 = vpop.f32.mrf.mxu2 }
 0x663   :  { %v9668_v18 = vadd.f32 %v4521_v7, %v4473_v53  ;;  %v4641_v48 = vpop.f32.mrf.mxu1 }
 0x664   :  { %v4642_v53 = vadd.f32 %v4641_v48, %v4593_v41 }
 0x667   :  { %4719 = vmatmul.bf16.gmra.mxu2 %v9293_v16  ;;  %v4597_v19 = vpop.f32.mrf.mxu0 }
 0x668   :  { %v4598_v50 = vadd.f32 %v4597_v19, %v9604_v22 }
 0x66a   :  { %v4524_v33 = vpop.f32.mrf.mxu2  ;;  %4948 = vmatmul.bf16.gmra.mxu3 %v9583_v49 }
 0x66b   :  { %v9674_v21 = vadd.f32 %v4524_v33, %v4476_v20  ;;  %v4643_v28 = vpop.f32.mrf.mxu1 }
 0x66c   :  { %v4644_v8 = vadd.f32 %v4643_v28, %v4595_v58 }
 0x66f   :  { %v4599_v12 = vpop.f32.mrf.mxu0 }
 0x670   :  { %v4600_v31 = vadd.f32 %v4599_v12, %v9609_v59 }
 0x672   :  { %v4526_v14 = vpop.f32.mrf.mxu2 }
 0x673   :  { %v9677_v32 = vadd.f32 %v4526_v14, %v4478_v62  ;;  %v4646_v16 = vpop.f32.mrf.mxu1  ;;  %v4560_v62 = vpop.f32.mrf.mxu3 }
 0x674   :  { %v4647_v44 = vadd.f32 %v4646_v16, %v4598_v50 }
 0x677   :  { %v4602_v39 = vpop.f32.mrf.mxu0 }
 0x678   :  { %v4603_v46 = vadd.f32 %v4602_v39, %v9618_v0  ;;  %v4561_v0 = vadd.f32 %v4560_v62, %v9637_v17 }
 0x67a   :  { %v4685_v9 = vpop.f32.mrf.mxu2 }
 0x67b   :  { %v4686_v40 = vadd.f32 %v4685_v9, %v4637_v57  ;;  %v4648_v15 = vpop.f32.mrf.mxu1  ;;  %v4563_v55 = vpop.f32.mrf.mxu3 }
 0x67c   :  { %v4649_v54 = vadd.f32 %v4648_v15, %v4600_v31  ;;  %v4564_v39 = vadd.f32 %v4563_v55, %v9644_v60 }
 0x67d   :  { %v4726_v13 = vmax.f32 %v4686_v40, 0.0 }
 0x67f   :  { %v4604_v6 = vpop.f32.mrf.mxu0 }
 0x680   :  { %v4605_v22 = vadd.f32 %v4604_v6, %v9623_v51 }
 0x682   :  { %v4687_v45 = vpop.f32.mrf.mxu2 }
 0x683   :  { %v4688_v43 = vadd.f32 %v4687_v45, %v4639_v36  ;;  %v4651_v29 = vpop.f32.mrf.mxu1  ;;  %v4565_v30 = vpop.f32.mrf.mxu3  ;;  %v4559_v36 = vadd.f32 %v4558_v34, %v9629_v11 }
 0x684   :  { %v4652_v48 = vadd.f32 %v4651_v29, %v4603_v46  ;;  %v4566_v17 = vadd.f32 %v4565_v30, %v9650_v61 }
 0x685   :  { %v4728_v49 = vmax.f32 %v4688_v43, 0.0 }
 0x687   :  { %v4758_v63 = vpack.c.bf16 %v4728_v49, %v4726_v13  ;;  %v4607_v2 = vpop.f32.mrf.mxu0 }
 0x688   :  { %v4608_v51 = vadd.f32 %v4607_v2, %v4559_v36 }
 0x689   :  { %4962 = vmatmul.bf16.vlgmr.msra.gmra.mxu0 %v4758_v63 }
 0x68a   :  { %v4690_v27 = vpop.f32.mrf.mxu2 }
 0x68b   :  { %v4691_v52 = vadd.f32 %v4690_v27, %v4642_v53  ;;  %v4653_v26 = vpop.f32.mrf.mxu1  ;;  %v4568_v43 = vpop.f32.mrf.mxu3 }
 0x68c   :  { %v4654_v59 = vadd.f32 %v4653_v26, %v4605_v22  ;;  %v4569_v60 = vadd.f32 %v4568_v43, %v9659_v23 }
 0x68d   :  { %v4730_v5 = vmax.f32 %v4691_v52, 0.0 }
 0x68f   :  { %v4609_v14 = vpop.f32.mrf.mxu0 }
 0x690   :  { %v4610_v63 = vadd.f32 %v4609_v14, %v4561_v0 }
 0x692   :  { %v4692_v3 = vpop.f32.mrf.mxu2 }
 0x693   :  { %v4693_v20 = vadd.f32 %v4692_v3, %v4644_v8  ;;  %v4656_v47 = vpop.f32.mrf.mxu1  ;;  %v4570_v58 = vpop.f32.mrf.mxu3 }
 0x694   :  { %v4657_v49 = vadd.f32 %v4656_v47, %v4608_v51 }
 0x695   :  { %v4732_v1 = vmax.f32 %v4693_v20, 0.0 }
 0x697   :  { %v4760_v35 = vpack.c.bf16 %v4732_v1, %v4730_v5  ;;  %v4612_v45 = vpop.f32.mrf.mxu0 }
 0x698   :  { %v4613_v20 = vadd.f32 %v4612_v45, %v4564_v39 }
 0x699   :  { %4967 = vmatmul.bf16.gmra.mxu0 %v4760_v35 }
 0x69a   :  { %v4695_v4 = vpop.f32.mrf.mxu2 }
 0x69b   :  { %v4696_v38 = vadd.f32 %v4695_v4, %v4647_v44  ;;  %v4658_v9 = vpop.f32.mrf.mxu1  ;;  %v4573_v5 = vpop.f32.mrf.mxu3 }
 0x69c   :  { %v4659_v12 = vadd.f32 %v4658_v9, %v4610_v63  ;;  %v4574_v23 = vadd.f32 %v4573_v5, %v9674_v21  ;;  %v9698_v21 = vld [vmem:[%s9734_s6] ss:$0 sm:$0xff] }
 0x69d   :  { %v4734_v56 = vmax.f32 %v4696_v38, 0.0 }
 0x69f   :  { %v4614_v53 = vpop.f32.mrf.mxu0 }
 0x6a0   :  { %v4615_v35 = vadd.f32 %v4614_v53, %v4566_v17 }
 0x6a2   :  { %v4697_v10 = vpop.f32.mrf.mxu2 }
 0x6a3   :  { %v4698_v37 = vadd.f32 %v4697_v10, %v4649_v54  ;;  %v4661_v13 = vpop.f32.mrf.mxu1  ;;  %v4575_v10 = vpop.f32.mrf.mxu3 }
 0x6a4   :  { %v4662_v1 = vadd.f32 %v4661_v13, %v4613_v20 }
 0x6a5   :  { %v4736_v42 = vmax.f32 %v4698_v37, 0.0 }
 0x6a7   :  { %v4762_v7 = vpack.c.bf16 %v4736_v42, %v4734_v56  ;;  %v4617_v29 = vpop.f32.mrf.mxu0  ;;  %v4571_v56 = vadd.f32 %v4570_v58, %v9668_v18 }
 0x6a8   :  { %v4618_v42 = vadd.f32 %v4617_v29, %v4569_v60 }
 0x6a9   :  { %4972 = vmatmul.bf16.gmra.mxu0 %v4762_v7 }
 0x6aa   :  { %v4700_v33 = vpop.f32.mrf.mxu2 }
 0x6ab   :  { %v4701_v28 = vadd.f32 %v4700_v33, %v4652_v48  ;;  %v4663_v3 = vpop.f32.mrf.mxu1  ;;  %v4914_v22 = vpop.f32.mrf.mxu3 }
 0x6ac   :  { %v4664_v6 = vadd.f32 %v4663_v3, %v4615_v35 }
 0x6ad   :  { %v4738_v57 = vmax.f32 %v4701_v28, 0.0 }
 0x6af   :  { %v4619_v38 = vpop.f32.mrf.mxu0 }
 0x6b0   :  { %v4620_v55 = vadd.f32 %v4619_v38, %v4571_v56 }
 0x6b2   :  { %v4702_v25 = vpop.f32.mrf.mxu2 }
 0x6b3   :  { %v4703_v19 = vadd.f32 %v4702_v25, %v4654_v59  ;;  %v4666_v4 = vpop.f32.mrf.mxu1  ;;  %v4576_v25 = vadd.f32 %v4575_v10, %v9677_v32 }
 0x6b4   :  { %v4667_v2 = vadd.f32 %v4666_v4, %v4618_v42 }
 0x6b5   :  { %v4740_v24 = vmax.f32 %v4703_v19, 0.0 }
 0x6b7   :  { %v4764_v16 = vpack.c.bf16 %v4740_v24, %v4738_v57  ;;  %v4622_v46 = vpop.f32.mrf.mxu0  ;;  %v4916_v57 = vpop.f32.mrf.mxu3 }
 0x6b8   :  { %v4623_v19 = vadd.f32 %v4622_v46, %v4574_v23  ;;  %v4917_v53 = vadd.f32 %v9698_v21, %v4916_v57 }
 0x6b9   :  { %4977 = vmatmul.bf16.gmra.mxu0 %v4764_v16 }
 0x6ba   :  { %v4705_v40 = vpop.f32.mrf.mxu2 }
 0x6bb   :  { %v4706_v15 = vadd.f32 %v4705_v40, %v4657_v49  ;;  %v4668_v37 = vpop.f32.mrf.mxu1 }
 0x6bc   :  { %v4669_v7 = vadd.f32 %v4668_v37, %v4620_v55 }
 0x6bd   :  { %v4742_v8 = vmax.f32 %v4706_v15, 0.0 }
 0x6bf   :  { %v4624_v18 = vpop.f32.mrf.mxu0  ;;  %v4919_v63 = vpop.f32.mrf.mxu3 }
 0x6c0   :  { %v4625_v36 = vadd.f32 %v4624_v18, %v4576_v25  ;;  %v4920_v39 = vadd.f32 %v9698_v21, %v4919_v63 }
 0x6c2   :  { %v4707_v27 = vpop.f32.mrf.mxu2 }
 0x6c3   :  { %v4708_v41 = vadd.f32 %v4707_v27, %v4659_v12  ;;  %v4671_v14 = vpop.f32.mrf.mxu1  ;;  %v4915_v12 = vadd.f32 %v9698_v21, %v4914_v22 }
 0x6c4   :  { %v4672_v16 = vadd.f32 %v4671_v14, %v4623_v19 }
 0x6c5   :  { %v4744_v52 = vmax.f32 %v4708_v41, 0.0 }
 0x6c7   :  { %v4766_v11 = vpack.c.bf16 %v4744_v52, %v4742_v8  ;;  %v4921_v32 = vpop.f32.mrf.mxu3 }
 0x6c8   :  { %v4922_v29 = vadd.f32 %v9698_v21, %v4921_v32 }
 0x6c9   :  { %4982 = vmatmul.bf16.gmra.mxu0 %v4766_v11 }
 0x6ca   :  { %v4710_v34 = vpop.f32.mrf.mxu2 }
 0x6cb   :  { %v4711_v62 = vadd.f32 %v4710_v34, %v4662_v1  ;;  %v4673_v24 = vpop.f32.mrf.mxu1 }
 0x6cc   :  { %v4674_v40 = vadd.f32 %v4673_v24, %v4625_v36 }
 0x6cd   :  { %v4746_v44 = vmax.f32 %v4711_v62, 0.0 }
 0x6cf   :  { %v4924_v41 = vpop.f32.mrf.mxu3 }
 0x6d2   :  { %v4712_v50 = vpop.f32.mrf.mxu2 }
 0x6d3   :  { %v4713_v26 = vadd.f32 %v4712_v50, %v4664_v6  ;;  %v4925_v50 = vadd.f32 %v9698_v21, %v4924_v41 }
 0x6d5   :  { %v4748_v31 = vmax.f32 %v4713_v26, 0.0 }
 0x6d7   :  { %v4768_v54 = vpack.c.bf16 %v4748_v31, %v4746_v44  ;;  %v4926_v34 = vpop.f32.mrf.mxu3 }
 0x6d9   :  { %4987 = vmatmul.bf16.gmra.mxu0 %v4768_v54  ;;  %v4927_v54 = vadd.f32 %v9698_v21, %v4926_v34 }
 0x6da   :  { %v4715_v61 = vpop.f32.mrf.mxu2 }
 0x6db   :  { %v4716_v47 = vadd.f32 %v4715_v61, %v4667_v2 }
 0x6dd   :  { %v4750_v30 = vmax.f32 %v4716_v47, 0.0 }
 0x6df   :  { %v4929_v35 = vpop.f32.mrf.mxu3 }
 0x6e0   :  { %v4930_v42 = vadd.f32 %v9698_v21, %v4929_v35 }
 0x6e2   :  { %v4717_v33 = vpop.f32.mrf.mxu2 }
 0x6e3   :  { %v4718_v48 = vadd.f32 %v4717_v33, %v4669_v7 }
 0x6e5   :  { %v4752_v59 = vmax.f32 %v4718_v48, 0.0 }
 0x6e7   :  { %v4770_v28 = vpack.c.bf16 %v4752_v59, %v4750_v30  ;;  %v4931_v31 = vpop.f32.mrf.mxu3 }
 0x6e8   :  { %v4932_v7 = vadd.f32 %v9698_v21, %v4931_v31  ;;  %v6982_v31 = vmov 0  }
 0x6e9   :  { %4992 = vmatmul.bf16.gmra.mxu0 %v4770_v28  ;;  %6888 = vset.pattern.permute.xlu0 %v6982_v31 }
 0x6ea   :  { %v4720_v9 = vpop.f32.mrf.mxu2 }
 0x6eb   :  { %v4721_v45 = vadd.f32 %v4720_v9, %v4672_v16 }
 0x6ed   :  { %v4754_v13 = vmax.f32 %v4721_v45, 0.0 }
 0x6ef   :  { %v4934_v56 = vpop.f32.mrf.mxu3 }
 0x6f0   :  { %v4935_v30 = vadd.f32 %v9698_v21, %v4934_v56 }
 0x6f2   :  { %v4722_v0 = vpop.f32.mrf.mxu2 }
 0x6f3   :  { %v4723_v43 = vadd.f32 %v4722_v0, %v4674_v40 }
 0x6f5   :  { %v4756_v51 = vmax.f32 %v4723_v43, 0.0 }
 0x6f7   :  { %v4772_v49 = vpack.c.bf16 %v4756_v51, %v4754_v13  ;;  %v4936_v47 = vpop.f32.mrf.mxu3 }
 0x6f8   :  { %v4937_v9 = vadd.f32 %v9698_v21, %v4936_v47 }
 0x6f9   :  { %4997 = vmatmul.bf16.gmra.mxu0 %v4772_v49 }
 0x6ff   :  { %v4939_v23 = vpop.f32.mrf.mxu3 }
 0x706   :  { %v4963_v15 = vpop.f32.mrf.mxu0 }
 0x707   :  { %v4964_v27 = vadd.f32 %v4963_v15, %v4915_v12  ;;  %v4941_v24 = vpop.f32.mrf.mxu3 }
 0x709   :  { %v5003_v52 = vmax.f32 %v4964_v27, 0.0 }
 0x70e   :  { %v4965_v58 = vpop.f32.mrf.mxu0 }
 0x70f   :  { %v4966_v8 = vadd.f32 %v4965_v58, %v4917_v53  ;;  %v4944_v40 = vpop.f32.mrf.mxu3 }
 0x711   :  { %v5004_v3 = vmax.f32 %v4966_v8, 0.0 }
 0x713   :  { %v9702_v11 = vpack.c.bf16 %v5004_v3, %v5003_v52  ;;  %v4945_v52 = vadd.f32 %v9698_v21, %v4944_v40 }
 0x716   :  { %v4968_v17 = vpop.f32.mrf.mxu0 }
 0x717   :  { %v4969_v20 = vadd.f32 %v4968_v17, %v4920_v39  ;;  %v4946_v0 = vpop.f32.mrf.mxu3 }
 0x718   :  { %v4947_v53 = vadd.f32 %v9698_v21, %v4946_v0 }
 0x719   :  { %v5005_v4 = vmax.f32 %v4969_v20, 0.0  ;;  %v4942_v20 = vadd.f32 %v9698_v21, %v4941_v24 }
 0x71e   :  { %v4970_v5 = vpop.f32.mrf.mxu0 }
 0x71f   :  { %v4971_v1 = vadd.f32 %v4970_v5, %v4922_v29  ;;  %v4949_v51 = vpop.f32.mrf.mxu3  ;;  %v4940_v5 = vadd.f32 %v9698_v21, %v4939_v23 }
 0x720   :  { %v4950_v32 = vadd.f32 %v9698_v21, %v4949_v51 }
 0x721   :  { %v5006_v6 = vmax.f32 %v4971_v1, 0.0 }
 0x723   :  { %v9706_v62 = vpack.c.bf16 %v5006_v6, %v5005_v4 }
 0x726   :  { %v4973_v26 = vpop.f32.mrf.mxu0 }
 0x727   :  { %v4974_v44 = vadd.f32 %v4973_v26, %v4925_v50  ;;  %v4951_v63 = vpop.f32.mrf.mxu3 }
 0x728   :  { %v4952_v12 = vadd.f32 %v9698_v21, %v4951_v63  ;;  %v5019_v21 = vld [vmem:[%s9735_s7] sm:$0x1]  ;;  %s5073_s7 = sshll.u32 %s6983_s1, 4  ;;  %s5074_s7 = int_to_ptr.vmem [resolvable:$true] %s5073_s7 }
 0x729   :  { %v5007_v10 = vmax.f32 %v4974_v44, 0.0  ;;  %v5028_v44 = vld [vmem:[#allocation2] sm:$0x1] }
 0x72a   :  { %5031 = vperm.xlu0 %6888, %v5028_v44  }
 0x72e   :  { %v4975_v38 = vpop.f32.mrf.mxu0 }
 0x72f   :  { %v4976_v60 = vadd.f32 %v4975_v38, %v4927_v54 }
 0x731   :  { %v5008_v37 = vmax.f32 %v4976_v60, 0.0 }
 0x733   :  { %v5022_v61 = vpack.c.bf16 %v5008_v37, %v5007_v10 }
 0x736   :  { %v4978_v2 = vpop.f32.mrf.mxu0 }
 0x737   :  { %v4979_v55 = vadd.f32 %v4978_v2, %v4930_v42 }
 0x739   :  { %v5009_v48 = vmax.f32 %v4979_v55, 0.0 }
 0x73e   :  { %v4980_v33 = vpop.f32.mrf.mxu0 }
 0x73f   :  { %v4981_v46 = vadd.f32 %v4980_v33, %v4932_v7 }
 0x741   :  { %v5010_v22 = vmax.f32 %v4981_v46, 0.0 }
 0x743   :  { %v5023_v14 = vpack.c.bf16 %v5010_v22, %v5009_v48 }
 0x746   :  { %v4983_v59 = vpop.f32.mrf.mxu0 }
 0x747   :  { %v4984_v28 = vadd.f32 %v4983_v59, %v4935_v30 }
 0x749   :  { %v5011_v19 = vmax.f32 %v4984_v28, 0.0 }
 0x74e   :  { %v4985_v25 = vpop.f32.mrf.mxu0 }
 0x74f   :  { %v4986_v18 = vadd.f32 %v4985_v25, %v4937_v9 }
 0x751   :  { %v5012_v57 = vmax.f32 %v4986_v18, 0.0 }
 0x753   :  { %v5024_v16 = vpack.c.bf16 %v5012_v57, %v5011_v19 }
 0x756   :  { %v4988_v36 = vpop.f32.mrf.mxu0 }
 0x757   :  { %v4989_v4 = vadd.f32 %v4988_v36, %v4940_v5 }
 0x759   :  { %v5013_v50 = vmax.f32 %v4989_v4, 0.0 }
 0x75e   :  { %v4990_v45 = vpop.f32.mrf.mxu0 }
 0x75f   :  { %v4991_v1 = vadd.f32 %v4990_v45, %v4942_v20 }
 0x761   :  { %v5014_v6 = vmax.f32 %v4991_v1, 0.0 }
 0x763   :  { %v5025_v26 = vpack.c.bf16 %v5014_v6, %v5013_v50 }
 0x766   :  { %v4993_v43 = vpop.f32.mrf.mxu0 }
 0x767   :  { %v4994_v34 = vadd.f32 %v4993_v43, %v4945_v52 }
 0x769   :  { %v5015_v29 = vmax.f32 %v4994_v34, 0.0 }
 0x76e   :  { %v4995_v13 = vpop.f32.mrf.mxu0 }
 0x76f   :  { %v4996_v3 = vadd.f32 %v4995_v13, %v4947_v53 }
 0x771   :  { %v5016_v17 = vmax.f32 %v4996_v3, 0.0 }
 0x773   :  { %v5026_v35 = vpack.c.bf16 %v5016_v17, %v5015_v29 }
 0x776   :  { %v4998_v49 = vpop.f32.mrf.mxu0 }
 0x777   :  { %v4999_v15 = vadd.f32 %v4998_v49, %v4950_v32 }
 0x779   :  { %v5017_v58 = vmax.f32 %v4999_v15, 0.0 }
 0x77e   :  { %v5000_v27 = vpop.f32.mrf.mxu0 }
 0x77f   :  { %v5001_v41 = vadd.f32 %v5000_v27, %v4952_v12 }
 0x781   :  { %v5018_v8 = vmax.f32 %v5001_v41, 0.0 }
 0x783   :  { %v5027_v39 = vpack.c.bf16 %v5018_v8, %v5017_v58 }
 0x785   :  { %5035 = vmatpush.bf16.xpose.msrb.mxu1 %v5027_v39 }
 0x78d   :  { %5036 = vmatpush.bf16.xpose.msrb.mxu1 %v5026_v35 }
 0x795   :  { %5037 = vmatpush.bf16.xpose.msrb.mxu1 %v5025_v26 }
 0x79c   :  { %v5032_v54 = vpop.permute.xlu0 %5031 }
 0x79d   :  { %5038 = vmatpush.bf16.xpose.msrb.mxu1 %v5024_v16  ;;  %v5034_v38 = vperm.slane %v5032_v54, 0 }
 0x7a5   :  { %5039 = vmatpush.bf16.xpose.msrb.mxu1 %v5023_v14 }
 0x7ad   :  { %5040 = vmatpush.bf16.xpose.msrb.mxu1 %v5022_v61 }
 0x7b5   :  { %5041 = vmatpush.bf16.xpose.msrb.mxu1 %v9706_v62 }
 0x7bd   :  { %5042 = vmatpush.bf16.xpose.msrb.mxu1 %v9702_v11 }
 0x7c4   :  { %5043 = vmatmul.bf16.vlgmr.msrb.gmra.mxu1 %v5019_v21 }
 0x841   :  { %v5044_v60 = vpop.f32.mrf.mxu1 }
 0x842   :  { %v5045_v10 = vadd.f32 %v5044_v60, %v5034_v38 }
 0x844   :  { %v6526_v37 = vmul.f32 -1.442695, %v5045_v10 }
 0x846   :  { %6890 = vpow2.f32 %v6526_v37 }
 0x849   :  { %v5046_v56 = vpop.f32.mrf.mxu1 }
 0x84c   :  { %v6891_v42 = vpop.eup %6890 }
 0x84d   :  { %v5051_v2 = vadd.f32 1.0, %v6891_v42 }
 0x84f   :  { %6892 = vrcp.f32 %v5051_v2  ;;  %v5063_v7 = vand.u32 2147483648, %v5051_v2  ;;  %v5061_v47 = vand.u32 2147483647, %v5051_v2  ;;  %vm5057_vm2 = vweird.f32 %v5051_v2 }
 0x851   :  { %v5064_v46 = vor.u32 1.1754944e-38, %v5063_v7  ;;  %vm5062_vm4 = vcmp.eq.f32.partialorder %v5061_v47, 8.507059e+37 }
 0x855   :  { %v6893_v61 = vpop.eup %6892 }
 0x856   :  { %v5053_v55 = vmul.f32 %v6893_v61, %v5051_v2  ;;  %vm5058_vm1 = vweird.f32 %v6893_v61 }
 0x857   :  { %vm5059_vm3 = vmor %vm5057_vm2, %vm5058_vm1 }
 0x858   :  { %v5054_v62 = vsub.f32 1.0, %v5053_v55 }
 0x85a   :  { %v5055_v11 = vmul.f32 %v6893_v61, %v5054_v62 }
 0x85c   :  { %v5056_v33 = vadd.f32 %v6893_v61, %v5055_v11 }
 0x85e   :  { %v5060_v48 = vsel %vm5059_vm3, %v6893_v61, %v5056_v33 }
 0x85f   :  { %v5065_v22 = vsel %vm5062_vm4, %v5064_v46, %v5060_v48 }
 0x860   :  { %5067 = vst [vmem:[#allocation8] sm:$0x1] %v5065_v22 }
 0x861   :  { %5078 = dma.vmem_to_hbm [thread:$0]  %s5074_s7, 16, %s5076_s25, [#allocation5]  }
 0x862   :  { %6974 = dma.done.wait [#allocation5], 16  }
 0x863   :  { %6975 = vsyncadd [#allocation5], 4294967280 }
 0x864   :  { %5083 = vsyncpa [#allocation4], 1 }
 0x865   :  { %5084 = vsyncpa [#allocation7], 1 }
 0x866   :  { %5085 = vsyncpa [#allocation5], 1 }

</bundles_post_ra>
